<compile_context>
chip_gen: v5e
topology: v5e:2x2
jax: 0.10.0
libtpu: 0.0.40
codegen_flags: <defaults>
</compile_context>

<pallas_src>
import functools

import jax
import jax.numpy as jnp
from jax.experimental import pallas as pl
from jax.experimental.pallas import tpu as pltpu

LANE = 128
_MIB = 1024 * 1024


def _round_up(x, m):
    return (x + m - 1) // m * m


# ---------------------------------------------------------------------------
# Fused Pallas kernel: one grid step == B_TILE images of the batch.
# ---------------------------------------------------------------------------
def _shakedrop_unit_kernel(
    xph_ref,                      # (BT, s*s, Hq, Wq, Cin_p)   bf16 polyphase x
    w1_ref, s1_ref, b1_ref,       # (9*Cin_p, Cout_p) bf16 ; (1, Cout_p) f32 x2
    w2_ref, s2_ref, b2_ref,       # (9*Cout_p, Cout_p) bf16 ; (1, Cout_p) f32 x2
    wi_ref, si_ref, bi_ref,       # (Cin_p, Cout_p)   bf16 ; (1, Cout_p) f32 x2
    o_ref,                        # (BT, Ho, Wo, Cout_p)      bf16
    col1_ref,                     # scratch (M, 9*Cin_p)  bf16  conv1 im2col
    col2_ref,                     # scratch (M, 9*Cout_p) bf16  conv2 im2col
    y1_ref,                       # scratch (BT, Hp, Wp, Cout_p) bf16  padded y1
    *, stride, ho, wo, life_prob,
):
    s = stride
    bt = o_ref.shape[0]
    m = bt * ho * wo
    cin = xph_ref.shape[-1]
    cout = o_ref.shape[-1]

    # ---- im2col for conv1: pay the per-tap relayout copy exactly once into
    #      lane-aligned column blocks (tap-major, Cin contiguous per tap). ----
    for kh in range(3):
        for kw in range(3):
            t = kh * 3 + kw
            ph = (kh % s) * s + (kw % s)          # polyphase plane of this tap
            r0, c0 = kh // s, kw // s             # stride-1 offset inside plane
            tap = xph_ref[:, ph, r0:r0 + ho, c0:c0 + wo, :]
            col1_ref[:, t * cin:(t + 1) * cin] = tap.reshape(m, cin)

    # ---- body conv1 (3x3, stride s) + BN + ReLU: ONE matmul, K = 9*Cin_p ----
    acc = jnp.dot(col1_ref[...], w1_ref[...], preferred_element_type=jnp.float32)
    y1 = jnp.maximum(acc * s1_ref[...] + b1_ref[...], 0.0)

    # ---- identity branch (1x1, stride s) + BN: reuse conv1's centre tap -----
    ident = jnp.dot(col1_ref[:, 4 * cin:5 * cin], wi_ref[...],
                    preferred_element_type=jnp.float32)
    ident = ident * si_ref[...] + bi_ref[...]

    # ---- stash zero-padded y1 for conv2.  Only the 1-px halo strips are
    #      (re)zeroed each step (the interior is fully rewritten); re-zeroing
    #      per step keeps this correct if the parallel axis is core-split. ----
    zrow = jnp.zeros((bt, 1, wo + 2, cout), y1_ref.dtype)
    zcol = jnp.zeros((bt, ho, 1, cout), y1_ref.dtype)
    y1_ref[:, 0:1, 0:wo + 2, :] = zrow
    y1_ref[:, ho + 1:ho + 2, 0:wo + 2, :] = zrow
    y1_ref[:, 1:ho + 1, 0:1, :] = zcol
    y1_ref[:, 1:ho + 1, wo + 1:wo + 2, :] = zcol
    y1_ref[:, 1:ho + 1, 1:wo + 1, :] = (
        y1.reshape(bt, ho, wo, cout).astype(y1_ref.dtype))

    # ---- im2col for conv2 (3x3, stride 1) -----------------------------------
    for kh in range(3):
        for kw in range(3):
            t = kh * 3 + kw
            col2_ref[:, t * cout:(t + 1) * cout] = (
                y1_ref[:, kh:kh + ho, kw:kw + wo, :].reshape(m, cout))

    # ---- body conv2 + BN: ONE matmul, K = 9*Cout_p --------------------------
    body = jnp.dot(col2_ref[...], w2_ref[...], preferred_element_type=jnp.float32)
    body = body * s2_ref[...] + b2_ref[...]

    # ---- eval-mode ShakeDrop (E[gate] = life_prob) + residual + ReLU --------
    out = jnp.maximum(life_prob * body + ident, 0.0)
    o_ref[...] = out.reshape(bt, ho, wo, cout).astype(o_ref.dtype)


# ---------------------------------------------------------------------------
# Glue: BN folding, weight packing (PyTorch layout -> kernel layout), polyphase
# ---------------------------------------------------------------------------
def _fold_bn(gamma, beta, mean, var, eps=1e-5):
    scale = gamma / jnp.sqrt(var + eps)
    return scale, beta - mean * scale


def _pad_axis(a, axis, target):
    pad = [(0, 0)] * a.ndim
    pad[axis] = (0, target - a.shape[axis])
    return jnp.pad(a, pad)


def _polyphase_nhwc(x, stride, cin_pad):
    """conv pad=1 + channel pad, then split spatial dims into `stride` phases so
    every 3x3 tap of a stride-`stride` conv is a contiguous stride-1 slice."""
    n, h, w, c = x.shape
    hq = _round_up(h + 2, stride)
    wq = _round_up(w + 2, stride)
    xp = jnp.pad(x, ((0, 0), (1, hq - h - 1), (1, wq - w - 1), (0, cin_pad - c)))
    xp = xp.reshape(n, hq // stride, stride, wq // stride, stride, cin_pad)
    xp = jnp.transpose(xp, (0, 2, 4, 1, 3, 5))
    return xp.reshape(n, stride * stride, hq // stride, wq // stride, cin_pad)


def make_params(key, in_channels, out_channels):
    """Deterministic synthetic parameters in PyTorch layouts."""
    k1, k2, k3 = jax.random.split(key, 3)

    def bn(c, tag):
        return (1.0 + 0.01 * jnp.arange(c, dtype=jnp.float32),            # gamma
                0.01 * jnp.arange(c, dtype=jnp.float32) + 0.001 * tag,     # beta
                jnp.zeros((c,), jnp.float32),                              # mean
                jnp.ones((c,), jnp.float32))                               # var

    g1, be1, m1, v1 = bn(out_channels, 1)
    g2, be2, m2, v2 = bn(out_channels, 2)
    gi, bei, mi, vi = bn(out_channels, 3)
    return dict(
        w1=0.1 * jax.random.normal(k1, (out_channels, in_channels, 3, 3), jnp.float32),
        g1=g1, be1=be1, m1=m1, v1=v1,
        w2=0.1 * jax.random.normal(k2, (out_channels, out_channels, 3, 3), jnp.float32),
        g2=g2, be2=be2, m2=m2, v2=v2,
        wi=0.1 * jax.random.normal(k3, (out_channels, in_channels, 1, 1), jnp.float32),
        gi=gi, bei=bei, mi=mi, vi=vi,
    )


def pack_params(p, *, resize_identity=True):
    """Fold BN into scale/bias, pad channels to lane multiples, reshape conv
    weights to the im2col layout (9*C_in_p, C_out_p), cast to bf16."""
    cout, cin = p["w1"].shape[0], p["w1"].shape[1]
    cin_p = max(LANE, _round_up(cin, LANE))
    cout_p = max(LANE, _round_up(cout, LANE))

    def conv3x3(w_oihw, ci_pad):
        # PyTorch (Cout, Cin, kh, kw) -> tap-major (9*Cin_pad, Cout_pad) bf16.
        w = jnp.transpose(w_oihw, (2, 3, 1, 0))            # (3, 3, Cin, Cout)
        w = _pad_axis(_pad_axis(w, 2, ci_pad), 3, cout_p)
        return w.reshape(9 * ci_pad, cout_p).astype(jnp.bfloat16)

    def bn(g, b, m, v):
        sc, bi = _fold_bn(g, b, m, v)
        sc = _pad_axis(sc, 0, cout_p).reshape(1, cout_p).astype(jnp.float32)
        bi = _pad_axis(bi, 0, cout_p).reshape(1, cout_p).astype(jnp.float32)
        return sc, bi

    w1 = conv3x3(p["w1"], cin_p)
    s1, b1 = bn(p["g1"], p["be1"], p["m1"], p["v1"])
    w2 = conv3x3(p["w2"], cout_p)
    s2, b2 = bn(p["g2"], p["be2"], p["m2"], p["v2"])

    if resize_identity:
        wi = jnp.transpose(p["wi"][:, :, 0, 0], (1, 0))    # (Cin, Cout)
        wi = _pad_axis(_pad_axis(wi, 0, cin_p), 1, cout_p).astype(jnp.bfloat16)
        si, bi = bn(p["gi"], p["bei"], p["mi"], p["vi"])
    else:
        wi = jnp.eye(cin_p, cout_p, dtype=jnp.bfloat16)    # pass-through identity
        si = jnp.ones((1, cout_p), jnp.float32)
        bi = jnp.zeros((1, cout_p), jnp.float32)

    return dict(w1=w1, s1=s1, b1=b1, w2=w2, s2=s2, b2=b2, wi=wi, si=si, bi=bi)


# ---------------------------------------------------------------------------
# Tiling heuristics
# ---------------------------------------------------------------------------
def _vmem_bytes(bt, ss, hq, wq, cin_p, cout_p, ho, wo, hp, wp):
    m = bt * ho * wo
    db = 2                                            # pipeline double-buffers
    return (db * bt * ss * hq * wq * cin_p * 2        # polyphase input blocks
            + db * bt * ho * wo * cout_p * 2          # bf16 output blocks
            + db * ((9 * cin_p + 9 * cout_p + cin_p) * cout_p * 2
                    + 6 * cout_p * 4)                 # resident weights / BN
            + m * 9 * cin_p * 2 + m * 9 * cout_p * 2  # im2col scratches
            + bt * hp * wp * cout_p * 2               # padded y1 scratch
            + 3 * m * cout_p * 4)                     # live f32 intermediates


def _pick_batch_tile(n, ho, wo, ss, hq, wq, cin_p, cout_p, hp, wp):
    """Largest divisor of n whose per-step working set fits comfortably in
    scoped VMEM (sized for v7x) and keeps the f32 accumulator bounded."""
    best = 1
    for bt in range(1, n + 1):
        if n % bt:
            continue
        if _vmem_bytes(bt, ss, hq, wq, cin_p, cout_p, ho, wo, hp, wp) > 20 * _MIB:
            continue
        if bt * ho * wo * cout_p * 4 > 512 * 1024:    # bounded accumulator
            continue
        best = bt
    return best


# ---------------------------------------------------------------------------
# Forward pass
# ---------------------------------------------------------------------------
def shakedrop_res_unit(x_nchw, packed, *, stride, life_prob, out_channels,
                       resize_identity=True):
    if not resize_identity:
        # PyTorch uses `identity = x` directly in that case; the eye-matrix
        # pass-through is only equivalent when nothing is resized.
        assert stride == 1, "resize_identity=False requires stride == 1"

    x = jnp.transpose(x_nchw, (0, 2, 3, 1)).astype(jnp.bfloat16)   # NCHW -> NHWC
    n, h, w, _ = x.shape
    ho = (h - 1) // stride + 1
    wo = (w - 1) // stride + 1
    cin_p, cout_p = packed["wi"].shape

    xph = _polyphase_nhwc(x, stride, cin_p)
    ss, hq_s, wq_s = xph.shape[1], xph.shape[2], xph.shape[3]
    hp = _round_up(ho + 2, 8)                 # sublane-friendly y1 scratch dims
    wp = _round_up(wo + 2, 8)

    bt = _pick_batch_tile(n, ho, wo, ss, hq_s, wq_s, cin_p, cout_p, hp, wp)
    m = bt * ho * wo

    kernel = functools.partial(
        _shakedrop_unit_kernel, stride=stride, ho=ho, wo=wo, life_prob=life_prob)

    vmem_est = _vmem_bytes(bt, ss, hq_s, wq_s, cin_p, cout_p, ho, wo, hp, wp)
    vmem_limit = max(16 * _MIB, min(32 * _MIB, int(1.5 * vmem_est)))

    flops = 2 * n * ho * wo * (9 * cin_p + 9 * cout_p + cin_p) * cout_p
    bytes_accessed = (xph.size * 2 + n * ho * wo * cout_p * 2
                      + (9 * cin_p + 9 * cout_p + cin_p) * cout_p * 2
                      + 6 * cout_p * 4)

    def resident(ndim):
        return lambda b: (0,) * ndim

    out = pl.pallas_call(
        kernel,
        out_shape=jax.ShapeDtypeStruct((n, ho, wo, cout_p), jnp.bfloat16),
        grid_spec=pltpu.PrefetchScalarGridSpec(
            num_scalar_prefetch=0,
            grid=(n // bt,),
            in_specs=[
                pl.BlockSpec((bt, ss, hq_s, wq_s, cin_p),
                             lambda b: (b, 0, 0, 0, 0)),
                pl.BlockSpec((9 * cin_p, cout_p), resident(2)),   # w1
                pl.BlockSpec((1, cout_p), resident(2)),           # s1
                pl.BlockSpec((1, cout_p), resident(2)),           # b1
                pl.BlockSpec((9 * cout_p, cout_p), resident(2)),  # w2
                pl.BlockSpec((1, cout_p), resident(2)),           # s2
                pl.BlockSpec((1, cout_p), resident(2)),           # b2
                pl.BlockSpec((cin_p, cout_p), resident(2)),       # wi
                pl.BlockSpec((1, cout_p), resident(2)),           # si
                pl.BlockSpec((1, cout_p), resident(2)),           # bi
            ],
            out_specs=pl.BlockSpec((bt, ho, wo, cout_p), lambda b: (b, 0, 0, 0)),
            scratch_shapes=[
                pltpu.VMEM((m, 9 * cin_p), jnp.bfloat16),         # conv1 im2col
                pltpu.VMEM((m, 9 * cout_p), jnp.bfloat16),        # conv2 im2col
                pltpu.VMEM((bt, hp, wp, cout_p), jnp.bfloat16),   # padded y1
            ],
        ),
        compiler_params=pltpu.CompilerParams(
            dimension_semantics=("parallel",),
            vmem_limit_bytes=vmem_limit,
        ),
        cost_estimate=pl.CostEstimate(
            flops=flops, transcendentals=0, bytes_accessed=bytes_accessed),
    )(xph, packed["w1"], packed["s1"], packed["b1"],
      packed["w2"], packed["s2"], packed["b2"],
      packed["wi"], packed["si"], packed["bi"])

    out = out[:, :, :, :out_channels]                 # drop lane padding
    return jnp.transpose(out, (0, 3, 1, 2)).astype(jnp.float32)   # NHWC -> NCHW


# ---------------------------------------------------------------------------
# Pure-JAX reference (eval-mode PyTorch semantics) for a correctness check
# ---------------------------------------------------------------------------
def _reference(x_nchw, p, *, stride, life_prob, eps=1e-5):
    def conv(x, w, st, pad):
        return jax.lax.conv_general_dilated(
            x, w, window_strides=(st, st), padding=((pad, pad), (pad, pad)),
            dimension_numbers=("NCHW", "OIHW", "NCHW"))

    def bn(x, g, b, m, v):
        s = g / jnp.sqrt(v + eps)
        return x * s[None, :, None, None] + (b - m * s)[None, :, None, None]

    y = jnp.maximum(bn(conv(x_nchw, p["w1"], stride, 1),
                       p["g1"], p["be1"], p["m1"], p["v1"]), 0.0)
    y = bn(conv(y, p["w2"], 1, 1), p["g2"], p["be2"], p["m2"], p["v2"])
    ident = bn(conv(x_nchw, p["wi"], stride, 0),
               p["gi"], p["bei"], p["mi"], p["vi"])
    return jnp.maximum(life_prob * y + ident, 0.0)


# ---------------------------------------------------------------------------
if __name__ == "__main__":
    key = jax.random.PRNGKey(0)
    k_x, k_p = jax.random.split(key)

    N, C_IN, C_OUT, H, W = 2, 4, 8, 16, 16
    STRIDE = 2
    LIFE_PROB = 0.8

    x = jax.random.normal(k_x, (N, C_IN, H, W), jnp.float32)   # NCHW like PyTorch
    params = make_params(k_p, C_IN, C_OUT)
    packed = pack_params(params, resize_identity=True)

    fwd = jax.jit(functools.partial(
        shakedrop_res_unit, stride=STRIDE, life_prob=LIFE_PROB,
        out_channels=C_OUT, resize_identity=True))
    out = jax.block_until_ready(fwd(x, packed))

    assert out.shape == (N, C_OUT, H // STRIDE, W // STRIDE), out.shape
    assert bool(jnp.all(out >= 0.0))                            # final ReLU

    ref = _reference(x, params, stride=STRIDE, life_prob=LIFE_PROB)
    max_err = float(jnp.max(jnp.abs(out - ref)))
    assert max_err < 0.1, f"max |kernel - ref| = {max_err}"

    print("KERNEL_OK")
</pallas_src>

<mosaic_0001>
module attributes {stable_mosaic.version = 11 : i64} {
  func.func @_shakedrop_unit_kernel(%arg0: i32, %arg1: memref<2x4x9x9x128xbf16, #tpu.memory_space<vmem>>, %arg2: memref<1152x128xbf16, #tpu.memory_space<vmem>>, %arg3: memref<1x128xf32, #tpu.memory_space<vmem>>, %arg4: memref<1x128xf32, #tpu.memory_space<vmem>>, %arg5: memref<1152x128xbf16, #tpu.memory_space<vmem>>, %arg6: memref<1x128xf32, #tpu.memory_space<vmem>>, %arg7: memref<1x128xf32, #tpu.memory_space<vmem>>, %arg8: memref<128x128xbf16, #tpu.memory_space<vmem>>, %arg9: memref<1x128xf32, #tpu.memory_space<vmem>>, %arg10: memref<1x128xf32, #tpu.memory_space<vmem>>, %arg11: memref<2x8x8x128xbf16, #tpu.memory_space<vmem>>, %arg12: memref<128x1152xbf16, #tpu.memory_space<vmem>>, %arg13: memref<128x1152xbf16, #tpu.memory_space<vmem>>, %arg14: memref<2x16x16x128xbf16, #tpu.memory_space<vmem>>) attributes {dimension_semantics = [#tpu.dimension_semantics<parallel>], iteration_bounds = array<i64: 1>, scalar_prefetch = 0 : i64, scratch_operands = 3 : i64, tpu.core_type = #tpu.core_type<tc>, window_params = [{transform_indices = @transform_0, window_bounds = array<i64: 2, 4, 9, 9, 128>}, {pipeline_mode = #tpu.pipeline_mode<synchronous>, transform_indices = @transform_1, window_bounds = array<i64: 1152, 128>}, {pipeline_mode = #tpu.pipeline_mode<synchronous>, transform_indices = @transform_2, window_bounds = array<i64: 1, 128>}, {pipeline_mode = #tpu.pipeline_mode<synchronous>, transform_indices = @transform_3, window_bounds = array<i64: 1, 128>}, {pipeline_mode = #tpu.pipeline_mode<synchronous>, transform_indices = @transform_4, window_bounds = array<i64: 1152, 128>}, {pipeline_mode = #tpu.pipeline_mode<synchronous>, transform_indices = @transform_5, window_bounds = array<i64: 1, 128>}, {pipeline_mode = #tpu.pipeline_mode<synchronous>, transform_indices = @transform_6, window_bounds = array<i64: 1, 128>}, {pipeline_mode = #tpu.pipeline_mode<synchronous>, transform_indices = @transform_7, window_bounds = array<i64: 128, 128>}, {pipeline_mode = #tpu.pipeline_mode<synchronous>, transform_indices = @transform_8, window_bounds = array<i64: 1, 128>}, {pipeline_mode = #tpu.pipeline_mode<synchronous>, transform_indices = @transform_9, window_bounds = array<i64: 1, 128>}, {transform_indices = @transform_10, window_bounds = array<i64: 2, 8, 8, 128>}]} {
    %c0 = arith.constant 0 : index
    %c0_0 = arith.constant 0 : index
    %c0_1 = arith.constant 0 : index
    %c0_2 = arith.constant 0 : index
    %c0_3 = arith.constant 0 : index
    %0 = vector.load %arg1[%c0, %c0_0, %c0_1, %c0_2, %c0_3] : memref<2x4x9x9x128xbf16, #tpu.memory_space<vmem>>, vector<2x1x8x8x128xbf16>
    %1 = vector.shape_cast %0 : vector<2x1x8x8x128xbf16> to vector<2x8x8x128xbf16>
    %2 = vector.shape_cast %1 : vector<2x8x8x128xbf16> to vector<128x128xbf16>
    %c0_4 = arith.constant 0 : index
    %c0_5 = arith.constant 0 : index
    %3 = vector.load %arg12[%c0_4, %c0_5] : memref<128x1152xbf16, #tpu.memory_space<vmem>>, vector<128x128xbf16>
    tpu.vector_store %arg12[%c0_4, %c0_5], %2 {strides = array<i32>} : memref<128x1152xbf16, #tpu.memory_space<vmem>>, vector<128x128xbf16>,
    %c0_6 = arith.constant 0 : index
    %c1 = arith.constant 1 : index
    %c0_7 = arith.constant 0 : index
    %c0_8 = arith.constant 0 : index
    %c0_9 = arith.constant 0 : index
    %4 = vector.load %arg1[%c0_6, %c1, %c0_7, %c0_8, %c0_9] : memref<2x4x9x9x128xbf16, #tpu.memory_space<vmem>>, vector<2x1x8x8x128xbf16>
    %5 = vector.shape_cast %4 : vector<2x1x8x8x128xbf16> to vector<2x8x8x128xbf16>
    %6 = vector.shape_cast %5 : vector<2x8x8x128xbf16> to vector<128x128xbf16>
    %c0_10 = arith.constant 0 : index
    %c128 = arith.constant 128 : index
    %7 = vector.load %arg12[%c0_10, %c128] : memref<128x1152xbf16, #tpu.memory_space<vmem>>, vector<128x128xbf16>
    tpu.vector_store %arg12[%c0_10, %c128], %6 {strides = array<i32>} : memref<128x1152xbf16, #tpu.memory_space<vmem>>, vector<128x128xbf16>,
    %c0_11 = arith.constant 0 : index
    %c0_12 = arith.constant 0 : index
    %c0_13 = arith.constant 0 : index
    %c1_14 = arith.constant 1 : index
    %c0_15 = arith.constant 0 : index
    %8 = vector.load %arg1[%c0_11, %c0_12, %c0_13, %c1_14, %c0_15] : memref<2x4x9x9x128xbf16, #tpu.memory_space<vmem>>, vector<2x1x8x8x128xbf16>
    %9 = vector.shape_cast %8 : vector<2x1x8x8x128xbf16> to vector<2x8x8x128xbf16>
    %10 = vector.shape_cast %9 : vector<2x8x8x128xbf16> to vector<128x128xbf16>
    %c0_16 = arith.constant 0 : index
    %c256 = arith.constant 256 : index
    %11 = vector.load %arg12[%c0_16, %c256] : memref<128x1152xbf16, #tpu.memory_space<vmem>>, vector<128x128xbf16>
    tpu.vector_store %arg12[%c0_16, %c256], %10 {strides = array<i32>} : memref<128x1152xbf16, #tpu.memory_space<vmem>>, vector<128x128xbf16>,
    %c0_17 = arith.constant 0 : index
    %c2 = arith.constant 2 : index
    %c0_18 = arith.constant 0 : index
    %c0_19 = arith.constant 0 : index
    %c0_20 = arith.constant 0 : index
    %12 = vector.load %arg1[%c0_17, %c2, %c0_18, %c0_19, %c0_20] : memref<2x4x9x9x128xbf16, #tpu.memory_space<vmem>>, vector<2x1x8x8x128xbf16>
    %13 = vector.shape_cast %12 : vector<2x1x8x8x128xbf16> to vector<2x8x8x128xbf16>
    %14 = vector.shape_cast %13 : vector<2x8x8x128xbf16> to vector<128x128xbf16>
    %c0_21 = arith.constant 0 : index
    %c384 = arith.constant 384 : index
    %15 = vector.load %arg12[%c0_21, %c384] : memref<128x1152xbf16, #tpu.memory_space<vmem>>, vector<128x128xbf16>
    tpu.vector_store %arg12[%c0_21, %c384], %14 {strides = array<i32>} : memref<128x1152xbf16, #tpu.memory_space<vmem>>, vector<128x128xbf16>,
    %c0_22 = arith.constant 0 : index
    %c3 = arith.constant 3 : index
    %c0_23 = arith.constant 0 : index
    %c0_24 = arith.constant 0 : index
    %c0_25 = arith.constant 0 : index
    %16 = vector.load %arg1[%c0_22, %c3, %c0_23, %c0_24, %c0_25] : memref<2x4x9x9x128xbf16, #tpu.memory_space<vmem>>, vector<2x1x8x8x128xbf16>
    %17 = vector.shape_cast %16 : vector<2x1x8x8x128xbf16> to vector<2x8x8x128xbf16>
    %18 = vector.shape_cast %17 : vector<2x8x8x128xbf16> to vector<128x128xbf16>
    %c0_26 = arith.constant 0 : index
    %c512 = arith.constant 512 : index
    %19 = vector.load %arg12[%c0_26, %c512] : memref<128x1152xbf16, #tpu.memory_space<vmem>>, vector<128x128xbf16>
    tpu.vector_store %arg12[%c0_26, %c512], %18 {strides = array<i32>} : memref<128x1152xbf16, #tpu.memory_space<vmem>>, vector<128x128xbf16>,
    %c0_27 = arith.constant 0 : index
    %c2_28 = arith.constant 2 : index
    %c0_29 = arith.constant 0 : index
    %c1_30 = arith.constant 1 : index
    %c0_31 = arith.constant 0 : index
    %20 = vector.load %arg1[%c0_27, %c2_28, %c0_29, %c1_30, %c0_31] : memref<2x4x9x9x128xbf16, #tpu.memory_space<vmem>>, vector<2x1x8x8x128xbf16>
    %21 = vector.shape_cast %20 : vector<2x1x8x8x128xbf16> to vector<2x8x8x128xbf16>
    %22 = vector.shape_cast %21 : vector<2x8x8x128xbf16> to vector<128x128xbf16>
    %c0_32 = arith.constant 0 : index
    %c640 = arith.constant 640 : index
    %23 = vector.load %arg12[%c0_32, %c640] : memref<128x1152xbf16, #tpu.memory_space<vmem>>, vector<128x128xbf16>
    tpu.vector_store %arg12[%c0_32, %c640], %22 {strides = array<i32>} : memref<128x1152xbf16, #tpu.memory_space<vmem>>, vector<128x128xbf16>,
    %c0_33 = arith.constant 0 : index
    %c0_34 = arith.constant 0 : index
    %c1_35 = arith.constant 1 : index
    %c0_36 = arith.constant 0 : index
    %c0_37 = arith.constant 0 : index
    %24 = vector.load %arg1[%c0_33, %c0_34, %c1_35, %c0_36, %c0_37] : memref<2x4x9x9x128xbf16, #tpu.memory_space<vmem>>, vector<2x1x8x8x128xbf16>
    %25 = vector.shape_cast %24 : vector<2x1x8x8x128xbf16> to vector<2x8x8x128xbf16>
    %26 = vector.shape_cast %25 : vector<2x8x8x128xbf16> to vector<128x128xbf16>
    %c0_38 = arith.constant 0 : index
    %c768 = arith.constant 768 : index
    %27 = vector.load %arg12[%c0_38, %c768] : memref<128x1152xbf16, #tpu.memory_space<vmem>>, vector<128x128xbf16>
    tpu.vector_store %arg12[%c0_38, %c768], %26 {strides = array<i32>} : memref<128x1152xbf16, #tpu.memory_space<vmem>>, vector<128x128xbf16>,
    %c0_39 = arith.constant 0 : index
    %c1_40 = arith.constant 1 : index
    %c1_41 = arith.constant 1 : index
    %c0_42 = arith.constant 0 : index
    %c0_43 = arith.constant 0 : index
    %28 = vector.load %arg1[%c0_39, %c1_40, %c1_41, %c0_42, %c0_43] : memref<2x4x9x9x128xbf16, #tpu.memory_space<vmem>>, vector<2x1x8x8x128xbf16>
    %29 = vector.shape_cast %28 : vector<2x1x8x8x128xbf16> to vector<2x8x8x128xbf16>
    %30 = vector.shape_cast %29 : vector<2x8x8x128xbf16> to vector<128x128xbf16>
    %c0_44 = arith.constant 0 : index
    %c896 = arith.constant 896 : index
    %31 = vector.load %arg12[%c0_44, %c896] : memref<128x1152xbf16, #tpu.memory_space<vmem>>, vector<128x128xbf16>
    tpu.vector_store %arg12[%c0_44, %c896], %30 {strides = array<i32>} : memref<128x1152xbf16, #tpu.memory_space<vmem>>, vector<128x128xbf16>,
    %c0_45 = arith.constant 0 : index
    %c0_46 = arith.constant 0 : index
    %c1_47 = arith.constant 1 : index
    %c1_48 = arith.constant 1 : index
    %c0_49 = arith.constant 0 : index
    %32 = vector.load %arg1[%c0_45, %c0_46, %c1_47, %c1_48, %c0_49] : memref<2x4x9x9x128xbf16, #tpu.memory_space<vmem>>, vector<2x1x8x8x128xbf16>
    %33 = vector.shape_cast %32 : vector<2x1x8x8x128xbf16> to vector<2x8x8x128xbf16>
    %34 = vector.shape_cast %33 : vector<2x8x8x128xbf16> to vector<128x128xbf16>
    %c0_50 = arith.constant 0 : index
    %c1024 = arith.constant 1024 : index
    %35 = vector.load %arg12[%c0_50, %c1024] : memref<128x1152xbf16, #tpu.memory_space<vmem>>, vector<128x128xbf16>
    tpu.vector_store %arg12[%c0_50, %c1024], %34 {strides = array<i32>} : memref<128x1152xbf16, #tpu.memory_space<vmem>>, vector<128x128xbf16>,
    %c0_51 = arith.constant 0 : index
    %c0_52 = arith.constant 0 : index
    %36 = vector.load %arg12[%c0_51, %c0_52] : memref<128x1152xbf16, #tpu.memory_space<vmem>>, vector<128x1152xbf16>
    %c0_53 = arith.constant 0 : index
    %c0_54 = arith.constant 0 : index
    %37 = vector.load %arg2[%c0_53, %c0_54] : memref<1152x128xbf16, #tpu.memory_space<vmem>>, vector<1152x128xbf16>
    %cst = arith.constant dense<0.000000e+00> : vector<128x128xf32>
    %38 = tpu.matmul %36, %37, %cst {dimension_numbers = #tpu.dot_dimension_numbers<[1], [0], [0], [1], [0, 0, 1, 1], [], []>} : vector<128x1152xbf16>, vector<1152x128xbf16>, vector<128x128xf32> -> vector<128x128xf32>
    %c0_55 = arith.constant 0 : index
    %c0_56 = arith.constant 0 : index
    %39 = vector.load %arg3[%c0_55, %c0_56] : memref<1x128xf32, #tpu.memory_space<vmem>>, vector<1x128xf32>
    %40 = vector.broadcast %39 : vector<1x128xf32> to vector<128x128xf32>
    %41 = arith.mulf %38, %40 : vector<128x128xf32>
    %c0_57 = arith.constant 0 : index
    %c0_58 = arith.constant 0 : index
    %42 = vector.load %arg4[%c0_57, %c0_58] : memref<1x128xf32, #tpu.memory_space<vmem>>, vector<1x128xf32>
    %43 = vector.broadcast %42 : vector<1x128xf32> to vector<128x128xf32>
    %44 = arith.addf %41, %43 : vector<128x128xf32>
    %cst_59 = arith.constant 0.000000e+00 : f32
    %45 = vector.broadcast %cst_59 : f32 to vector<128x128xf32>
    %46 = arith.maximumf %44, %45 : vector<128x128xf32>
    %c0_60 = arith.constant 0 : index
    %c512_61 = arith.constant 512 : index
    %47 = vector.load %arg12[%c0_60, %c512_61] : memref<128x1152xbf16, #tpu.memory_space<vmem>>, vector<128x128xbf16>
    %c0_62 = arith.constant 0 : index
    %c0_63 = arith.constant 0 : index
    %48 = vector.load %arg8[%c0_62, %c0_63] : memref<128x128xbf16, #tpu.memory_space<vmem>>, vector<128x128xbf16>
    %cst_64 = arith.constant dense<0.000000e+00> : vector<128x128xf32>
    %49 = tpu.matmul %47, %48, %cst_64 {dimension_numbers = #tpu.dot_dimension_numbers<[1], [0], [0], [1], [0, 0, 1, 1], [], []>} : vector<128x128xbf16>, vector<128x128xbf16>, vector<128x128xf32> -> vector<128x128xf32>
    %c0_65 = arith.constant 0 : index
    %c0_66 = arith.constant 0 : index
    %50 = vector.load %arg9[%c0_65, %c0_66] : memref<1x128xf32, #tpu.memory_space<vmem>>, vector<1x128xf32>
    %51 = vector.broadcast %50 : vector<1x128xf32> to vector<128x128xf32>
    %52 = arith.mulf %49, %51 : vector<128x128xf32>
    %c0_67 = arith.constant 0 : index
    %c0_68 = arith.constant 0 : index
    %53 = vector.load %arg10[%c0_67, %c0_68] : memref<1x128xf32, #tpu.memory_space<vmem>>, vector<1x128xf32>
    %54 = vector.broadcast %53 : vector<1x128xf32> to vector<128x128xf32>
    %55 = arith.addf %52, %54 : vector<128x128xf32>
    %cst_69 = arith.constant 0.000000e+00 : bf16
    %56 = vector.broadcast %cst_69 : bf16 to vector<2x1x10x128xbf16>
    %cst_70 = arith.constant 0.000000e+00 : bf16
    %57 = vector.broadcast %cst_70 : bf16 to vector<2x8x1x128xbf16>
    %c0_71 = arith.constant 0 : index
    %c0_72 = arith.constant 0 : index
    %c0_73 = arith.constant 0 : index
    %c0_74 = arith.constant 0 : index
    %58 = vector.load %arg14[%c0_71, %c0_72, %c0_73, %c0_74] : memref<2x16x16x128xbf16, #tpu.memory_space<vmem>>, vector<2x1x10x128xbf16>
    tpu.vector_store %arg14[%c0_71, %c0_72, %c0_73, %c0_74], %56 {strides = array<i32>} : memref<2x16x16x128xbf16, #tpu.memory_space<vmem>>, vector<2x1x10x128xbf16>,
    %c0_75 = arith.constant 0 : index
    %c9 = arith.constant 9 : index
    %c0_76 = arith.constant 0 : index
    %c0_77 = arith.constant 0 : index
    %59 = vector.load %arg14[%c0_75, %c9, %c0_76, %c0_77] : memref<2x16x16x128xbf16, #tpu.memory_space<vmem>>, vector<2x1x10x128xbf16>
    tpu.vector_store %arg14[%c0_75, %c9, %c0_76, %c0_77], %56 {strides = array<i32>} : memref<2x16x16x128xbf16, #tpu.memory_space<vmem>>, vector<2x1x10x128xbf16>,
    %c0_78 = arith.constant 0 : index
    %c1_79 = arith.constant 1 : index
    %c0_80 = arith.constant 0 : index
    %c0_81 = arith.constant 0 : index
    %60 = vector.load %arg14[%c0_78, %c1_79, %c0_80, %c0_81] : memref<2x16x16x128xbf16, #tpu.memory_space<vmem>>, vector<2x8x1x128xbf16>
    tpu.vector_store %arg14[%c0_78, %c1_79, %c0_80, %c0_81], %57 {strides = array<i32>} : memref<2x16x16x128xbf16, #tpu.memory_space<vmem>>, vector<2x8x1x128xbf16>,
    %c0_82 = arith.constant 0 : index
    %c1_83 = arith.constant 1 : index
    %c9_84 = arith.constant 9 : index
    %c0_85 = arith.constant 0 : index
    %61 = vector.load %arg14[%c0_82, %c1_83, %c9_84, %c0_85] : memref<2x16x16x128xbf16, #tpu.memory_space<vmem>>, vector<2x8x1x128xbf16>
    tpu.vector_store %arg14[%c0_82, %c1_83, %c9_84, %c0_85], %57 {strides = array<i32>} : memref<2x16x16x128xbf16, #tpu.memory_space<vmem>>, vector<2x8x1x128xbf16>,
    %62 = vector.shape_cast %46 : vector<128x128xf32> to vector<2x8x8x128xf32>
    %63 = arith.truncf %62 : vector<2x8x8x128xf32> to vector<2x8x8x128xbf16>
    %c0_86 = arith.constant 0 : index
    %c1_87 = arith.constant 1 : index
    %c1_88 = arith.constant 1 : index
    %c0_89 = arith.constant 0 : index
    %64 = vector.load %arg14[%c0_86, %c1_87, %c1_88, %c0_89] : memref<2x16x16x128xbf16, #tpu.memory_space<vmem>>, vector<2x8x8x128xbf16>
    tpu.vector_store %arg14[%c0_86, %c1_87, %c1_88, %c0_89], %63 {strides = array<i32>} : memref<2x16x16x128xbf16, #tpu.memory_space<vmem>>, vector<2x8x8x128xbf16>,
    %c0_90 = arith.constant 0 : index
    %c0_91 = arith.constant 0 : index
    %c0_92 = arith.constant 0 : index
    %c0_93 = arith.constant 0 : index
    %65 = vector.load %arg14[%c0_90, %c0_91, %c0_92, %c0_93] : memref<2x16x16x128xbf16, #tpu.memory_space<vmem>>, vector<2x8x8x128xbf16>
    %66 = vector.shape_cast %65 : vector<2x8x8x128xbf16> to vector<128x128xbf16>
    %c0_94 = arith.constant 0 : index
    %c0_95 = arith.constant 0 : index
    %67 = vector.load %arg13[%c0_94, %c0_95] : memref<128x1152xbf16, #tpu.memory_space<vmem>>, vector<128x128xbf16>
    tpu.vector_store %arg13[%c0_94, %c0_95], %66 {strides = array<i32>} : memref<128x1152xbf16, #tpu.memory_space<vmem>>, vector<128x128xbf16>,
    %c0_96 = arith.constant 0 : index
    %c0_97 = arith.constant 0 : index
    %c1_98 = arith.constant 1 : index
    %c0_99 = arith.constant 0 : index
    %68 = vector.load %arg14[%c0_96, %c0_97, %c1_98, %c0_99] : memref<2x16x16x128xbf16, #tpu.memory_space<vmem>>, vector<2x8x8x128xbf16>
    %69 = vector.shape_cast %68 : vector<2x8x8x128xbf16> to vector<128x128xbf16>
    %c0_100 = arith.constant 0 : index
    %c128_101 = arith.constant 128 : index
    %70 = vector.load %arg13[%c0_100, %c128_101] : memref<128x1152xbf16, #tpu.memory_space<vmem>>, vector<128x128xbf16>
    tpu.vector_store %arg13[%c0_100, %c128_101], %69 {strides = array<i32>} : memref<128x1152xbf16, #tpu.memory_space<vmem>>, vector<128x128xbf16>,
    %c0_102 = arith.constant 0 : index
    %c0_103 = arith.constant 0 : index
    %c2_104 = arith.constant 2 : index
    %c0_105 = arith.constant 0 : index
    %71 = vector.load %arg14[%c0_102, %c0_103, %c2_104, %c0_105] : memref<2x16x16x128xbf16, #tpu.memory_space<vmem>>, vector<2x8x8x128xbf16>
    %72 = vector.shape_cast %71 : vector<2x8x8x128xbf16> to vector<128x128xbf16>
    %c0_106 = arith.constant 0 : index
    %c256_107 = arith.constant 256 : index
    %73 = vector.load %arg13[%c0_106, %c256_107] : memref<128x1152xbf16, #tpu.memory_space<vmem>>, vector<128x128xbf16>
    tpu.vector_store %arg13[%c0_106, %c256_107], %72 {strides = array<i32>} : memref<128x1152xbf16, #tpu.memory_space<vmem>>, vector<128x128xbf16>,
    %c0_108 = arith.constant 0 : index
    %c1_109 = arith.constant 1 : index
    %c0_110 = arith.constant 0 : index
    %c0_111 = arith.constant 0 : index
    %74 = vector.load %arg14[%c0_108, %c1_109, %c0_110, %c0_111] : memref<2x16x16x128xbf16, #tpu.memory_space<vmem>>, vector<2x8x8x128xbf16>
    %75 = vector.shape_cast %74 : vector<2x8x8x128xbf16> to vector<128x128xbf16>
    %c0_112 = arith.constant 0 : index
    %c384_113 = arith.constant 384 : index
    %76 = vector.load %arg13[%c0_112, %c384_113] : memref<128x1152xbf16, #tpu.memory_space<vmem>>, vector<128x128xbf16>
    tpu.vector_store %arg13[%c0_112, %c384_113], %75 {strides = array<i32>} : memref<128x1152xbf16, #tpu.memory_space<vmem>>, vector<128x128xbf16>,
    %c0_114 = arith.constant 0 : index
    %c1_115 = arith.constant 1 : index
    %c1_116 = arith.constant 1 : index
    %c0_117 = arith.constant 0 : index
    %77 = vector.load %arg14[%c0_114, %c1_115, %c1_116, %c0_117] : memref<2x16x16x128xbf16, #tpu.memory_space<vmem>>, vector<2x8x8x128xbf16>
    %78 = vector.shape_cast %77 : vector<2x8x8x128xbf16> to vector<128x128xbf16>
    %c0_118 = arith.constant 0 : index
    %c512_119 = arith.constant 512 : index
    %79 = vector.load %arg13[%c0_118, %c512_119] : memref<128x1152xbf16, #tpu.memory_space<vmem>>, vector<128x128xbf16>
    tpu.vector_store %arg13[%c0_118, %c512_119], %78 {strides = array<i32>} : memref<128x1152xbf16, #tpu.memory_space<vmem>>, vector<128x128xbf16>,
    %c0_120 = arith.constant 0 : index
    %c1_121 = arith.constant 1 : index
    %c2_122 = arith.constant 2 : index
    %c0_123 = arith.constant 0 : index
    %80 = vector.load %arg14[%c0_120, %c1_121, %c2_122, %c0_123] : memref<2x16x16x128xbf16, #tpu.memory_space<vmem>>, vector<2x8x8x128xbf16>
    %81 = vector.shape_cast %80 : vector<2x8x8x128xbf16> to vector<128x128xbf16>
    %c0_124 = arith.constant 0 : index
    %c640_125 = arith.constant 640 : index
    %82 = vector.load %arg13[%c0_124, %c640_125] : memref<128x1152xbf16, #tpu.memory_space<vmem>>, vector<128x128xbf16>
    tpu.vector_store %arg13[%c0_124, %c640_125], %81 {strides = array<i32>} : memref<128x1152xbf16, #tpu.memory_space<vmem>>, vector<128x128xbf16>,
    %c0_126 = arith.constant 0 : index
    %c2_127 = arith.constant 2 : index
    %c0_128 = arith.constant 0 : index
    %c0_129 = arith.constant 0 : index
    %83 = vector.load %arg14[%c0_126, %c2_127, %c0_128, %c0_129] : memref<2x16x16x128xbf16, #tpu.memory_space<vmem>>, vector<2x8x8x128xbf16>
    %84 = vector.shape_cast %83 : vector<2x8x8x128xbf16> to vector<128x128xbf16>
    %c0_130 = arith.constant 0 : index
    %c768_131 = arith.constant 768 : index
    %85 = vector.load %arg13[%c0_130, %c768_131] : memref<128x1152xbf16, #tpu.memory_space<vmem>>, vector<128x128xbf16>
    tpu.vector_store %arg13[%c0_130, %c768_131], %84 {strides = array<i32>} : memref<128x1152xbf16, #tpu.memory_space<vmem>>, vector<128x128xbf16>,
    %c0_132 = arith.constant 0 : index
    %c2_133 = arith.constant 2 : index
    %c1_134 = arith.constant 1 : index
    %c0_135 = arith.constant 0 : index
    %86 = vector.load %arg14[%c0_132, %c2_133, %c1_134, %c0_135] : memref<2x16x16x128xbf16, #tpu.memory_space<vmem>>, vector<2x8x8x128xbf16>
    %87 = vector.shape_cast %86 : vector<2x8x8x128xbf16> to vector<128x128xbf16>
    %c0_136 = arith.constant 0 : index
    %c896_137 = arith.constant 896 : index
    %88 = vector.load %arg13[%c0_136, %c896_137] : memref<128x1152xbf16, #tpu.memory_space<vmem>>, vector<128x128xbf16>
    tpu.vector_store %arg13[%c0_136, %c896_137], %87 {strides = array<i32>} : memref<128x1152xbf16, #tpu.memory_space<vmem>>, vector<128x128xbf16>,
    %c0_138 = arith.constant 0 : index
    %c2_139 = arith.constant 2 : index
    %c2_140 = arith.constant 2 : index
    %c0_141 = arith.constant 0 : index
    %89 = vector.load %arg14[%c0_138, %c2_139, %c2_140, %c0_141] : memref<2x16x16x128xbf16, #tpu.memory_space<vmem>>, vector<2x8x8x128xbf16>
    %90 = vector.shape_cast %89 : vector<2x8x8x128xbf16> to vector<128x128xbf16>
    %c0_142 = arith.constant 0 : index
    %c1024_143 = arith.constant 1024 : index
    %91 = vector.load %arg13[%c0_142, %c1024_143] : memref<128x1152xbf16, #tpu.memory_space<vmem>>, vector<128x128xbf16>
    tpu.vector_store %arg13[%c0_142, %c1024_143], %90 {strides = array<i32>} : memref<128x1152xbf16, #tpu.memory_space<vmem>>, vector<128x128xbf16>,
    %c0_144 = arith.constant 0 : index
    %c0_145 = arith.constant 0 : index
    %92 = vector.load %arg13[%c0_144, %c0_145] : memref<128x1152xbf16, #tpu.memory_space<vmem>>, vector<128x1152xbf16>
    %c0_146 = arith.constant 0 : index
    %c0_147 = arith.constant 0 : index
    %93 = vector.load %arg5[%c0_146, %c0_147] : memref<1152x128xbf16, #tpu.memory_space<vmem>>, vector<1152x128xbf16>
    %cst_148 = arith.constant dense<0.000000e+00> : vector<128x128xf32>
    %94 = tpu.matmul %92, %93, %cst_148 {dimension_numbers = #tpu.dot_dimension_numbers<[1], [0], [0], [1], [0, 0, 1, 1], [], []>} : vector<128x1152xbf16>, vector<1152x128xbf16>, vector<128x128xf32> -> vector<128x128xf32>
    %c0_149 = arith.constant 0 : index
    %c0_150 = arith.constant 0 : index
    %95 = vector.load %arg6[%c0_149, %c0_150] : memref<1x128xf32, #tpu.memory_space<vmem>>, vector<1x128xf32>
    %96 = vector.broadcast %95 : vector<1x128xf32> to vector<128x128xf32>
    %97 = arith.mulf %94, %96 : vector<128x128xf32>
    %c0_151 = arith.constant 0 : index
    %c0_152 = arith.constant 0 : index
    %98 = vector.load %arg7[%c0_151, %c0_152] : memref<1x128xf32, #tpu.memory_space<vmem>>, vector<1x128xf32>
    %99 = vector.broadcast %98 : vector<1x128xf32> to vector<128x128xf32>
    %100 = arith.addf %97, %99 : vector<128x128xf32>
    %cst_153 = arith.constant 8.000000e-01 : f32
    %101 = vector.broadcast %cst_153 : f32 to vector<128x128xf32>
    %102 = arith.mulf %101, %100 : vector<128x128xf32>
    %103 = arith.addf %102, %55 : vector<128x128xf32>
    %cst_154 = arith.constant 0.000000e+00 : f32
    %104 = vector.broadcast %cst_154 : f32 to vector<128x128xf32>
    %105 = arith.maximumf %103, %104 : vector<128x128xf32>
    %106 = vector.shape_cast %105 : vector<128x128xf32> to vector<2x8x8x128xf32>
    %107 = arith.truncf %106 : vector<2x8x8x128xf32> to vector<2x8x8x128xbf16>
    %c0_155 = arith.constant 0 : index
    %c0_156 = arith.constant 0 : index
    %c0_157 = arith.constant 0 : index
    %c0_158 = arith.constant 0 : index
    %108 = vector.load %arg11[%c0_155, %c0_156, %c0_157, %c0_158] : memref<2x8x8x128xbf16, #tpu.memory_space<vmem>>, vector<2x8x8x128xbf16>
    tpu.vector_store %arg11[%c0_155, %c0_156, %c0_157, %c0_158], %107 {strides = array<i32>} : memref<2x8x8x128xbf16, #tpu.memory_space<vmem>>, vector<2x8x8x128xbf16>,
    return
  }
  func.func @transform_0(%arg0: i32) -> (i32, i32, i32, i32, i32) {
    %c0_i32 = arith.constant 0 : i32
    %c0_i32_0 = arith.constant 0 : i32
    %c0_i32_1 = arith.constant 0 : i32
    %c0_i32_2 = arith.constant 0 : i32
    %c0_i32_3 = arith.constant 0 : i32
    return %arg0, %c0_i32, %c0_i32_0, %c0_i32_1, %c0_i32_2 : i32, i32, i32, i32, i32
  }
  func.func @transform_1(%arg0: i32) -> (i32, i32) {
    %c0_i32 = arith.constant 0 : i32
    %c0_i32_0 = arith.constant 0 : i32
    %c0_i32_1 = arith.constant 0 : i32
    return %c0_i32, %c0_i32_0 : i32, i32
  }
  func.func @transform_2(%arg0: i32) -> (i32, i32) {
    %c0_i32 = arith.constant 0 : i32
    %c0_i32_0 = arith.constant 0 : i32
    %c0_i32_1 = arith.constant 0 : i32
    return %c0_i32, %c0_i32_0 : i32, i32
  }
  func.func @transform_3(%arg0: i32) -> (i32, i32) {
    %c0_i32 = arith.constant 0 : i32
    %c0_i32_0 = arith.constant 0 : i32
    %c0_i32_1 = arith.constant 0 : i32
    return %c0_i32, %c0_i32_0 : i32, i32
  }
  func.func @transform_4(%arg0: i32) -> (i32, i32) {
    %c0_i32 = arith.constant 0 : i32
    %c0_i32_0 = arith.constant 0 : i32
    %c0_i32_1 = arith.constant 0 : i32
    return %c0_i32, %c0_i32_0 : i32, i32
  }
  func.func @transform_5(%arg0: i32) -> (i32, i32) {
    %c0_i32 = arith.constant 0 : i32
    %c0_i32_0 = arith.constant 0 : i32
    %c0_i32_1 = arith.constant 0 : i32
    return %c0_i32, %c0_i32_0 : i32, i32
  }
  func.func @transform_6(%arg0: i32) -> (i32, i32) {
    %c0_i32 = arith.constant 0 : i32
    %c0_i32_0 = arith.constant 0 : i32
    %c0_i32_1 = arith.constant 0 : i32
    return %c0_i32, %c0_i32_0 : i32, i32
  }
  func.func @transform_7(%arg0: i32) -> (i32, i32) {
    %c0_i32 = arith.constant 0 : i32
    %c0_i32_0 = arith.constant 0 : i32
    %c0_i32_1 = arith.constant 0 : i32
    return %c0_i32, %c0_i32_0 : i32, i32
  }
  func.func @transform_8(%arg0: i32) -> (i32, i32) {
    %c0_i32 = arith.constant 0 : i32
    %c0_i32_0 = arith.constant 0 : i32
    %c0_i32_1 = arith.constant 0 : i32
    return %c0_i32, %c0_i32_0 : i32, i32
  }
  func.func @transform_9(%arg0: i32) -> (i32, i32) {
    %c0_i32 = arith.constant 0 : i32
    %c0_i32_0 = arith.constant 0 : i32
    %c0_i32_1 = arith.constant 0 : i32
    return %c0_i32, %c0_i32_0 : i32, i32
  }
  func.func @transform_10(%arg0: i32) -> (i32, i32, i32, i32) {
    %c0_i32 = arith.constant 0 : i32
    %c0_i32_0 = arith.constant 0 : i32
    %c0_i32_1 = arith.constant 0 : i32
    %c0_i32_2 = arith.constant 0 : i32
    return %arg0, %c0_i32, %c0_i32_0, %c0_i32_1 : i32, i32, i32, i32
  }
}

</mosaic_0001>

<bundles_post_ra>
// kernel: shakedrop_res_unit.1
= control target key start
LH: loop header
LB: loop body
LE: loop exit
PB: predicated region body
PF: predicated region fallthrough
CT: control target
= control target key end

     0   :  { %vm133_vm0 = vsmask.f32 3328  ;;  %vm134_vm1 = vsmask.f32 7440  ;;  %vm2848_vm3 = vcmask 1040384   ;;  %vm3607_vm8 = vcmask 1042432   ;;  %s10295_s1 = inlined_call_operand.vmem [shape: bf16[1152,128], index: 1, kind: input, shape index: {}]   ;;  %s10296_s0 = inlined_call_operand.vmem [shape: bf16[2,4,9,9,128], index: 0, kind: input, shape index: {}]   ;;  %s10297_s7 = inlined_call_operand.vmem [shape: bf16[128,128], index: 7, kind: input, shape index: {}]   ;;  %s10298_s2 = inlined_call_operand.vmem [shape: f32[1,128], index: 2, kind: input, shape index: {}]   ;;  %s10299_s3 = inlined_call_operand.vmem [shape: f32[1,128], index: 3, kind: input, shape index: {}]   ;;  %s10300_s4 = inlined_call_operand.vmem [shape: bf16[1152,128], index: 4, kind: input, shape index: {}]   ;;  %s10301_s8 = inlined_call_operand.vmem [shape: f32[1,128], index: 8, kind: input, shape index: {}]   ;;  %s10302_s9 = inlined_call_operand.vmem [shape: f32[1,128], index: 9, kind: input, shape index: {}]   ;;  %s10303_s5 = inlined_call_operand.vmem [shape: f32[1,128], index: 5, kind: input, shape index: {}]   ;;  %s10304_s6 = inlined_call_operand.vmem [shape: f32[1,128], index: 6, kind: input, shape index: {}]   ;;  %s10305_s10 = inlined_call_operand.vmem [shape: bf16[2,8,8,128], index: 10, kind: output, shape index: {}]  }
   0x1   :  { %v7743_v0 = vld [vmem:[%s10295_s1 + $0x38] sm:$0xff]  ;;  %v7742_v3 = vld [vmem:[%s10295_s1 + $0x30] sm:$0xff]  ;;  %v7741_v6 = vld [vmem:[%s10295_s1 + $0x28] sm:$0xff]  ;;  %vm2849_vm4 = vsmask.f32 256  ;;  %vm3608_vm9 = vcmask 1046532  }
   0x2   :  { %v8110_v1 = vld [vmem:[%s10295_s1 + $0xb8] sm:$0xff]  ;;  %2124 = vmatpush.bf16.msra.mxu0 %v7743_v0  ;;  %8015 = vmatpush.bf16.msra.mxu3 %v7743_v0  ;;  %v8125_v4 = vld [vmem:[%s10295_s1 + $0xb0] sm:$0xff]  ;;  %v8140_v7 = vld [vmem:[%s10295_s1 + $0xa8] sm:$0xff]  ;;  %vm2899_vm5 = vsmask.f32 7938  ;;  %vm3125_vm11 = vcmask 1043456  }
   0x3   :  { %v8115_v2 = vld [vmem:[%s10295_s1 + $0x78] sm:$0xff]  ;;  %8031 = vmatpush.bf16.msra.mxu2 %v8110_v1  ;;  %v8130_v5 = vld [vmem:[%s10295_s1 + $0x70] sm:$0xff]  ;;  %v8145_v8 = vld [vmem:[%s10295_s1 + $0x68] sm:$0xff] }
   0x4   :  { %8023 = vmatpush.bf16.msra.mxu1 %v8115_v2  ;;  %v36_v9 = vld [vmem:[%s10296_s0] sm:$0xf]  ;;  %v37_v11 = vld [vmem:[%s10296_s0 + $0x8] sm:$0xf]  ;;  %v110_v17 = vld [vmem:[%s10296_s0 + $0x24] sm:$0x1] }
   0x5   :  { %v7740_v10 = vld [vmem:[%s10295_s1 + $0x20] sm:$0xff]  ;;  %52 = vst [vmem:[#allocation2] sm:$0xf] %v36_v9  ;;  %v41_v15 = vld [vmem:[%s10296_s0 + $0x28] sm:$0xf]  ;;  %v202_v22 = vshll.u32 %v110_v17, 16  ;;  %vm8215_vm2 = vmor %vm133_vm0, %vm134_vm1 }
   0x6   :  { %2125 = vmatpush.bf16.msra.mxu0 %v7742_v3  ;;  %8016 = vmatpush.bf16.msra.mxu3 %v7742_v3  ;;  %v40_v12 = vld [vmem:[%s10296_s0 + $0x20] sm:$0xf]  ;;  %53 = vst [vmem:[#allocation2 + $0x24] sm:$0xf] %v37_v11  ;;  %v111_v18 = vld [vmem:[%s10296_s0 + $0x28] sm:$0xf]  ;;  %vm9241_vm6 = vmand %vm2848_vm3, %vm2849_vm4 }
   0x7   :  { %8032 = vmatpush.bf16.msra.mxu2 %v8125_v4  ;;  %v8162_v13 = vld [vmem:[%s10295_s1 + $0xa0] sm:$0xff]  ;;  %56 = vst [vmem:[#allocation2 + $0x90] sm:$0xf] %v40_v12  ;;  %v112_v19 = vld [vmem:[%s10296_s0 + $0x2c] sm:$0x1]  ;;  %v207_v23 = vshrl.u32 %v111_v18, 16  ;;  %vm9248_vm7 = vmand %vm2848_vm3, %vm2899_vm5 }
   0x8   :  { %8024 = vmatpush.bf16.msra.mxu1 %v8130_v5  ;;  %v8167_v14 = vld [vmem:[%s10295_s1 + $0x60] sm:$0xff]  ;;  %57 = vst [vmem:[#allocation2 + $0xb4] sm:$0xf] %v41_v15  ;;  %v6260_v24 = vld [vmem:[%s10296_s0 + $0x68] sm:$0xf]  ;;  %v210_v25 = vshll.u32 %v111_v18, 16  ;;  %vm9349_vm10 = vmor %vm3607_vm8, %vm3608_vm9 }
   0x9   :  { %v109_v16 = vld [vmem:[%s10296_s0 + $0x20] sm:$0xf]  ;;  %v216_v26 = vshll.u32 %v112_v19, 16  ;;  %v6261_v27 = vld [vmem:[%s10296_s0 + $0x70] sm:$0xf]  ;;  %v7739_v28 = vld [vmem:[%s10295_s1 + $0x18] sm:$0xff] }
   0xa   :  { %2126 = vmatpush.bf16.msra.mxu0 %v7741_v6  ;;  %8017 = vmatpush.bf16.msra.mxu3 %v7741_v6  ;;  %v193_v20 = vshrl.u32 %v109_v16, 16  ;;  %v196_v21 = vshll.u32 %v109_v16, 16  ;;  %89 = vst [vmem:[#allocation2 + $0x94] sm:$0xf] %v6260_v24  ;;  %v209_v31 = vrot.slane %v207_v23, 4  ;;  %v8200_v32 = vld [vmem:[%s10295_s1 + $0x98] sm:$0xff]  ;;  %vm9412_vm12 = vmand %vm3125_vm11, %vm2899_vm5 }
   0xb   :  { %8033 = vmatpush.bf16.msra.mxu2 %v8140_v7  ;;  %90 = vst [vmem:[#allocation2 + $0xb8] sm:$0xf] %v6261_v27  ;;  %v8205_v33 = vld [vmem:[%s10295_s1 + $0x58] sm:$0xff]  ;;  %v212_v34 = vrot.slane %v210_v25, 5  ;;  %v204_v36 = vrot.slane %v202_v22, 5  ;;  %v218_v41 = vrot.slane %v216_v26, 5 }
   0xc   :  { %8025 = vmatpush.bf16.msra.mxu1 %v8145_v8  ;;  %v195_v29 = vrot.slane %v193_v20, 4  ;;  %v198_v30 = vrot.slane %v196_v21, 5  ;;  %v38_v37 = vld [vmem:[%s10296_s0 + $0x10] sm:$0xf]  ;;  %v39_v38 = vld [vmem:[%s10296_s0 + $0x18] sm:$0xf] }
   0xd   :  { %v213_v40 = vor.u32 %v212_v34, %v209_v31  ;;  %54 = vst [vmem:[#allocation2 + $0x48] sm:$0xf] %v38_v37  ;;  %v42_v42 = vld [vmem:[%s10296_s0 + $0x30] sm:$0xf]  ;;  %v43_v48 = vld [vmem:[%s10296_s0 + $0x38] sm:$0xf] }
   0xe   :  { %2127 = vmatpush.bf16.msra.mxu0 %v7740_v10  ;;  %8018 = vmatpush.bf16.msra.mxu3 %v7740_v10  ;;  %v199_v35 = vor.u32 %v198_v30, %v195_v29  ;;  %v7738_v43 = vld [vmem:[%s10295_s1 + $0x10] sm:$0xff]  ;;  %55 = vst [vmem:[#allocation2 + $0x6c] sm:$0xf] %v39_v38  ;;  %v7737_v49 = vld [vmem:[%s10295_s1 + $0x8] sm:$0xff]  ;;  %v115_v56 = vld [vmem:[%s10296_s0 + $0x38] sm:$0xf] }
   0xf   :  { %8034 = vmatpush.bf16.msra.mxu2 %v8162_v13  ;;  %v8228_v44 = vld [vmem:[%s10295_s1 + $0x90] sm:$0xff]  ;;  %v214_v47 = vrot.slane %v213_v40, 4  ;;  %58 = vst [vmem:[#allocation2 + $0xd8] sm:$0xf] %v42_v42  ;;  %v8251_v52 = vld [vmem:[%s10295_s1 + $0x88] sm:$0xff]  ;;  %v235_v61 = vshrl.u32 %v115_v56, 16 }
  0x10   :  { %8026 = vmatpush.bf16.msra.mxu1 %v8167_v14  ;;  %v200_v45 = vrot.slane %v199_v35, 4  ;;  %v8235_v46 = vld [vmem:[%s10295_s1 + $0x50] sm:$0xff]  ;;  %59 = vst [vmem:[#allocation2 + $0xfc] sm:$0xf] %v43_v48  ;;  %v8256_v53 = vld [vmem:[%s10295_s1 + $0x48] sm:$0xff]  ;;  %v7736_v63 = vld [vmem:[%s10295_s1] sm:$0xff] }
  0x11   :  { %v113_v51 = vld [vmem:[%s10296_s0 + $0x30] sm:$0xf]  ;;  %v219_v54 = vsel %vm8215_vm2, %v214_v47, %v218_v41  ;;  %v114_v55 = vld [vmem:[%s10296_s0 + $0x34] sm:$0x1]  ;;  %v116_v57 = vld [vmem:[%s10296_s0 + $0x3c] sm:$0x1] }
  0x12   :  { %2128 = vmatpush.bf16.msra.mxu0 %v7739_v28  ;;  %8019 = vmatpush.bf16.msra.mxu3 %v7739_v28  ;;  %v205_v50 = vsel %vm8215_vm2, %v200_v45, %v204_v36  ;;  %381 = vst [vmem:[#allocation2 + $0xbc] sm:$0xf] %v219_v54  ;;  %v221_v58 = vshrl.u32 %v113_v51, 16  ;;  %v224_v59 = vshll.u32 %v113_v51, 16  ;;  %v230_v60 = vshll.u32 %v114_v55, 16  ;;  %v8283_v12 = vld [vmem:[%s10295_s1 + $0x80] sm:$0xff] }
  0x13   :  { %8035 = vmatpush.bf16.msra.mxu2 %v8200_v32  ;;  %380 = vst [vmem:[#allocation2 + $0x98] sm:$0xf] %v205_v50  ;;  %v6262_v62 = vld [vmem:[%s10296_s0 + $0x78] sm:$0xf]  ;;  %v6402_v0 = vld [vmem:[#allocation2] sm:$0xf] }
  0x14   :  { %8027 = vmatpush.bf16.msra.mxu1 %v8205_v33  ;;  %v7668_v3 = vld [vmem:[#allocation2 + $0x20] sm:$0xf0]  ;;  %v6474_v6 = vld [vmem:[#allocation2 + $0x90] sm:$0xf]  ;;  %v238_v9 = vshll.u32 %v115_v56, 16  ;;  %v244_v10 = vshll.u32 %v116_v57, 16 }
  0x15   :  { %v6263_v11 = vld [vmem:[%s10296_s0 + $0x80] sm:$0xf]  ;;  %v7686_v15 = vld [vmem:[#allocation2 + $0xb0] sm:$0xf0]  ;;  %v7767_v16 = vld [vmem:[%s10295_s1 + $0xf8] sm:$0xff]  ;;  %v223_v17 = vrot.slane %v221_v58, 4  ;;  %v6403_v31 = vor.u32 %v7668_v3, %v6402_v0 }
  0x16   :  { %2129 = vmatpush.bf16.msra.mxu0 %v7738_v43  ;;  %8020 = vmatpush.bf16.msra.mxu3 %v7738_v43  ;;  %v226_v18 = vrot.slane %v224_v59, 5  ;;  %v237_v19 = vrot.slane %v235_v61, 4  ;;  %v8291_v20 = vld [vmem:[%s10295_s1 + $0x40] sm:$0xff]  ;;  %v7682_v21 = vld [vmem:[#allocation2 + $0x94] sm:$0xf]  ;;  %v240_v22 = vrot.slane %v238_v9, 5  ;;  %v6475_v34 = vor.u32 %v7686_v15, %v6474_v6 }
  0x17   :  { %8036 = vmatpush.bf16.msra.mxu2 %v8228_v44  ;;  %91 = vst [vmem:[#allocation2 + $0xdc] sm:$0xf] %v6262_v62  ;;  %v6476_v23 = vld [vmem:[#allocation2 + $0xb4] sm:$0xf0]  ;;  %v232_v25 = vrot.slane %v230_v60, 5  ;;  %v246_v26 = vrot.slane %v244_v10, 5 }
  0x18   :  { %8028 = vmatpush.bf16.msra.mxu1 %v8235_v46  ;;  %v227_v24 = vor.u32 %v226_v18, %v223_v17  ;;  %92 = vst [vmem:[#allocation2 + $0x100] sm:$0xf] %v6263_v11  ;;  %v241_v28 = vor.u32 %v240_v22, %v237_v19  ;;  %v44_v29 = vld [vmem:[%s10296_s0 + $0x120] sm:$0xf]  ;;  %v45_v30 = vld [vmem:[%s10296_s0 + $0x128] sm:$0xf]  ;;  %v6479_v42 = vor.u32 %v7682_v21, %v6476_v23 }
  0x19   :  { %v7687_v35 = vld [vmem:[#allocation2 + $0xb8] sm:$0xf0]  ;;  %60 = vst [vmem:[#allocation2 + $0x120] sm:$0xf] %v44_v29  ;;  %v7766_v38 = vld [vmem:[%s10295_s1 + $0xf0] sm:$0xff]  ;;  %v7765_v55 = vld [vmem:[%s10295_s1 + $0xe8] sm:$0xff] }
  0x1a   :  { %2130 = vmatpush.bf16.msra.mxu0 %v7737_v49  ;;  %8021 = vmatpush.bf16.msra.mxu3 %v7737_v49  ;;  %v6482_v27 = vld [vmem:[#allocation2 + $0x98] sm:$0xf]  ;;  %v228_v36 = vrot.slane %v227_v24, 4  ;;  %v242_v40 = vrot.slane %v241_v28, 4  ;;  %61 = vst [vmem:[#allocation2 + $0x144] sm:$0xf] %v45_v30 }
  0x1b   :  { %8037 = vmatpush.bf16.msra.mxu2 %v8251_v52  ;;  %v6483_v37 = vor.u32 %v7687_v35, %v6482_v27  ;;  %v6256_v41 = vld [vmem:[%s10296_s0 + $0x48] sm:$0xf]  ;;  %v6257_v45 = vld [vmem:[%s10296_s0 + $0x50] sm:$0xf]  ;;  %v117_v47 = vld [vmem:[%s10296_s0 + $0x120] sm:$0xf] }
  0x1c   :  { %8029 = vmatpush.bf16.msra.mxu1 %v8256_v53  ;;  %v233_v43 = vsel %vm8215_vm2, %v228_v36, %v232_v25  ;;  %85 = vst [vmem:[#allocation2 + $0x4] sm:$0xf] %v6256_v41  ;;  %v247_v48 = vsel %vm8215_vm2, %v242_v40, %v246_v26  ;;  %v118_v49 = vld [vmem:[%s10296_s0 + $0x124] sm:$0x1]  ;;  %v119_v50 = vld [vmem:[%s10296_s0 + $0x128] sm:$0xf] }
  0x1d   :  { %382 = vst [vmem:[#allocation2 + $0xe0] sm:$0xf] %v233_v43  ;;  %v249_v51 = vshrl.u32 %v117_v47, 16  ;;  %v252_v54 = vshll.u32 %v117_v47, 16  ;;  %v258_v56 = vshll.u32 %v118_v49, 16  ;;  %v263_v57 = vshrl.u32 %v119_v50, 16 }
  0x1e   :  { %2131 = vmatpush.bf16.msra.mxu0 %v7736_v63  ;;  %8022 = vmatpush.bf16.msra.mxu3 %v7736_v63  ;;  %383 = vst [vmem:[#allocation2 + $0x104] sm:$0xf] %v247_v48  ;;  %v266_v58 = vshll.u32 %v119_v50, 16  ;;  %v6264_v62 = vld [vmem:[%s10296_s0 + $0x168] sm:$0xf]  ;;  %v7764_v17 = vld [vmem:[%s10295_s1 + $0xe0] sm:$0xff] }
  0x1f   :  { %8038 = vmatpush.bf16.msra.mxu2 %v8283_v12  ;;  %86 = vst [vmem:[#allocation2 + $0x28] sm:$0xf] %v6257_v45  ;;  %v251_v59 = vrot.slane %v249_v51, 4  ;;  %v254_v60 = vrot.slane %v252_v54, 5  ;;  %v265_v63 = vrot.slane %v263_v57, 4  ;;  %v260_v6 = vrot.slane %v258_v56, 5 }
  0x20   :  { %8030 = vmatpush.bf16.msra.mxu1 %v8291_v20  ;;  %v268_v0 = vrot.slane %v266_v58, 5  ;;  %v6265_v9 = vld [vmem:[%s10296_s0 + $0x170] sm:$0xf]  ;;  %v6438_v10 = vld [vmem:[#allocation2 + $0x48] sm:$0xf] }
  0x21   :  { %2132 = vmatmul.bf16.vlgmr.msra.gmra.mxu0 %v6403_v31  ;;  %2142 = vmatmul.bf16.vlgmr.msra.gmra.mxu3 %v6475_v34  ;;  %v255_v3 = vor.u32 %v254_v60, %v251_v59  ;;  %v7677_v11 = vld [vmem:[#allocation2 + $0x68] sm:$0xf0]  ;;  %v6510_v15 = vld [vmem:[#allocation2 + $0xd8] sm:$0xf]  ;;  %93 = vst [vmem:[#allocation2 + $0x124] sm:$0xf] %v6264_v62 }
  0x22   :  { %2271 = vmatpush.bf16.msrb.mxu3 %v7767_v16  ;;  %2173 = vmatpush.bf16.msrb.mxu0 %v8115_v2  ;;  %v120_v2 = vld [vmem:[%s10296_s0 + $0x12c] sm:$0x1]  ;;  %v46_v18 = vld [vmem:[%s10296_s0 + $0x130] sm:$0xf]  ;;  %v7695_v19 = vld [vmem:[#allocation2 + $0xf8] sm:$0xf0]  ;;  %v6439_v35 = vor.u32 %v7677_v11, %v6438_v10 }
  0x23   :  { %2240 = vmatmul.bf16.vlgmr.msra.gmra.mxu2 %v6483_v37  ;;  %2191 = vmatmul.bf16.vlgmr.msra.gmra.mxu1 %v6479_v42  ;;  %v272_v61 = vshll.u32 %v120_v2, 16  ;;  %v256_v21 = vrot.slane %v255_v3, 4  ;;  %94 = vst [vmem:[#allocation2 + $0x148] sm:$0xf] %v6265_v9  ;;  %v47_v25 = vld [vmem:[%s10296_s0 + $0x138] sm:$0xf]  ;;  %v6511_v36 = vor.u32 %v7695_v19, %v6510_v15 }
  0x24   :  { %v6518_v22 = vld [vmem:[#allocation2 + $0xe0] sm:$0xf]  ;;  %v7691_v26 = vld [vmem:[#allocation2 + $0xdc] sm:$0xf]  ;;  %62 = vst [vmem:[#allocation2 + $0x168] sm:$0xf] %v46_v18 }
  0x25   :  { %v274_v16 = vrot.slane %v272_v61, 5  ;;  %v7696_v23 = vld [vmem:[#allocation2 + $0x100] sm:$0xf0]  ;;  %v6512_v27 = vld [vmem:[#allocation2 + $0xfc] sm:$0xf0]  ;;  %v261_v28 = vsel %vm8215_vm2, %v256_v21, %v260_v6 }
  0x26   :  { %2272 = vmatpush.bf16.msrb.mxu3 %v7766_v38  ;;  %2174 = vmatpush.bf16.msrb.mxu0 %v8130_v5  ;;  %v269_v5 = vor.u32 %v268_v0, %v265_v63  ;;  %v6259_v29 = vld [vmem:[%s10296_s0 + $0x60] sm:$0xf]  ;;  %384 = vst [vmem:[#allocation2 + $0x128] sm:$0xf] %v261_v28  ;;  %v121_v31 = vld [vmem:[%s10296_s0 + $0x130] sm:$0xf]  ;;  %v6519_v45 = vor.u32 %v7696_v23, %v6518_v22 }
  0x27   :  { %v122_v34 = vld [vmem:[%s10296_s0 + $0x134] sm:$0x1]  ;;  %v123_v37 = vld [vmem:[%s10296_s0 + $0x138] sm:$0xf]  ;;  %v124_v38 = vld [vmem:[%s10296_s0 + $0x13c] sm:$0x1]  ;;  %v6515_v48 = vor.u32 %v7691_v26, %v6512_v27 }
  0x28   :  { %v270_v24 = vrot.slane %v269_v5, 4  ;;  %63 = vst [vmem:[#allocation2 + $0x18c] sm:$0xf] %v47_v25  ;;  %v277_v40 = vshrl.u32 %v121_v31, 16  ;;  %v280_v41 = vshll.u32 %v121_v31, 16  ;;  %v286_v42 = vshll.u32 %v122_v34, 16 }
  0x29   :  { %v291_v43 = vshrl.u32 %v123_v37, 16  ;;  %v294_v47 = vshll.u32 %v123_v37, 16  ;;  %88 = vst [vmem:[#allocation2 + $0x70] sm:$0xf] %v6259_v29  ;;  %v6266_v54 = vld [vmem:[%s10296_s0 + $0x178] sm:$0xf] }
  0x2a   :  { %2273 = vmatpush.bf16.msrb.mxu3 %v7765_v55  ;;  %2175 = vmatpush.bf16.msrb.mxu0 %v8145_v8  ;;  %v6258_v8 = vld [vmem:[%s10296_s0 + $0x58] sm:$0xf]  ;;  %v275_v30 = vsel %vm8215_vm2, %v270_v24, %v274_v16  ;;  %v279_v49 = vrot.slane %v277_v40, 4  ;;  %v282_v50 = vrot.slane %v280_v41, 5  ;;  %v288_v57 = vrot.slane %v286_v42, 5  ;;  %v7762_v16 = vld [vmem:[%s10295_s1 + $0xd0] sm:$0xff] }
  0x2b   :  { %385 = vst [vmem:[#allocation2 + $0x14c] sm:$0xf] %v275_v30  ;;  %v293_v2 = vrot.slane %v291_v43, 4  ;;  %v296_v51 = vrot.slane %v294_v47, 5  ;;  %v7763_v55 = vld [vmem:[%s10295_s1 + $0xd8] sm:$0xff] }
  0x2c   :  { %87 = vst [vmem:[#allocation2 + $0x4c] sm:$0xf] %v6258_v8  ;;  %v283_v56 = vor.u32 %v282_v50, %v279_v49  ;;  %v6267_v58 = vld [vmem:[%s10296_s0 + $0x180] sm:$0xf]  ;;  %v102_v6 = vld [vmem:[%s10296_s0 + $0x4] sm:$0x1] }
  0x2d   :  { %95 = vst [vmem:[#allocation2 + $0x16c] sm:$0xf] %v6266_v54  ;;  %v101_v60 = vld [vmem:[%s10296_s0] sm:$0xf]  ;;  %v103_v9 = vld [vmem:[%s10296_s0 + $0x8] sm:$0xf] }
  0x2e   :  { %2274 = vmatpush.bf16.msrb.mxu3 %v7764_v17  ;;  %2176 = vmatpush.bf16.msrb.mxu0 %v8167_v14  ;;  %v300_v14 = vshll.u32 %v124_v38, 16  ;;  %v284_v61 = vrot.slane %v283_v56, 4  ;;  %96 = vst [vmem:[#allocation2 + $0x190] sm:$0xf] %v6267_v58  ;;  %v137_v62 = vshrl.u32 %v101_v60, 16  ;;  %v140_v0 = vshll.u32 %v101_v60, 16 }
  0x2f   :  { %v6546_v10 = vld [vmem:[#allocation2 + $0x120] sm:$0xf]  ;;  %v7704_v11 = vld [vmem:[#allocation2 + $0x140] sm:$0xf0]  ;;  %v6404_v5 = vld [vmem:[#allocation2 + $0x24] sm:$0xf0] }
  0x30   :  { %v302_v59 = vrot.slane %v300_v14, 5  ;;  %v289_v3 = vsel %vm8215_vm2, %v284_v61, %v288_v57  ;;  %v7664_v15 = vld [vmem:[#allocation2 + $0x4] sm:$0xf]  ;;  %v104_v17 = vld [vmem:[%s10296_s0 + $0xc] sm:$0x1]  ;;  %v139_v18 = vrot.slane %v137_v62, 4 }
  0x31   :  { %2137 = vmatmul.bf16.gmra.mxu0 %v6439_v35  ;;  %2147 = vmatmul.bf16.gmra.mxu3 %v6511_v36  ;;  %386 = vst [vmem:[#allocation2 + $0x170] sm:$0xf] %v289_v3  ;;  %v6554_v19 = vld [vmem:[#allocation2 + $0x128] sm:$0xf]  ;;  %v48_v21 = vld [vmem:[%s10296_s0 + $0x140] sm:$0xf]  ;;  %v6547_v36 = vor.u32 %v7704_v11, %v6546_v10  ;;  %v6407_v37 = vor.u32 %v7664_v15, %v6404_v5 }
  0x32   :  { %2177 = vmatpush.bf16.msrb.mxu0 %v8205_v33  ;;  %v297_v33 = vor.u32 %v296_v51, %v293_v2  ;;  %2275 = vmatpush.bf16.msrb.mxu3 %v7763_v55  ;;  %v49_v22 = vld [vmem:[%s10296_s0 + $0x148] sm:$0xf]  ;;  %64 = vst [vmem:[#allocation2 + $0x1b0] sm:$0xf] %v48_v21  ;;  %v142_v23 = vrot.slane %v140_v0, 5  ;;  %v146_v24 = vshll.u32 %v102_v6, 16 }
  0x33   :  { %2245 = vmatmul.bf16.gmra.mxu2 %v6519_v45  ;;  %2196 = vmatmul.bf16.gmra.mxu1 %v6515_v48  ;;  %v151_v25 = vshrl.u32 %v103_v9, 16  ;;  %v154_v26 = vshll.u32 %v103_v9, 16  ;;  %v7705_v27 = vld [vmem:[#allocation2 + $0x148] sm:$0xf0]  ;;  %65 = vst [vmem:[#allocation2 + $0x1d4] sm:$0xf] %v49_v22 }
  0x34   :  { %v298_v63 = vrot.slane %v297_v33, 4  ;;  %v160_v28 = vshll.u32 %v104_v17, 16  ;;  %v7700_v8 = vld [vmem:[#allocation2 + $0x124] sm:$0xf]  ;;  %v6548_v29 = vld [vmem:[#allocation2 + $0x144] sm:$0xf0]  ;;  %v143_v30 = vor.u32 %v142_v23, %v139_v18  ;;  %v6555_v41 = vor.u32 %v7705_v27, %v6554_v19 }
  0x35   :  { %v148_v31 = vrot.slane %v146_v24, 5  ;;  %v153_v34 = vrot.slane %v151_v25, 4  ;;  %v156_v35 = vrot.slane %v154_v26, 5  ;;  %v126_v40 = vld [vmem:[%s10296_s0 + $0x144] sm:$0x1]  ;;  %v6551_v56 = vor.u32 %v7700_v8, %v6548_v29  ;;  %v7791_v9 = vld [vmem:[%s10295_s1 + $0x1b8] sm:$0xff] }
  0x36   :  { %2178 = vmatpush.bf16.msrb.mxu0 %v8235_v46  ;;  %v303_v46 = vsel %vm8215_vm2, %v298_v63, %v302_v59  ;;  %2276 = vmatpush.bf16.msrb.mxu3 %v7762_v16  ;;  %v162_v38 = vrot.slane %v160_v28, 5  ;;  %v144_v42 = vrot.slane %v143_v30, 4  ;;  %v127_v45 = vld [vmem:[%s10296_s0 + $0x148] sm:$0xf]  ;;  %v128_v47 = vld [vmem:[%s10296_s0 + $0x14c] sm:$0x1] }
  0x37   :  { %387 = vst [vmem:[#allocation2 + $0x194] sm:$0xf] %v303_v46  ;;  %v157_v43 = vor.u32 %v156_v35, %v153_v34  ;;  %v314_v49 = vshll.u32 %v126_v40, 16  ;;  %v319_v50 = vshrl.u32 %v127_v45, 16  ;;  %v322_v2 = vshll.u32 %v127_v45, 16  ;;  %v7761_v10 = vld [vmem:[%s10295_s1 + $0xc8] sm:$0xff]  ;;  %2418 = vmatpush.bf16.msrb.mxu2 %v7791_v9 }
  0x38   :  { %v328_v55 = vshll.u32 %v128_v47, 16  ;;  %v6268_v61 = vld [vmem:[%s10296_s0 + $0x188] sm:$0xf]  ;;  %v6269_v62 = vld [vmem:[%s10296_s0 + $0x190] sm:$0xf] }
  0x39   :  { %v158_v51 = vrot.slane %v157_v43, 4  ;;  %v316_v33 = vrot.slane %v314_v49, 5  ;;  %v321_v59 = vrot.slane %v319_v50, 4  ;;  %v324_v60 = vrot.slane %v322_v2, 5  ;;  %97 = vst [vmem:[#allocation2 + $0x1b4] sm:$0xf] %v6268_v61 }
  0x3a   :  { %2179 = vmatpush.bf16.msrb.mxu0 %v8256_v53  ;;  %v125_v53 = vld [vmem:[%s10296_s0 + $0x140] sm:$0xf]  ;;  %v330_v0 = vrot.slane %v328_v55, 5  ;;  %v105_v3 = vld [vmem:[%s10296_s0 + $0x10] sm:$0xf]  ;;  %2277 = vmatpush.bf16.msrb.mxu3 %v7761_v10 }
  0x3b   :  { %v305_v14 = vshrl.u32 %v125_v53, 16  ;;  %v308_v48 = vshll.u32 %v125_v53, 16  ;;  %v163_v58 = vsel %vm8215_vm2, %v158_v51, %v162_v38  ;;  %v325_v63 = vor.u32 %v324_v60, %v321_v59  ;;  %98 = vst [vmem:[#allocation2 + $0x1d8] sm:$0xf] %v6269_v62  ;;  %v8446_v46 = vld [vmem:[#allocation2 + $0x168] sm:$0xf] }
  0x3c   :  { %377 = vst [vmem:[#allocation2 + $0x2c] sm:$0xf] %v163_v58  ;;  %v165_v15 = vshrl.u32 %v105_v3, 16  ;;  %v168_v5 = vshll.u32 %v105_v3, 16  ;;  %v8448_v16 = vld [vmem:[#allocation2 + $0x188] sm:$0xf0] }
  0x3d   :  { %v307_v54 = vrot.slane %v305_v14, 4  ;;  %v310_v57 = vrot.slane %v308_v48, 5  ;;  %v326_v11 = vrot.slane %v325_v63, 4  ;;  %v7790_v18 = vld [vmem:[%s10295_s1 + $0x1b0] sm:$0xff]  ;;  %v107_v21 = vld [vmem:[%s10296_s0 + $0x18] sm:$0xf] }
  0x3e   :  { %2180 = vmatpush.bf16.msrb.mxu0 %v8291_v20  ;;  %v149_v20 = vsel %vm8215_vm2, %v144_v42, %v148_v31  ;;  %v106_v19 = vld [vmem:[%s10296_s0 + $0x14] sm:$0x1]  ;;  %v7673_v22 = vld [vmem:[#allocation2 + $0x4c] sm:$0xf]  ;;  %v6440_v23 = vld [vmem:[#allocation2 + $0x6c] sm:$0xf0]  ;;  %2419 = vmatpush.bf16.msrb.mxu2 %v7790_v18 }
  0x3f   :  { %376 = vst [vmem:[#allocation2 + $0x8] sm:$0xf] %v149_v20  ;;  %v6590_v24 = vld [vmem:[#allocation2 + $0x170] sm:$0xf]  ;;  %v331_v25 = vsel %vm8215_vm2, %v326_v11, %v330_v0  ;;  %v108_v27 = vld [vmem:[%s10296_s0 + $0x1c] sm:$0x1]  ;;  %v6443_v43 = vor.u32 %v7673_v22, %v6440_v23 }
  0x40   :  { %v50_v26 = vld [vmem:[%s10296_s0 + $0x150] sm:$0xf]  ;;  %389 = vst [vmem:[#allocation2 + $0x1dc] sm:$0xf] %v331_v25  ;;  %v51_v28 = vld [vmem:[%s10296_s0 + $0x158] sm:$0xf] }
  0x41   :  { %2152 = vmatmul.bf16.gmra.mxu3 %v6547_v36  ;;  %2181 = vmatmul.bf16.vlgmr.msrb.gmra.mxu0 %v6407_v37  ;;  %v7714_v8 = vld [vmem:[#allocation2 + $0x190] sm:$0xf0]  ;;  %66 = vst [vmem:[#allocation2 + $0x1f8] sm:$0xf] %v50_v26  ;;  %v167_v29 = vrot.slane %v165_v15, 4  ;;  %v170_v30 = vrot.slane %v168_v5, 5  ;;  %v6583_v36 = vor.u32 %v8448_v16, %v8446_v46 }
  0x42   :  { %2222 = vmatpush.bf16.msra.mxu0 %v8110_v1  ;;  %v311_v1 = vor.u32 %v310_v57, %v307_v54  ;;  %v7789_v31 = vld [vmem:[%s10295_s1 + $0x1a8] sm:$0xff]  ;;  %67 = vst [vmem:[#allocation2 + $0x21c] sm:$0xf] %v51_v28  ;;  %v174_v34 = vshll.u32 %v106_v19, 16  ;;  %v179_v35 = vshrl.u32 %v107_v21, 16  ;;  %v182_v40 = vshll.u32 %v107_v21, 16 }
  0x43   :  { %2250 = vmatmul.bf16.gmra.mxu2 %v6555_v41  ;;  %2201 = vmatmul.bf16.gmra.mxu1 %v6551_v56  ;;  %v7709_v37 = vld [vmem:[#allocation2 + $0x16c] sm:$0xf]  ;;  %v6584_v38 = vld [vmem:[#allocation2 + $0x18c] sm:$0xf0]  ;;  %v171_v53 = vor.u32 %v170_v30, %v167_v29  ;;  %v188_v41 = vshll.u32 %v108_v27, 16  ;;  %v6591_v45 = vor.u32 %v7714_v8, %v6590_v24  ;;  %v7788_v5 = vld [vmem:[%s10295_s1 + $0x1a0] sm:$0xff] }
  0x44   :  { %v312_v6 = vrot.slane %v311_v1, 4  ;;  %v129_v42 = vld [vmem:[%s10296_s0 + $0x150] sm:$0xf]  ;;  %v176_v47 = vrot.slane %v174_v34, 5  ;;  %v181_v14 = vrot.slane %v179_v35, 4  ;;  %v184_v50 = vrot.slane %v182_v40, 5  ;;  %2420 = vmatpush.bf16.msrb.mxu2 %v7789_v31 }
  0x45   :  { %v131_v48 = vld [vmem:[%s10296_s0 + $0x158] sm:$0xf]  ;;  %v172_v49 = vrot.slane %v171_v53, 4  ;;  %v190_v2 = vrot.slane %v188_v41, 5  ;;  %v132_v20 = vld [vmem:[%s10296_s0 + $0x15c] sm:$0x1]  ;;  %v6587_v61 = vor.u32 %v7709_v37, %v6584_v38 }
  0x46   :  { %2223 = vmatpush.bf16.msra.mxu0 %v8125_v4  ;;  %v7783_v4 = vld [vmem:[%s10295_s1 + $0x178] sm:$0xff]  ;;  %v317_v17 = vsel %vm8215_vm2, %v312_v6, %v316_v33  ;;  %v333_v51 = vshrl.u32 %v129_v42, 16  ;;  %v336_v54 = vshll.u32 %v129_v42, 16  ;;  %v347_v56 = vshrl.u32 %v131_v48, 16  ;;  %v6271_v9 = vld [vmem:[%s10296_s0 + $0x1a0] sm:$0xf] }
  0x47   :  { %388 = vst [vmem:[#allocation2 + $0x1b8] sm:$0xf] %v317_v17  ;;  %2369 = vmatpush.bf16.msrb.mxu1 %v7783_v4  ;;  %v350_v57 = vshll.u32 %v131_v48, 16  ;;  %v177_v58 = vsel %vm8215_vm2, %v172_v49, %v176_v47  ;;  %v185_v33 = vor.u32 %v184_v50, %v181_v14  ;;  %v356_v60 = vshll.u32 %v132_v20, 16  ;;  %v6270_v1 = vld [vmem:[%s10296_s0 + $0x198] sm:$0xf] }
  0x48   :  { %v335_v59 = vrot.slane %v333_v51, 4  ;;  %378 = vst [vmem:[#allocation2 + $0x50] sm:$0xf] %v177_v58  ;;  %v338_v62 = vrot.slane %v336_v54, 5  ;;  %v349_v0 = vrot.slane %v347_v56, 4  ;;  %v7781_v15 = vld [vmem:[%s10295_s1 + $0x168] sm:$0xff]  ;;  %2421 = vmatpush.bf16.msrb.mxu2 %v7788_v5 }
  0x49   :  { %v186_v63 = vrot.slane %v185_v33, 4  ;;  %v352_v3 = vrot.slane %v350_v57, 5  ;;  %99 = vst [vmem:[#allocation2 + $0x1fc] sm:$0xf] %v6270_v1  ;;  %v358_v4 = vrot.slane %v356_v60, 5  ;;  %v7760_v46 = vld [vmem:[%s10295_s1 + $0xc0] sm:$0xff] }
  0x4a   :  { %2224 = vmatpush.bf16.msra.mxu0 %v8140_v7  ;;  %v7782_v7 = vld [vmem:[%s10295_s1 + $0x170] sm:$0xff]  ;;  %v339_v6 = vor.u32 %v338_v62, %v335_v59  ;;  %100 = vst [vmem:[#allocation2 + $0x220] sm:$0xf] %v6271_v9  ;;  %v7780_v17 = vld [vmem:[%s10295_s1 + $0x160] sm:$0xff]  ;;  %v7787_v18 = vld [vmem:[%s10295_s1 + $0x198] sm:$0xff]  ;;  %2278 = vmatpush.bf16.msrb.mxu3 %v7760_v46 }
  0x4b   :  { %2370 = vmatpush.bf16.msrb.mxu1 %v7782_v7  ;;  %v191_v10 = vsel %vm8215_vm2, %v186_v63, %v190_v2  ;;  %v353_v11 = vor.u32 %v352_v3, %v349_v0  ;;  %v6272_v22 = vld [vmem:[%s10296_s0 + $0x90] sm:$0xf]  ;;  %v7775_v23 = vld [vmem:[%s10295_s1 + $0x138] sm:$0xff]  ;;  %v7722_v26 = vld [vmem:[#allocation2 + $0x1d0] sm:$0xf0] }
  0x4c   :  { %379 = vst [vmem:[#allocation2 + $0x74] sm:$0xf] %v191_v10  ;;  %v6273_v24 = vld [vmem:[%s10296_s0 + $0x98] sm:$0xf]  ;;  %v6618_v25 = vld [vmem:[#allocation2 + $0x1b0] sm:$0xf]  ;;  %2422 = vmatpush.bf16.msrb.mxu2 %v7787_v18 }
  0x4d   :  { %v354_v16 = vrot.slane %v353_v11, 4  ;;  %v7669_v27 = vld [vmem:[#allocation2 + $0x28] sm:$0xf0]  ;;  %v7779_v7 = vld [vmem:[%s10295_s1 + $0x158] sm:$0xff]  ;;  %v7786_v28 = vld [vmem:[%s10295_s1 + $0x190] sm:$0xff] }
  0x4e   :  { %2225 = vmatpush.bf16.msra.mxu0 %v8162_v13  ;;  %v130_v13 = vld [vmem:[%s10296_s0 + $0x154] sm:$0x1]  ;;  %409 = vst [vmem:[#allocation2 + $0xc] sm:$0xf] %v6272_v22  ;;  %v6288_v8 = vld [vmem:[%s10296_s0 + $0xd8] sm:$0xf] }
  0x4f   :  { %v342_v55 = vshll.u32 %v130_v13, 16  ;;  %2371 = vmatpush.bf16.msrb.mxu1 %v7781_v15  ;;  %v359_v21 = vsel %vm8215_vm2, %v354_v16, %v358_v4  ;;  %v6626_v29 = vld [vmem:[#allocation2 + $0x1b8] sm:$0xf]  ;;  %v7723_v30 = vld [vmem:[#allocation2 + $0x1d8] sm:$0xf0]  ;;  %v7774_v34 = vld [vmem:[%s10295_s1 + $0x130] sm:$0xff] }
  0x50   :  { %391 = vst [vmem:[#allocation2 + $0x224] sm:$0xf] %v359_v21  ;;  %v6289_v31 = vld [vmem:[%s10296_s0 + $0xe0] sm:$0xf]  ;;  %v7718_v35 = vld [vmem:[#allocation2 + $0x1b4] sm:$0xf]  ;;  %2423 = vmatpush.bf16.msrb.mxu2 %v7786_v28  ;;  %v6627_v48 = vor.u32 %v7723_v30, %v6626_v29 }
  0x51   :  { %2157 = vmatmul.bf16.gmra.mxu3 %v6583_v36  ;;  %2186 = vmatmul.bf16.gmra.mxu0 %v6443_v43  ;;  %410 = vst [vmem:[#allocation2 + $0x30] sm:$0xf] %v6273_v24  ;;  %v6620_v36 = vld [vmem:[#allocation2 + $0x1d4] sm:$0xf0]  ;;  %v7778_v37 = vld [vmem:[%s10295_s1 + $0x150] sm:$0xff]  ;;  %v7785_v40 = vld [vmem:[%s10295_s1 + $0x188] sm:$0xff]  ;;  %v6619_v43 = vor.u32 %v7722_v26, %v6618_v25 }
  0x52   :  { %2226 = vmatpush.bf16.msra.mxu0 %v8200_v32  ;;  %v344_v32 = vrot.slane %v342_v55, 5  ;;  %442 = vst [vmem:[#allocation2 + $0x10] sm:$0xf] %v6288_v8  ;;  %v6304_v38 = vld [vmem:[%s10296_s0 + $0x90] sm:$0xf]  ;;  %v6623_v2 = vor.u32 %v7718_v35, %v6620_v36  ;;  %v7773_v20 = vld [vmem:[%s10295_s1 + $0x128] sm:$0xff] }
  0x53   :  { %2255 = vmatmul.bf16.gmra.mxu2 %v6591_v45  ;;  %2206 = vmatmul.bf16.gmra.mxu1 %v6587_v61  ;;  %443 = vst [vmem:[#allocation2 + $0x34] sm:$0xf] %v6289_v31  ;;  %v6306_v53 = vld [vmem:[%s10296_s0 + $0x98] sm:$0xf]  ;;  %v6336_v41 = vld [vmem:[%s10296_s0 + $0x8] sm:$0xf] }
  0x54   :  { %2372 = vmatpush.bf16.msrb.mxu1 %v7780_v17  ;;  %v6337_v42 = vld [vmem:[%s10296_s0 + $0x10] sm:$0xf]  ;;  %763 = vst [vmem:[#allocation2 + $0x18] sm:$0xf] %v6336_v41  ;;  %v6307_v47 = vld [vmem:[%s10296_s0 + $0x9c] sm:$0x1]  ;;  %2424 = vmatpush.bf16.msrb.mxu2 %v7785_v40 }
  0x55   :  { %v491_v14 = vshrl.u32 %v6304_v38, 16  ;;  %v494_v13 = vshll.u32 %v6304_v38, 16  ;;  %764 = vst [vmem:[#allocation2 + $0x3c] sm:$0xf] %v6337_v42  ;;  %v505_v50 = vshrl.u32 %v6306_v53, 16  ;;  %v508_v55 = vshll.u32 %v6306_v53, 16 }
  0x56   :  { %2227 = vmatpush.bf16.msra.mxu0 %v8228_v44  ;;  %v340_v44 = vrot.slane %v339_v6, 4  ;;  %v514_v57 = vshll.u32 %v6307_v47, 16  ;;  %v7799_v58 = vld [vmem:[%s10295_s1 + $0x1f8] sm:$0xff]  ;;  %v7777_v33 = vld [vmem:[%s10295_s1 + $0x148] sm:$0xff]  ;;  %v7772_v61 = vld [vmem:[%s10295_s1 + $0x120] sm:$0xff] }
  0x57   :  { %v493_v51 = vrot.slane %v491_v14, 4  ;;  %v496_v54 = vrot.slane %v494_v13, 5  ;;  %v507_v56 = vrot.slane %v505_v50, 4  ;;  %v510_v1 = vrot.slane %v508_v55, 5  ;;  %v7784_v62 = vld [vmem:[%s10295_s1 + $0x180] sm:$0xff]  ;;  %2467 = vmatpush.bf16.msra.mxu3 %v7799_v58  ;;  %v7771_v10 = vld [vmem:[%s10295_s1 + $0x118] sm:$0xff] }
  0x58   :  { %v345_v19 = vsel %vm8215_vm2, %v340_v44, %v344_v32  ;;  %2373 = vmatpush.bf16.msrb.mxu1 %v7779_v7  ;;  %v516_v3 = vrot.slane %v514_v57, 5  ;;  %v6274_v6 = vld [vmem:[%s10296_s0 + $0xa0] sm:$0xf]  ;;  %v6275_v32 = vld [vmem:[%s10296_s0 + $0xa8] sm:$0xf]  ;;  %2425 = vmatpush.bf16.msrb.mxu2 %v7784_v62  ;;  %v7770_v26 = vld [vmem:[%s10295_s1 + $0x110] sm:$0xff] }
  0x59   :  { %390 = vst [vmem:[#allocation2 + $0x200] sm:$0xf] %v345_v19  ;;  %v497_v59 = vor.u32 %v496_v54, %v493_v51  ;;  %v511_v0 = vor.u32 %v510_v1, %v507_v56  ;;  %v7776_v9 = vld [vmem:[%s10295_s1 + $0x140] sm:$0xff]  ;;  %v6290_v15 = vld [vmem:[%s10296_s0 + $0xe8] sm:$0xf]  ;;  %v7798_v50 = vld [vmem:[%s10295_s1 + $0x1f0] sm:$0xff] }
  0x5a   :  { %2228 = vmatpush.bf16.msra.mxu0 %v8251_v52  ;;  %v6410_v52 = vld [vmem:[#allocation2 + $0x8] sm:$0xf]  ;;  %411 = vst [vmem:[#allocation2 + $0x54] sm:$0xf] %v6274_v6  ;;  %v6291_v5 = vld [vmem:[%s10296_s0 + $0xf0] sm:$0xf] }
  0x5b   :  { %v6411_v45 = vor.u32 %v7669_v27, %v6410_v52  ;;  %v498_v63 = vrot.slane %v497_v59, 4  ;;  %v512_v4 = vrot.slane %v511_v0, 4  ;;  %412 = vst [vmem:[#allocation2 + $0x78] sm:$0xf] %v6275_v32  ;;  %v6308_v44 = vld [vmem:[%s10296_s0 + $0xa0] sm:$0xf]  ;;  %2468 = vmatpush.bf16.msra.mxu3 %v7798_v50 }
  0x5c   :  { %2374 = vmatpush.bf16.msrb.mxu1 %v7778_v37  ;;  %444 = vst [vmem:[#allocation2 + $0x58] sm:$0xf] %v6290_v15  ;;  %v6310_v16 = vld [vmem:[%s10296_s0 + $0xa8] sm:$0xf]  ;;  %v6654_v17 = vld [vmem:[#allocation2 + $0x1f8] sm:$0xf] }
  0x5d   :  { %v517_v46 = vsel %vm8215_vm2, %v512_v4, %v516_v3  ;;  %v7731_v18 = vld [vmem:[#allocation2 + $0x218] sm:$0xf0]  ;;  %v519_v19 = vshrl.u32 %v6308_v44, 16  ;;  %v522_v21 = vshll.u32 %v6308_v44, 16  ;;  %v533_v22 = vshrl.u32 %v6310_v16, 16  ;;  %v7769_v13 = vld [vmem:[%s10295_s1 + $0x108] sm:$0xff] }
  0x5e   :  { %2229 = vmatpush.bf16.msra.mxu0 %v8283_v12  ;;  %v6305_v12 = vld [vmem:[%s10296_s0 + $0x94] sm:$0x1]  ;;  %731 = vst [vmem:[#allocation2 + $0x38] sm:$0xf] %v517_v46  ;;  %v6446_v24 = vld [vmem:[#allocation2 + $0x50] sm:$0xf]  ;;  %v6655_v53 = vor.u32 %v7731_v18, %v6654_v17 }
  0x5f   :  { %v500_v49 = vshll.u32 %v6305_v12, 16  ;;  %v7678_v25 = vld [vmem:[#allocation2 + $0x70] sm:$0xf0]  ;;  %445 = vst [vmem:[#allocation2 + $0x7c] sm:$0xf] %v6291_v5  ;;  %v521_v7 = vrot.slane %v519_v19, 4 }
  0x60   :  { %2375 = vmatpush.bf16.msrb.mxu1 %v7777_v33  ;;  %v6662_v52 = vld [vmem:[#allocation2 + $0x200] sm:$0xf]  ;;  %v7727_v27 = vld [vmem:[#allocation2 + $0x1fc] sm:$0xf]  ;;  %v524_v28 = vrot.slane %v522_v21, 5  ;;  %v535_v8 = vrot.slane %v533_v22, 4  ;;  %v6447_v40 = vor.u32 %v7678_v25, %v6446_v24 }
  0x61   :  { %2162 = vmatmul.bf16.gmra.mxu3 %v6619_v43  ;;  %2230 = vmatmul.bf16.vlgmr.msra.gmra.mxu0 %v6411_v45  ;;  %v502_v60 = vrot.slane %v500_v49, 5  ;;  %v7732_v30 = vld [vmem:[#allocation2 + $0x220] sm:$0xf0]  ;;  %v6656_v35 = vld [vmem:[#allocation2 + $0x21c] sm:$0xf0]  ;;  %v7807_v54 = vld [vmem:[%s10295_s1 + $0x238] sm:$0xff] }
  0x62   :  { %2320 = vmatpush.bf16.msrb.mxu0 %v7775_v23  ;;  %v536_v23 = vshll.u32 %v6310_v16, 16  ;;  %v6309_v31 = vld [vmem:[%s10296_s0 + $0xa4] sm:$0x1]  ;;  %v6338_v36 = vld [vmem:[%s10296_s0 + $0x18] sm:$0xf]  ;;  %v525_v38 = vor.u32 %v524_v28, %v521_v7  ;;  %v6663_v43 = vor.u32 %v7732_v30, %v6662_v52  ;;  %v6659_v14 = vor.u32 %v7727_v27, %v6656_v35  ;;  %v7806_v55 = vld [vmem:[%s10295_s1 + $0x230] sm:$0xff] }
  0x63   :  { %2260 = vmatmul.bf16.gmra.mxu2 %v6627_v48  ;;  %2211 = vmatmul.bf16.gmra.mxu1 %v6623_v2  ;;  %v503_v11 = vsel %vm8215_vm2, %v498_v63, %v502_v60  ;;  %v6339_v37 = vld [vmem:[%s10296_s0 + $0x20] sm:$0xf]  ;;  %765 = vst [vmem:[#allocation2 + $0x60] sm:$0xf] %v6338_v36  ;;  %v528_v41 = vshll.u32 %v6309_v31, 16  ;;  %v7797_v31 = vld [vmem:[%s10295_s1 + $0x1e8] sm:$0xff] }
  0x64   :  { %730 = vst [vmem:[#allocation2 + $0x14] sm:$0xf] %v503_v11  ;;  %2376 = vmatpush.bf16.msrb.mxu1 %v7776_v9  ;;  %v538_v29 = vrot.slane %v536_v23, 5  ;;  %v526_v45 = vrot.slane %v525_v38, 4  ;;  %v7768_v51 = vld [vmem:[%s10295_s1 + $0x100] sm:$0xff]  ;;  %2469 = vmatpush.bf16.msra.mxu3 %v7797_v31 }
  0x65   :  { %766 = vst [vmem:[#allocation2 + $0x84] sm:$0xf] %v6339_v37  ;;  %v530_v48 = vrot.slane %v528_v41, 5  ;;  %v6276_v56 = vld [vmem:[%s10296_s0 + $0xb0] sm:$0xf] }
  0x66   :  { %2321 = vmatpush.bf16.msrb.mxu0 %v7774_v34  ;;  %v6311_v34 = vld [vmem:[%s10296_s0 + $0xac] sm:$0x1]  ;;  %v539_v12 = vor.u32 %v538_v29, %v535_v8  ;;  %v6277_v57 = vld [vmem:[%s10296_s0 + $0xb8] sm:$0xf]  ;;  %413 = vst [vmem:[#allocation2 + $0x9c] sm:$0xf] %v6276_v56 }
  0x67   :  { %v542_v42 = vshll.u32 %v6311_v34, 16  ;;  %v531_v2 = vsel %vm8215_vm2, %v526_v45, %v530_v48  ;;  %v6292_v58 = vld [vmem:[%s10296_s0 + $0xf8] sm:$0xf]  ;;  %v6293_v33 = vld [vmem:[%s10296_s0 + $0x100] sm:$0xf] }
  0x68   :  { %v540_v47 = vrot.slane %v539_v12, 4  ;;  %732 = vst [vmem:[#allocation2 + $0x5c] sm:$0xf] %v531_v2  ;;  %v6312_v59 = vld [vmem:[%s10296_s0 + $0xb0] sm:$0xf] }
  0x69   :  { %v544_v49 = vrot.slane %v542_v42, 5  ;;  %v7665_v60 = vld [vmem:[#allocation2 + $0xc] sm:$0xf]  ;;  %v6412_v1 = vld [vmem:[#allocation2 + $0x2c] sm:$0xf0]  ;;  %v547_v0 = vshrl.u32 %v6312_v59, 16 }
  0x6a   :  { %2322 = vmatpush.bf16.msrb.mxu0 %v7773_v20  ;;  %v7670_v62 = vld [vmem:[#allocation2 + $0x30] sm:$0xf0]  ;;  %414 = vst [vmem:[#allocation2 + $0xc0] sm:$0xf] %v6277_v57  ;;  %v6314_v63 = vld [vmem:[%s10296_s0 + $0xb8] sm:$0xf]  ;;  %v6415_v24 = vor.u32 %v7665_v60, %v6412_v1 }
  0x6b   :  { %v545_v20 = vsel %vm8215_vm2, %v540_v47, %v544_v49  ;;  %v550_v3 = vshll.u32 %v6312_v59, 16  ;;  %v6426_v6 = vld [vmem:[#allocation2 + $0x18] sm:$0xf]  ;;  %v7671_v32 = vld [vmem:[#allocation2 + $0x38] sm:$0xf0]  ;;  %v561_v9 = vshrl.u32 %v6314_v63, 16 }
  0x6c   :  { %733 = vst [vmem:[#allocation2 + $0x80] sm:$0xf] %v545_v20  ;;  %v7666_v11 = vld [vmem:[#allocation2 + $0x14] sm:$0xf]  ;;  %v6420_v4 = vld [vmem:[#allocation2 + $0x34] sm:$0xf0]  ;;  %v6427_v52 = vor.u32 %v7671_v32, %v6426_v6 }
  0x6d   :  { %446 = vst [vmem:[#allocation2 + $0xa0] sm:$0xf] %v6292_v58  ;;  %v549_v15 = vrot.slane %v547_v0, 4  ;;  %v552_v5 = vrot.slane %v550_v3, 5  ;;  %v6313_v46 = vld [vmem:[%s10296_s0 + $0xb4] sm:$0x1]  ;;  %v6423_v28 = vor.u32 %v7666_v11, %v6420_v4 }
  0x6e   :  { %2323 = vmatpush.bf16.msrb.mxu0 %v7772_v61  ;;  %v6418_v61 = vld [vmem:[#allocation2 + $0x10] sm:$0xf]  ;;  %447 = vst [vmem:[#allocation2 + $0xc4] sm:$0xf] %v6293_v33  ;;  %v6315_v44 = vld [vmem:[%s10296_s0 + $0xbc] sm:$0x1] }
  0x6f   :  { %v563_v16 = vrot.slane %v561_v9, 4  ;;  %v6340_v18 = vld [vmem:[%s10296_s0 + $0x28] sm:$0xf]  ;;  %v6341_v19 = vld [vmem:[%s10296_s0 + $0x30] sm:$0xf]  ;;  %v553_v21 = vor.u32 %v552_v5, %v549_v15  ;;  %v556_v22 = vshll.u32 %v6313_v46, 16  ;;  %v6419_v25 = vor.u32 %v7670_v62, %v6418_v61 }
  0x70   :  { %v570_v23 = vshll.u32 %v6315_v44, 16  ;;  %767 = vst [vmem:[#allocation2 + $0xa8] sm:$0xf] %v6340_v18  ;;  %v6278_v35 = vld [vmem:[%s10296_s0 + $0xc0] sm:$0xf] }
  0x71   :  { %2167 = vmatmul.bf16.gmra.mxu3 %v6655_v53  ;;  %2235 = vmatmul.bf16.gmra.mxu0 %v6447_v40  ;;  %768 = vst [vmem:[#allocation2 + $0xcc] sm:$0xf] %v6341_v19  ;;  %v554_v27 = vrot.slane %v553_v21, 4  ;;  %v558_v7 = vrot.slane %v556_v22, 5  ;;  %v6279_v36 = vld [vmem:[%s10296_s0 + $0xc8] sm:$0xf] }
  0x72   :  { %2324 = vmatpush.bf16.msrb.mxu0 %v7771_v10  ;;  %v564_v10 = vshll.u32 %v6314_v63, 16  ;;  %v572_v29 = vrot.slane %v570_v23, 5  ;;  %v6294_v37 = vld [vmem:[%s10296_s0 + $0x108] sm:$0xf]  ;;  %v7674_v38 = vld [vmem:[#allocation2 + $0x54] sm:$0xf] }
  0x73   :  { %2265 = vmatmul.bf16.gmra.mxu2 %v6663_v43  ;;  %2216 = vmatmul.bf16.gmra.mxu1 %v6659_v14  ;;  %v559_v30 = vsel %vm8215_vm2, %v554_v27, %v558_v7  ;;  %v6448_v12 = vld [vmem:[#allocation2 + $0x74] sm:$0xf0]  ;;  %v7805_v40 = vld [vmem:[%s10295_s1 + $0x228] sm:$0xff]  ;;  %415 = vst [vmem:[#allocation2 + $0xe4] sm:$0xf] %v6278_v35  ;;  %v7796_v11 = vld [vmem:[%s10295_s1 + $0x1e0] sm:$0xff] }
  0x74   :  { %v566_v17 = vrot.slane %v564_v10, 5  ;;  %734 = vst [vmem:[#allocation2 + $0xa4] sm:$0xf] %v559_v30  ;;  %v6454_v53 = vld [vmem:[#allocation2 + $0x58] sm:$0xf]  ;;  %2470 = vmatpush.bf16.msra.mxu3 %v7796_v11  ;;  %v7804_v22 = vld [vmem:[%s10295_s1 + $0x220] sm:$0xff] }
  0x75   :  { %v6295_v41 = vld [vmem:[%s10296_s0 + $0x110] sm:$0xf]  ;;  %v7679_v42 = vld [vmem:[#allocation2 + $0x78] sm:$0xf0]  ;;  %416 = vst [vmem:[#allocation2 + $0x108] sm:$0xf] %v6279_v36 }
  0x76   :  { %2325 = vmatpush.bf16.msrb.mxu0 %v7770_v26  ;;  %v567_v26 = vor.u32 %v566_v17, %v563_v16  ;;  %v6316_v43 = vld [vmem:[%s10296_s0 + $0xc0] sm:$0xf]  ;;  %v7680_v47 = vld [vmem:[#allocation2 + $0x80] sm:$0xf0]  ;;  %448 = vst [vmem:[#allocation2 + $0xe8] sm:$0xf] %v6294_v37  ;;  %v6455_v56 = vor.u32 %v7679_v42, %v6454_v53 }
  0x77   :  { %v6462_v45 = vld [vmem:[#allocation2 + $0x60] sm:$0xf]  ;;  %v6318_v14 = vld [vmem:[%s10296_s0 + $0xc8] sm:$0xf]  ;;  %449 = vst [vmem:[#allocation2 + $0x10c] sm:$0xf] %v6295_v41 }
  0x78   :  { %v568_v8 = vrot.slane %v567_v26, 4  ;;  %v6456_v48 = vld [vmem:[#allocation2 + $0x7c] sm:$0xf0]  ;;  %v575_v49 = vshrl.u32 %v6316_v43, 16  ;;  %v578_v50 = vshll.u32 %v6316_v43, 16  ;;  %v589_v2 = vshrl.u32 %v6318_v14, 16 }
  0x79   :  { %v6317_v20 = vld [vmem:[%s10296_s0 + $0xc4] sm:$0x1]  ;;  %v6342_v57 = vld [vmem:[%s10296_s0 + $0x38] sm:$0xf]  ;;  %v6343_v58 = vld [vmem:[%s10296_s0 + $0x40] sm:$0xf]  ;;  %v6463_v63 = vor.u32 %v7680_v47, %v6462_v45 }
  0x7a   :  { %2326 = vmatpush.bf16.msrb.mxu0 %v7769_v13  ;;  %v573_v34 = vsel %vm8215_vm2, %v568_v8, %v572_v29  ;;  %v7675_v13 = vld [vmem:[#allocation2 + $0x5c] sm:$0xf]  ;;  %v577_v33 = vrot.slane %v575_v49, 4  ;;  %v580_v59 = vrot.slane %v578_v50, 5  ;;  %769 = vst [vmem:[#allocation2 + $0xf0] sm:$0xf] %v6342_v57 }
  0x7b   :  { %735 = vst [vmem:[#allocation2 + $0xc8] sm:$0xf] %v573_v34  ;;  %v584_v60 = vshll.u32 %v6317_v20, 16  ;;  %v591_v1 = vrot.slane %v589_v2, 4  ;;  %v6459_v3 = vor.u32 %v7675_v13, %v6456_v48  ;;  %v6280_v46 = vld [vmem:[%s10296_s0 + $0x1b0] sm:$0xf] }
  0x7c   :  { %770 = vst [vmem:[#allocation2 + $0x114] sm:$0xf] %v6343_v58  ;;  %v581_v0 = vor.u32 %v580_v59, %v577_v33  ;;  %v6281_v44 = vld [vmem:[%s10296_s0 + $0x1b8] sm:$0xf]  ;;  %v7683_v17 = vld [vmem:[#allocation2 + $0x9c] sm:$0xf] }
  0x7d   :  { %v586_v6 = vrot.slane %v584_v60, 5  ;;  %v6296_v16 = vld [vmem:[%s10296_s0 + $0x1f8] sm:$0xf]  ;;  %v6484_v18 = vld [vmem:[#allocation2 + $0xbc] sm:$0xf0] }
  0x7e   :  { %2327 = vmatpush.bf16.msrb.mxu0 %v7768_v51  ;;  %v6319_v51 = vld [vmem:[%s10296_s0 + $0xcc] sm:$0x1]  ;;  %v582_v10 = vrot.slane %v581_v0, 4  ;;  %v6490_v19 = vld [vmem:[#allocation2 + $0xa0] sm:$0xf]  ;;  %v6487_v35 = vor.u32 %v7683_v17, %v6484_v18 }
  0x7f   :  { %v598_v62 = vshll.u32 %v6319_v51, 16  ;;  %v7688_v21 = vld [vmem:[#allocation2 + $0xc0] sm:$0xf0]  ;;  %417 = vst [vmem:[#allocation2 + $0x12c] sm:$0xf] %v6280_v46  ;;  %v7795_v51 = vld [vmem:[%s10295_s1 + $0x1d8] sm:$0xff] }
  0x80   :  { %v587_v15 = vsel %vm8215_vm2, %v582_v10, %v586_v6  ;;  %v6297_v23 = vld [vmem:[%s10296_s0 + $0x200] sm:$0xf]  ;;  %418 = vst [vmem:[#allocation2 + $0x150] sm:$0xf] %v6281_v44  ;;  %v6498_v26 = vld [vmem:[#allocation2 + $0xa8] sm:$0xf]  ;;  %v6491_v36 = vor.u32 %v7688_v21, %v6490_v19  ;;  %2471 = vmatpush.bf16.msra.mxu3 %v7795_v51 }
  0x81   :  { %2279 = vmatmul.bf16.vlgmr.msrb.gmra.mxu3 %v6415_v24  ;;  %2328 = vmatmul.bf16.vlgmr.msrb.gmra.mxu0 %v6419_v25  ;;  %v600_v9 = vrot.slane %v598_v62, 5  ;;  %736 = vst [vmem:[#allocation2 + $0xec] sm:$0xf] %v587_v15  ;;  %v6320_v24 = vld [vmem:[%s10296_s0 + $0x1b0] sm:$0xf] }
  0x82   :  { %2516 = vmatpush.bf16.msra.mxu0 %v7807_v54  ;;  %v592_v54 = vshll.u32 %v6318_v14, 16  ;;  %v6322_v25 = vld [vmem:[%s10296_s0 + $0x1b8] sm:$0xf]  ;;  %450 = vst [vmem:[#allocation2 + $0x130] sm:$0xf] %v6296_v16  ;;  %v606_v27 = vshll.u32 %v6320_v24, 16 }
  0x83   :  { %2426 = vmatmul.bf16.vlgmr.msrb.gmra.mxu2 %v6427_v52  ;;  %2377 = vmatmul.bf16.vlgmr.msrb.gmra.mxu1 %v6423_v28  ;;  %v603_v52 = vshrl.u32 %v6320_v24, 16  ;;  %v617_v7 = vshrl.u32 %v6322_v25, 16  ;;  %v620_v28 = vshll.u32 %v6322_v25, 16  ;;  %v7689_v8 = vld [vmem:[#allocation2 + $0xc8] sm:$0xf0] }
  0x84   :  { %v594_v61 = vrot.slane %v592_v54, 5  ;;  %v7684_v29 = vld [vmem:[#allocation2 + $0xa4] sm:$0xf]  ;;  %451 = vst [vmem:[#allocation2 + $0x154] sm:$0xf] %v6297_v23  ;;  %v608_v53 = vrot.slane %v606_v27, 5  ;;  %v6499_v47 = vor.u32 %v7689_v8, %v6498_v26 }
  0x85   :  { %v6492_v30 = vld [vmem:[#allocation2 + $0xc4] sm:$0xf0]  ;;  %v6321_v31 = vld [vmem:[%s10296_s0 + $0x1b4] sm:$0x1]  ;;  %v6323_v34 = vld [vmem:[%s10296_s0 + $0x1bc] sm:$0x1] }
  0x86   :  { %2517 = vmatpush.bf16.msra.mxu0 %v7806_v55  ;;  %v6451_v55 = vor.u32 %v7674_v38, %v6448_v12  ;;  %v595_v32 = vor.u32 %v594_v61, %v591_v1  ;;  %v6344_v37 = vld [vmem:[%s10296_s0 + $0x128] sm:$0xf]  ;;  %v6345_v38 = vld [vmem:[%s10296_s0 + $0x130] sm:$0xf]  ;;  %v605_v12 = vrot.slane %v603_v52, 4  ;;  %v619_v41 = vrot.slane %v617_v7, 4 }
  0x87   :  { %771 = vst [vmem:[#allocation2 + $0x138] sm:$0xf] %v6344_v37  ;;  %v622_v42 = vrot.slane %v620_v28, 5  ;;  %v626_v43 = vshll.u32 %v6323_v34, 16  ;;  %v6495_v13 = vor.u32 %v7684_v29, %v6492_v30  ;;  %v6282_v60 = vld [vmem:[%s10296_s0 + $0x1c0] sm:$0xf] }
  0x88   :  { %v596_v4 = vrot.slane %v595_v32, 4  ;;  %772 = vst [vmem:[#allocation2 + $0x15c] sm:$0xf] %v6345_v38  ;;  %v609_v14 = vor.u32 %v608_v53, %v605_v12  ;;  %v6283_v1 = vld [vmem:[%s10296_s0 + $0x1c8] sm:$0xf]  ;;  %v7803_v32 = vld [vmem:[%s10295_s1 + $0x218] sm:$0xff] }
  0x89   :  { %v623_v49 = vor.u32 %v622_v42, %v619_v41  ;;  %v628_v50 = vrot.slane %v626_v43, 5  ;;  %v6298_v61 = vld [vmem:[%s10296_s0 + $0x208] sm:$0xf]  ;;  %v7697_v6 = vld [vmem:[#allocation2 + $0x108] sm:$0xf0] }
  0x8a   :  { %2518 = vmatpush.bf16.msra.mxu0 %v7805_v40  ;;  %v601_v5 = vsel %vm8215_vm2, %v596_v4, %v600_v9  ;;  %v612_v40 = vshll.u32 %v6321_v31, 16  ;;  %v610_v20 = vrot.slane %v609_v14, 4  ;;  %v6520_v0 = vld [vmem:[#allocation2 + $0x104] sm:$0xf0]  ;;  %419 = vst [vmem:[#allocation2 + $0x174] sm:$0xf] %v6282_v60 }
  0x8b   :  { %737 = vst [vmem:[#allocation2 + $0x110] sm:$0xf] %v601_v5  ;;  %v624_v54 = vrot.slane %v623_v49, 4  ;;  %v6299_v9 = vld [vmem:[%s10296_s0 + $0x210] sm:$0xf] }
  0x8c   :  { %v614_v48 = vrot.slane %v612_v40, 5  ;;  %420 = vst [vmem:[#allocation2 + $0x198] sm:$0xf] %v6283_v1  ;;  %v6324_v11 = vld [vmem:[%s10296_s0 + $0x1c0] sm:$0xf]  ;;  %v7802_v1 = vld [vmem:[%s10295_s1 + $0x210] sm:$0xff] }
  0x8d   :  { %v6326_v4 = vld [vmem:[%s10296_s0 + $0x1c8] sm:$0xf]  ;;  %v6534_v15 = vld [vmem:[#allocation2 + $0xf0] sm:$0xf]  ;;  %452 = vst [vmem:[#allocation2 + $0x178] sm:$0xf] %v6298_v61 }
  0x8e   :  { %2519 = vmatpush.bf16.msra.mxu0 %v7804_v22  ;;  %v631_v5 = vshrl.u32 %v6324_v11, 16  ;;  %v634_v46 = vshll.u32 %v6324_v11, 16  ;;  %v645_v44 = vshrl.u32 %v6326_v4, 16  ;;  %v648_v16 = vshll.u32 %v6326_v4, 16  ;;  %v7698_v17 = vld [vmem:[#allocation2 + $0x110] sm:$0xf0] }
  0x8f   :  { %v7693_v18 = vld [vmem:[#allocation2 + $0xec] sm:$0xf]  ;;  %453 = vst [vmem:[#allocation2 + $0x19c] sm:$0xf] %v6299_v9  ;;  %v6325_v21 = vld [vmem:[%s10296_s0 + $0x1c4] sm:$0x1] }
  0x90   :  { %v6327_v22 = vld [vmem:[%s10296_s0 + $0x1cc] sm:$0x1]  ;;  %v6346_v26 = vld [vmem:[%s10296_s0 + $0x138] sm:$0xf]  ;;  %v6347_v52 = vld [vmem:[%s10296_s0 + $0x140] sm:$0xf] }
  0x91   :  { %2284 = vmatmul.bf16.gmra.mxu3 %v6451_v55  ;;  %2333 = vmatmul.bf16.gmra.mxu0 %v6455_v56  ;;  %v615_v55 = vsel %vm8215_vm2, %v610_v20, %v614_v48  ;;  %v629_v56 = vsel %vm8215_vm2, %v624_v54, %v628_v50  ;;  %v633_v27 = vrot.slane %v631_v5, 4  ;;  %v636_v7 = vrot.slane %v634_v46, 5  ;;  %773 = vst [vmem:[#allocation2 + $0x180] sm:$0xf] %v6346_v26  ;;  %v6284_v51 = vld [vmem:[%s10296_s0 + $0x1d0] sm:$0xf] }
  0x92   :  { %738 = vst [vmem:[#allocation2 + $0x134] sm:$0xf] %v615_v55  ;;  %2520 = vmatpush.bf16.msra.mxu0 %v7803_v32  ;;  %v6528_v19 = vld [vmem:[#allocation2 + $0x10c] sm:$0xf0]  ;;  %v640_v29 = vshll.u32 %v6325_v21, 16  ;;  %v647_v30 = vrot.slane %v645_v44, 4 }
  0x93   :  { %2431 = vmatmul.bf16.gmra.mxu2 %v6463_v63  ;;  %2382 = vmatmul.bf16.gmra.mxu1 %v6459_v3  ;;  %739 = vst [vmem:[#allocation2 + $0x158] sm:$0xf] %v629_v56  ;;  %v7692_v63 = vld [vmem:[#allocation2 + $0xe4] sm:$0xf]  ;;  %v6526_v3 = vld [vmem:[#allocation2 + $0xe8] sm:$0xf]  ;;  %v6531_v12 = vor.u32 %v7693_v18, %v6528_v19 }
  0x94   :  { %v6523_v24 = vor.u32 %v7692_v63, %v6520_v0  ;;  %v6527_v25 = vor.u32 %v7697_v6, %v6526_v3  ;;  %v650_v31 = vrot.slane %v648_v16, 5  ;;  %774 = vst [vmem:[#allocation2 + $0x1a4] sm:$0xf] %v6347_v52  ;;  %v654_v37 = vshll.u32 %v6327_v22, 16  ;;  %v6285_v54 = vld [vmem:[%s10296_s0 + $0x1d8] sm:$0xf] }
  0x95   :  { %v642_v53 = vrot.slane %v640_v29, 5  ;;  %v6300_v55 = vld [vmem:[%s10296_s0 + $0x218] sm:$0xf]  ;;  %v7706_v60 = vld [vmem:[#allocation2 + $0x150] sm:$0xf0] }
  0x96   :  { %v651_v40 = vor.u32 %v650_v31, %v647_v30  ;;  %v656_v43 = vrot.slane %v654_v37, 5  ;;  %421 = vst [vmem:[#allocation2 + $0x1bc] sm:$0xf] %v6284_v51  ;;  %v6301_v61 = vld [vmem:[%s10296_s0 + $0x220] sm:$0xf]  ;;  %2521 = vmatpush.bf16.msra.mxu0 %v7802_v1 }
  0x97   :  { %422 = vst [vmem:[#allocation2 + $0x1e0] sm:$0xf] %v6285_v54  ;;  %v6328_v0 = vld [vmem:[%s10296_s0 + $0x1d0] sm:$0xf]  ;;  %v6330_v3 = vld [vmem:[%s10296_s0 + $0x1d8] sm:$0xf] }
  0x98   :  { %v652_v14 = vrot.slane %v651_v40, 4  ;;  %v6570_v6 = vld [vmem:[#allocation2 + $0x138] sm:$0xf]  ;;  %454 = vst [vmem:[#allocation2 + $0x1c0] sm:$0xf] %v6300_v55  ;;  %v659_v32 = vshrl.u32 %v6328_v0, 16 }
  0x99   :  { %v662_v9 = vshll.u32 %v6328_v0, 16  ;;  %v676_v11 = vshll.u32 %v6330_v3, 16  ;;  %v7707_v4 = vld [vmem:[#allocation2 + $0x158] sm:$0xf0]  ;;  %455 = vst [vmem:[#allocation2 + $0x1e4] sm:$0xf] %v6301_v61 }
  0x9a   :  { %v657_v48 = vsel %vm8215_vm2, %v652_v14, %v656_v43  ;;  %v6564_v5 = vld [vmem:[#allocation2 + $0x154] sm:$0xf0]  ;;  %v6329_v46 = vld [vmem:[%s10296_s0 + $0x1d4] sm:$0x1]  ;;  %v6331_v44 = vld [vmem:[%s10296_s0 + $0x1dc] sm:$0x1] }
  0x9b   :  { %741 = vst [vmem:[#allocation2 + $0x1a0] sm:$0xf] %v657_v48  ;;  %v6348_v19 = vld [vmem:[%s10296_s0 + $0x148] sm:$0xf]  ;;  %v6349_v21 = vld [vmem:[%s10296_s0 + $0x150] sm:$0xf] }
  0x9c   :  { %v661_v22 = vrot.slane %v659_v32, 4  ;;  %775 = vst [vmem:[#allocation2 + $0x1c8] sm:$0xf] %v6348_v19  ;;  %v668_v26 = vshll.u32 %v6329_v46, 16  ;;  %v682_v30 = vshll.u32 %v6331_v44, 16 }
  0x9d   :  { %776 = vst [vmem:[#allocation2 + $0x1ec] sm:$0xf] %v6349_v21  ;;  %v7710_v55 = vld [vmem:[#allocation2 + $0x174] sm:$0xf]  ;;  %v6598_v1 = vld [vmem:[#allocation2 + $0x178] sm:$0xf] }
  0x9e   :  { %v8762_v45 = vpop.f32.mrf.mxu0  ;;  %v684_v40 = vrot.slane %v682_v30, 5  ;;  %v7715_v61 = vld [vmem:[#allocation2 + $0x198] sm:$0xf0]  ;;  %v6606_v0 = vld [vmem:[#allocation2 + $0x180] sm:$0xf] }
  0xa0   :  { %v2192_v2 = vpop.f32.mrf.mxu1 }
  0xa1   :  { %2289 = vmatmul.bf16.gmra.mxu3 %v6487_v35  ;;  %2338 = vmatmul.bf16.gmra.mxu0 %v6491_v36  ;;  %v6535_v35 = vor.u32 %v7698_v17, %v6534_v15  ;;  %v637_v36 = vor.u32 %v636_v7, %v633_v27  ;;  %v7702_v15 = vld [vmem:[#allocation2 + $0x134] sm:$0xf]  ;;  %v678_v27 = vrot.slane %v676_v11, 5 }
  0xa3   :  { %2436 = vmatmul.bf16.gmra.mxu2 %v6499_v47  ;;  %2387 = vmatmul.bf16.gmra.mxu1 %v6495_v13  ;;  %v638_v42 = vrot.slane %v637_v36, 4  ;;  %v7794_v47 = vld [vmem:[%s10295_s1 + $0x1d0] sm:$0xff]  ;;  %v670_v36 = vrot.slane %v668_v26, 5 }
  0xa4   :  { %v2143_v57 = vpop.f32.mrf.mxu3  ;;  %2472 = vmatpush.bf16.msra.mxu3 %v7794_v47 }
  0xa5   :  { %v2193_v58 = vadd.f32 %v2192_v2, %v2143_v57  ;;  %v643_v13 = vsel %vm8215_vm2, %v638_v42, %v642_v53  ;;  %v7701_v57 = vld [vmem:[#allocation2 + $0x12c] sm:$0xf] }
  0xa6   :  { %v2241_v33 = vpop.f32.mrf.mxu2  ;;  %v8771_v59 = vpop.f32.mrf.mxu0  ;;  %740 = vst [vmem:[#allocation2 + $0x17c] sm:$0xf] %v643_v13 }
  0xa7   :  { %v8782_v62 = vadd.f32 %v2241_v33, %v2193_v58  ;;  %v6556_v58 = vld [vmem:[#allocation2 + $0x14c] sm:$0xf0] }
  0xa8   :  { %v2194_v10 = vpop.f32.mrf.mxu1  ;;  %v6562_v33 = vld [vmem:[#allocation2 + $0x130] sm:$0xf]  ;;  %v6559_v17 = vor.u32 %v7701_v57, %v6556_v58  ;;  %v6592_v57 = vld [vmem:[#allocation2 + $0x194] sm:$0xf0]  ;;  %v7801_v58 = vld [vmem:[%s10295_s1 + $0x208] sm:$0xff] }
  0xa9   :  { %v6563_v18 = vor.u32 %v7706_v60, %v6562_v33  ;;  %v6303_v33 = vld [vmem:[%s10296_s0 + $0x230] sm:$0xf]  ;;  %2522 = vmatpush.bf16.msra.mxu0 %v7801_v58  ;;  %v6595_v44 = vor.u32 %v7710_v55, %v6592_v57 }
  0xaa   :  { %457 = vst [vmem:[#allocation2 + $0x22c] sm:$0xf] %v6303_v33 }
  0xac   :  { %v2145_v23 = vpop.f32.mrf.mxu3 }
  0xad   :  { %v2195_v28 = vadd.f32 %v2194_v10, %v2145_v23  ;;  %v673_v10 = vshrl.u32 %v6330_v3, 16  ;;  %v664_v23 = vrot.slane %v662_v9, 5  ;;  %v7711_v11 = vld [vmem:[#allocation2 + $0x17c] sm:$0xf] }
  0xae   :  { %v2243_v8 = vpop.f32.mrf.mxu2  ;;  %v8808_v34 = vpop.f32.mrf.mxu0 }
  0xaf   :  { %v8810_v38 = vadd.f32 %v2243_v8, %v2195_v28  ;;  %v675_v52 = vrot.slane %v673_v10, 4  ;;  %v6571_v28 = vor.u32 %v7707_v4, %v6570_v6  ;;  %v6567_v8 = vor.u32 %v7702_v15, %v6564_v5  ;;  %v7716_v10 = vld [vmem:[#allocation2 + $0x1a0] sm:$0xf0]  ;;  %v6600_v4 = vld [vmem:[#allocation2 + $0x19c] sm:$0xf0] }
  0xb0   :  { %v2197_v41 = vpop.f32.mrf.mxu1  ;;  %v665_v29 = vor.u32 %v664_v23, %v661_v22  ;;  %v6333_v15 = vld [vmem:[%s10296_s0 + $0x1e4] sm:$0x1]  ;;  %v6335_v5 = vld [vmem:[%s10296_s0 + $0x1ec] sm:$0x1]  ;;  %v6599_v22 = vor.u32 %v7715_v61, %v6598_v1 }
  0xb1   :  { %2294 = vmatmul.bf16.gmra.mxu3 %v6523_v24  ;;  %2343 = vmatmul.bf16.gmra.mxu0 %v6527_v25  ;;  %v679_v37 = vor.u32 %v678_v27, %v675_v52  ;;  %v696_v23 = vshll.u32 %v6333_v15, 16  ;;  %v6607_v52 = vor.u32 %v7716_v10, %v6606_v0  ;;  %v6353_v0 = vld [vmem:[%s10296_s0 + $0x58] sm:$0xf] }
  0xb2   :  { %v666_v53 = vrot.slane %v665_v29, 4  ;;  %797 = vst [vmem:[#allocation2 + $0x40] sm:$0xf] %v6353_v0 }
  0xb3   :  { %2441 = vmatmul.bf16.gmra.mxu2 %v6535_v35  ;;  %2392 = vmatmul.bf16.gmra.mxu1 %v6531_v12  ;;  %v680_v42 = vrot.slane %v679_v37, 4  ;;  %v698_v29 = vrot.slane %v696_v23, 5  ;;  %v7725_v23 = vld [vmem:[#allocation2 + $0x1e8] sm:$0xf0] }
  0xb4   :  { %v2148_v49 = vpop.f32.mrf.mxu3  ;;  %v671_v43 = vsel %vm8215_vm2, %v666_v53, %v670_v36  ;;  %v6368_v36 = vld [vmem:[%s10296_s0 + $0x8] sm:$0xf] }
  0xb5   :  { %v2198_v50 = vadd.f32 %v2197_v41, %v2148_v49  ;;  %v7793_v41 = vld [vmem:[%s10295_s1 + $0x1c8] sm:$0xff]  ;;  %742 = vst [vmem:[#allocation2 + $0x1c4] sm:$0xf] %v671_v43  ;;  %v6286_v49 = vld [vmem:[%s10296_s0 + $0x1e0] sm:$0xf] }
  0xb6   :  { %v2246_v2 = vpop.f32.mrf.mxu2  ;;  %v8819_v20 = vpop.f32.mrf.mxu0  ;;  %2473 = vmatpush.bf16.msra.mxu3 %v7793_v41  ;;  %423 = vst [vmem:[#allocation2 + $0x204] sm:$0xf] %v6286_v49 }
  0xb7   :  { %v8830_v56 = vadd.f32 %v2246_v2, %v2198_v50  ;;  %v6287_v50 = vld [vmem:[%s10296_s0 + $0x1e8] sm:$0xf] }
  0xb8   :  { %v2199_v63 = vpop.f32.mrf.mxu1  ;;  %v6302_v2 = vld [vmem:[%s10296_s0 + $0x228] sm:$0xf]  ;;  %424 = vst [vmem:[#allocation2 + $0x228] sm:$0xf] %v6287_v50 }
  0xb9   :  { %456 = vst [vmem:[#allocation2 + $0x208] sm:$0xf] %v6302_v2 }
  0xbc   :  { %v2150_v16 = vpop.f32.mrf.mxu3 }
  0xbd   :  { %v2200_v24 = vadd.f32 %v2199_v63, %v2150_v16  ;;  %v6334_v63 = vld [vmem:[%s10296_s0 + $0x1e8] sm:$0xf]  ;;  %v6350_v16 = vld [vmem:[%s10296_s0 + $0x158] sm:$0xf] }
  0xbe   :  { %v2248_v25 = vpop.f32.mrf.mxu2  ;;  %v2182_v7 = vpop.f32.mrf.mxu0  ;;  %v701_v32 = vshrl.u32 %v6334_v63, 16  ;;  %v704_v9 = vshll.u32 %v6334_v63, 16  ;;  %777 = vst [vmem:[#allocation2 + $0x210] sm:$0xf] %v6350_v16  ;;  %v6352_v63 = vld [vmem:[%s10296_s0 + $0x50] sm:$0xf] }
  0xbf   :  { %v8857_v31 = vadd.f32 %v2182_v7, %v8762_v45  ;;  %v8859_v35 = vadd.f32 %v2248_v25, %v2200_v24  ;;  %v685_v45 = vsel %vm8215_vm2, %v680_v42, %v684_v40  ;;  %v710_v7 = vshll.u32 %v6335_v5, 16  ;;  %v6370_v40 = vld [vmem:[%s10296_s0 + $0x10] sm:$0xf]  ;;  %v6369_v42 = vld [vmem:[%s10296_s0 + $0xc] sm:$0x1] }
  0xc0   :  { %v2202_v12 = vpop.f32.mrf.mxu1  ;;  %743 = vst [vmem:[#allocation2 + $0x1e8] sm:$0xf] %v685_v45  ;;  %v703_v24 = vrot.slane %v701_v32, 4  ;;  %v706_v25 = vrot.slane %v704_v9, 5  ;;  %v6371_v45 = vld [vmem:[%s10296_s0 + $0x14] sm:$0x1] }
  0xc1   :  { %2299 = vmatmul.bf16.gmra.mxu3 %v6559_v17  ;;  %2348 = vmatmul.bf16.gmra.mxu0 %v6563_v18  ;;  %v6351_v17 = vld [vmem:[%s10296_s0 + $0x160] sm:$0xf]  ;;  %v712_v53 = vrot.slane %v710_v7, 5  ;;  %v859_v49 = vshrl.u32 %v6370_v40, 16  ;;  %v862_v50 = vshll.u32 %v6370_v40, 16  ;;  %v868_v32 = vshll.u32 %v6371_v45, 16 }
  0xc2   :  { %778 = vst [vmem:[#allocation2 + $0x234] sm:$0xf] %v6351_v17  ;;  %v707_v30 = vor.u32 %v706_v25, %v703_v24  ;;  %v7719_v5 = vld [vmem:[#allocation2 + $0x1bc] sm:$0xf]  ;;  %v6628_v17 = vld [vmem:[#allocation2 + $0x1dc] sm:$0xf0] }
  0xc3   :  { %2446 = vmatmul.bf16.gmra.mxu2 %v6571_v28  ;;  %2397 = vmatmul.bf16.gmra.mxu1 %v6567_v8  ;;  %v6603_v8 = vor.u32 %v7711_v11, %v6600_v4  ;;  %v861_v1 = vrot.slane %v859_v49, 4  ;;  %v864_v61 = vrot.slane %v862_v50, 5  ;;  %v7800_v11 = vld [vmem:[%s10295_s1 + $0x200] sm:$0xff]  ;;  %796 = vst [vmem:[#allocation2 + $0x1c] sm:$0xf] %v6352_v63  ;;  %v870_v16 = vrot.slane %v868_v32, 5 }
  0xc4   :  { %v2153_v47 = vpop.f32.mrf.mxu3  ;;  %v708_v41 = vrot.slane %v707_v30, 4  ;;  %2523 = vmatpush.bf16.msra.mxu0 %v7800_v11  ;;  %v6375_v49 = vld [vmem:[%s10296_s0 + $0x24] sm:$0x1]  ;;  %v6355_v32 = vld [vmem:[%s10296_s0 + $0x68] sm:$0xf] }
  0xc5   :  { %v2203_v14 = vadd.f32 %v2202_v12, %v2153_v47  ;;  %v845_v47 = vshrl.u32 %v6368_v36, 16  ;;  %v865_v4 = vor.u32 %v864_v61, %v861_v1  ;;  %799 = vst [vmem:[#allocation2 + $0x88] sm:$0xf] %v6355_v32  ;;  %v6356_v32 = vld [vmem:[%s10296_s0 + $0x70] sm:$0xf] }
  0xc6   :  { %v2251_v13 = vpop.f32.mrf.mxu2  ;;  %v2184_v48 = vpop.f32.mrf.mxu0  ;;  %800 = vst [vmem:[#allocation2 + $0xac] sm:$0xf] %v6356_v32 }
  0xc7   :  { %v8878_v51 = vadd.f32 %v2184_v48, %v8771_v59  ;;  %v8880_v54 = vadd.f32 %v2251_v13, %v2203_v14  ;;  %v6332_v59 = vld [vmem:[%s10296_s0 + $0x1e0] sm:$0xf]  ;;  %v848_v14 = vshll.u32 %v6368_v36, 16  ;;  %v713_v13 = vsel %vm8215_vm2, %v708_v41, %v712_v53  ;;  %v6372_v36 = vld [vmem:[%s10296_s0 + $0x18] sm:$0xf] }
  0xc8   :  { %v8888_v60 = vpop.f32.mrf.mxu1  ;;  %v687_v3 = vshrl.u32 %v6332_v59, 16  ;;  %v690_v6 = vshll.u32 %v6332_v59, 16  ;;  %v854_v48 = vshll.u32 %v6369_v42, 16  ;;  %745 = vst [vmem:[#allocation2 + $0x230] sm:$0xf] %v713_v13  ;;  %v847_v55 = vrot.slane %v845_v47, 4 }
  0xc9   :  { %v850_v57 = vrot.slane %v848_v14, 5  ;;  %v873_v53 = vshrl.u32 %v6372_v36, 16  ;;  %v876_v40 = vshll.u32 %v6372_v36, 16  ;;  %v6378_v36 = vld [vmem:[%s10296_s0 + $0x30] sm:$0xf] }
  0xca   :  { %v689_v18 = vrot.slane %v687_v3, 4  ;;  %v692_v19 = vrot.slane %v690_v6, 5  ;;  %v856_v6 = vrot.slane %v854_v48, 5  ;;  %v6373_v48 = vld [vmem:[%s10296_s0 + $0x1c] sm:$0x1] }
  0xcb   :  { %v851_v3 = vor.u32 %v850_v57, %v847_v55  ;;  %v875_v47 = vrot.slane %v873_v53, 4  ;;  %v878_v14 = vrot.slane %v876_v40, 5  ;;  %v896_v55 = vshll.u32 %v6375_v49, 16 }
  0xcc   :  { %v8902_v46 = vpop.f32.mrf.mxu3  ;;  %v693_v27 = vor.u32 %v692_v19, %v689_v18  ;;  %v6634_v18 = vld [vmem:[#allocation2 + $0x1c0] sm:$0xf]  ;;  %v866_v19 = vrot.slane %v865_v4, 4  ;;  %v915_v40 = vshrl.u32 %v6378_v36, 16 }
  0xcd   :  { %v898_v61 = vrot.slane %v896_v55, 5 }
  0xce   :  { %v8910_v21 = vpop.f32.mrf.mxu2  ;;  %v2187_v26 = vpop.f32.mrf.mxu0  ;;  %v694_v12 = vrot.slane %v693_v27, 4  ;;  %v871_v25 = vsel %vm8215_vm2, %v866_v19, %v870_v16  ;;  %v6636_v27 = vld [vmem:[#allocation2 + $0x1e4] sm:$0xf0] }
  0xcf   :  { %v8913_v28 = vadd.f32 %v2187_v26, %v8808_v34  ;;  %v7792_v34 = vld [vmem:[%s10295_s1 + $0x1c0] sm:$0xff]  ;;  %1085 = vst [vmem:[#allocation2 + $0x44] sm:$0xf] %v871_v25  ;;  %v6670_v19 = vld [vmem:[#allocation2 + $0x208] sm:$0xf] }
  0xd0   :  { %v2207_v37 = vpop.f32.mrf.mxu1  ;;  %v699_v43 = vsel %vm8215_vm2, %v694_v12, %v698_v29  ;;  %2474 = vmatpush.bf16.msra.mxu3 %v7792_v34  ;;  %v6672_v25 = vld [vmem:[#allocation2 + $0x22c] sm:$0xf0] }
  0xd1   :  { %2304 = vmatmul.bf16.gmra.mxu3 %v6595_v44  ;;  %2353 = vmatmul.bf16.gmra.mxu0 %v6599_v22  ;;  %744 = vst [vmem:[#allocation2 + $0x20c] sm:$0xf] %v699_v43  ;;  %v852_v44 = vrot.slane %v851_v3, 4  ;;  %v6642_v22 = vld [vmem:[#allocation2 + $0x1c8] sm:$0xf] }
  0xd2   :  { %v6643_v30 = vor.u32 %v7725_v23, %v6642_v22  ;;  %v6678_v22 = vld [vmem:[#allocation2 + $0x210] sm:$0xf]  ;;  %v7734_v23 = vld [vmem:[#allocation2 + $0x230] sm:$0xf0] }
  0xd3   :  { %2451 = vmatmul.bf16.gmra.mxu2 %v6607_v52  ;;  %2402 = vmatmul.bf16.gmra.mxu1 %v6603_v8  ;;  %v857_v24 = vsel %vm8215_vm2, %v852_v44, %v856_v6  ;;  %v7720_v52 = vld [vmem:[#allocation2 + $0x1c4] sm:$0xf]  ;;  %v6631_v8 = vor.u32 %v7719_v5, %v6628_v17  ;;  %v6354_v6 = vld [vmem:[%s10296_s0 + $0x60] sm:$0xf] }
  0xd4   :  { %v2158_v2 = vpop.f32.mrf.mxu3  ;;  %1084 = vst [vmem:[#allocation2 + $0x20] sm:$0xf] %v857_v24  ;;  %v6639_v43 = vor.u32 %v7720_v52, %v6636_v27  ;;  %v7728_v17 = vld [vmem:[#allocation2 + $0x204] sm:$0xf] }
  0xd5   :  { %v2208_v58 = vadd.f32 %v2207_v37, %v2158_v2  ;;  %v6374_v37 = vld [vmem:[%s10296_s0 + $0x20] sm:$0xf]  ;;  %v879_v2 = vor.u32 %v878_v14, %v875_v47  ;;  %798 = vst [vmem:[#allocation2 + $0x64] sm:$0xf] %v6354_v6  ;;  %v917_v14 = vrot.slane %v915_v40, 4 }
  0xd6   :  { %v2256_v33 = vpop.f32.mrf.mxu2  ;;  %v2189_v59 = vpop.f32.mrf.mxu0  ;;  %v887_v34 = vshrl.u32 %v6374_v37, 16  ;;  %v890_v41 = vshll.u32 %v6374_v37, 16 }
  0xd7   :  { %v8941_v9 = vadd.f32 %v2189_v59, %v8819_v20  ;;  %v8943_v10 = vadd.f32 %v2256_v33, %v2208_v58  ;;  %v7724_v20 = vld [vmem:[#allocation2 + $0x1e0] sm:$0xf0]  ;;  %v880_v33 = vrot.slane %v879_v2, 4 }
  0xd8   :  { %v8948_v15 = vpop.f32.mrf.mxu1  ;;  %v6635_v29 = vor.u32 %v7724_v20, %v6634_v18  ;;  %v889_v13 = vrot.slane %v887_v34, 4  ;;  %v892_v50 = vrot.slane %v890_v41, 5  ;;  %v6664_v18 = vld [vmem:[#allocation2 + $0x224] sm:$0xf0]  ;;  %v7733_v20 = vld [vmem:[#allocation2 + $0x228] sm:$0xf0] }
  0xd9   :  { %v6667_v27 = vor.u32 %v7728_v17, %v6664_v18  ;;  %v918_v34 = vshll.u32 %v6378_v36, 16  ;;  %v6382_v36 = vld [vmem:[%s10296_s0 + $0x40] sm:$0xf] }
  0xda   :  { %v893_v57 = vor.u32 %v892_v50, %v889_v13  ;;  %v7823_v13 = vld [vmem:[%s10297_s7 + $0x38] sm:$0xff]  ;;  %v943_v40 = vshrl.u32 %v6382_v36, 16 }
  0xdb   :  { %v920_v49 = vrot.slane %v918_v34, 5  ;;  %2749 = vmatpush.bf16.msra.mxu1 %v7823_v13  ;;  %v946_v34 = vshll.u32 %v6382_v36, 16  ;;  %v6381_v13 = vld [vmem:[%s10296_s0 + $0x3c] sm:$0x1]  ;;  %v6386_v36 = vld [vmem:[%s10296_s0 + $0x130] sm:$0xf] }
  0xdc   :  { %v8954_v26 = vpop.f32.mrf.mxu3  ;;  %v894_v0 = vrot.slane %v893_v57, 4 }
  0xdd   :  { %v921_v55 = vor.u32 %v920_v49, %v917_v14  ;;  %v7819_v14 = vld [vmem:[%s10297_s7 + $0x18] sm:$0xff]  ;;  %v6383_v49 = vld [vmem:[%s10296_s0 + $0x44] sm:$0x1] }
  0xde   :  { %v8956_v7 = vpop.f32.mrf.mxu2  ;;  %v2231_v12 = vpop.f32.mrf.mxu0  ;;  %v899_v44 = vsel %vm8215_vm2, %v894_v0, %v898_v61 }
  0xdf   :  { %v8965_v42 = vadd.f32 %v2231_v12, %v8857_v31  ;;  %v882_v31 = vshll.u32 %v6373_v48, 16  ;;  %1087 = vst [vmem:[#allocation2 + $0x8c] sm:$0xf] %v899_v44  ;;  %v6377_v48 = vld [vmem:[%s10296_s0 + $0x2c] sm:$0x1]  ;;  %v922_v0 = vrot.slane %v921_v55, 4 }
  0xe0   :  { %v2212_v45 = vpop.f32.mrf.mxu1 }
  0xe1   :  { %2309 = vmatmul.bf16.gmra.mxu3 %v6631_v8  ;;  %2358 = vmatmul.bf16.gmra.mxu0 %v6635_v29  ;;  %v884_v1 = vrot.slane %v882_v31, 5  ;;  %v6671_v8 = vor.u32 %v7733_v20, %v6670_v19  ;;  %v6679_v29 = vor.u32 %v7734_v23, %v6678_v22  ;;  %v910_v31 = vshll.u32 %v6377_v48, 16  ;;  %v7667_v20 = vld [vmem:[#allocation2 + $0x1c] sm:$0xf]  ;;  %v6428_v22 = vld [vmem:[#allocation2 + $0x3c] sm:$0xf0] }
  0xe2   :  { %v7821_v23 = vld [vmem:[%s10297_s7 + $0x28] sm:$0xff]  ;;  %v948_v48 = vrot.slane %v946_v34, 5  ;;  %v6978_v34 = vld [vmem:[#allocation2 + $0x10] sm:$0xf] }
  0xe3   :  { %2456 = vmatmul.bf16.gmra.mxu2 %v6643_v30  ;;  %2407 = vmatmul.bf16.gmra.mxu1 %v6639_v43  ;;  %v885_v11 = vsel %vm8215_vm2, %v880_v33, %v884_v1  ;;  %v6376_v30 = vld [vmem:[%s10296_s0 + $0x28] sm:$0xf]  ;;  %v912_v1 = vrot.slane %v910_v31, 5  ;;  %v952_v31 = vshll.u32 %v6383_v49, 16  ;;  %v6387_v49 = vld [vmem:[%s10296_s0 + $0x134] sm:$0x1] }
  0xe4   :  { %v2163_v58 = vpop.f32.mrf.mxu3  ;;  %1086 = vst [vmem:[#allocation2 + $0x68] sm:$0xf] %v885_v11  ;;  %v901_v12 = vshrl.u32 %v6376_v30, 16  ;;  %v904_v53 = vshll.u32 %v6376_v30, 16  ;;  %v6357_v11 = vld [vmem:[%s10296_s0 + $0x78] sm:$0xf] }
  0xe5   :  { %v2213_v59 = vadd.f32 %v2212_v45, %v2163_v58  ;;  %801 = vst [vmem:[#allocation2 + $0xd0] sm:$0xf] %v6357_v11  ;;  %v6380_v30 = vld [vmem:[%s10296_s0 + $0x38] sm:$0xf]  ;;  %v7676_v11 = vld [vmem:[#allocation2 + $0x64] sm:$0xf] }
  0xe6   :  { %v2261_v63 = vpop.f32.mrf.mxu2  ;;  %v2233_v3 = vpop.f32.mrf.mxu0  ;;  %v903_v45 = vrot.slane %v901_v12, 4  ;;  %v906_v47 = vrot.slane %v904_v53, 5  ;;  %v929_v12 = vshrl.u32 %v6380_v30, 16  ;;  %v932_v53 = vshll.u32 %v6380_v30, 16  ;;  %v6384_v30 = vld [vmem:[%s10296_s0 + $0x128] sm:$0xf] }
  0xe7   :  { %v8982_v4 = vadd.f32 %v2233_v3, %v8878_v51  ;;  %v8984_v5 = vadd.f32 %v2261_v63, %v2213_v59  ;;  %v7729_v51 = vld [vmem:[#allocation2 + $0x20c] sm:$0xf]  ;;  %v7822_v63 = vld [vmem:[%s10297_s7 + $0x30] sm:$0xff] }
  0xe8   :  { %v8988_v16 = vpop.f32.mrf.mxu1  ;;  %v6675_v43 = vor.u32 %v7729_v51, %v6672_v25  ;;  %v907_v2 = vor.u32 %v906_v47, %v903_v45  ;;  %2750 = vmatpush.bf16.msra.mxu1 %v7822_v63  ;;  %v6434_v51 = vld [vmem:[#allocation2 + $0x20] sm:$0xf]  ;;  %v7672_v25 = vld [vmem:[#allocation2 + $0x40] sm:$0xf0]  ;;  %v934_v45 = vrot.slane %v932_v53, 5  ;;  %v945_v47 = vrot.slane %v943_v40, 4 }
  0xe9   :  { %v960_v53 = vshll.u32 %v6384_v30, 16  ;;  %v971_v40 = vshrl.u32 %v6386_v36, 16 }
  0xea   :  { %v908_v33 = vrot.slane %v907_v2, 4  ;;  %v949_v2 = vor.u32 %v948_v48, %v945_v47  ;;  %v6385_v48 = vld [vmem:[%s10296_s0 + $0x12c] sm:$0x1] }
  0xec   :  { %v8990_v24 = vpop.f32.mrf.mxu3  ;;  %v913_v44 = vsel %vm8215_vm2, %v908_v33, %v912_v1  ;;  %2751 = vmatpush.bf16.msra.mxu1 %v7821_v23  ;;  %v7818_v1 = vld [vmem:[%s10297_s7 + $0x10] sm:$0xff]  ;;  %v7903_v23 = vld [vmem:[%s10300_s4 + $0x38] sm:$0xff] }
  0xed   :  { %1088 = vst [vmem:[#allocation2 + $0xb0] sm:$0xf] %v913_v44  ;;  %v6464_v44 = vld [vmem:[#allocation2 + $0x84] sm:$0xf0]  ;;  %5691 = vmatpush.bf16.msra.mxu2 %v7903_v23  ;;  %v7902_v23 = vld [vmem:[%s10300_s4 + $0x30] sm:$0xff] }
  0xee   :  { %v8992_v52 = vpop.f32.mrf.mxu2  ;;  %v2236_v37 = vpop.f32.mrf.mxu0 }
  0xef   :  { %v9001_v41 = vadd.f32 %v2236_v37, %v8913_v28  ;;  %v6379_v28 = vld [vmem:[%s10296_s0 + $0x34] sm:$0x1] }
  0xf0   :  { %v2217_v50 = vpop.f32.mrf.mxu1  ;;  %v924_v57 = vshll.u32 %v6379_v28, 16  ;;  %v938_v28 = vshll.u32 %v6381_v13, 16  ;;  %v962_v13 = vrot.slane %v960_v53, 5 }
  0xf1   :  { %2314 = vmatmul.bf16.gmra.mxu3 %v6667_v27  ;;  %2363 = vmatmul.bf16.gmra.mxu0 %v6671_v8  ;;  %v6431_v27 = vor.u32 %v7667_v20, %v6428_v22  ;;  %v6435_v8 = vor.u32 %v7672_v25, %v6434_v51  ;;  %v6470_v20 = vld [vmem:[#allocation2 + $0x68] sm:$0xf]  ;;  %v7681_v22 = vld [vmem:[#allocation2 + $0x88] sm:$0xf0] }
  0xf2   :  { %v926_v3 = vrot.slane %v924_v57, 5  ;;  %5692 = vmatpush.bf16.msra.mxu2 %v7902_v23 }
  0xf3   :  { %2461 = vmatmul.bf16.gmra.mxu2 %v6679_v29  ;;  %2412 = vmatmul.bf16.gmra.mxu1 %v6675_v43  ;;  %v7820_v29 = vld [vmem:[%s10297_s7 + $0x20] sm:$0xff]  ;;  %v931_v43 = vrot.slane %v929_v12, 4  ;;  %v957_v12 = vshrl.u32 %v6384_v30, 16 }
  0xf4   :  { %v2168_v58 = vpop.f32.mrf.mxu3  ;;  %v927_v19 = vsel %vm8215_vm2, %v922_v0, %v926_v3  ;;  %2752 = vmatpush.bf16.msra.mxu1 %v7820_v29  ;;  %v6358_v0 = vld [vmem:[%s10296_s0 + $0x80] sm:$0xf]  ;;  %v6359_v3 = vld [vmem:[%s10296_s0 + $0x88] sm:$0xf] }
  0xf5   :  { %v2218_v61 = vadd.f32 %v2217_v50, %v2168_v58  ;;  %1089 = vst [vmem:[#allocation2 + $0xd4] sm:$0xf] %v927_v19  ;;  %v935_v50 = vor.u32 %v934_v45, %v931_v43  ;;  %v940_v58 = vrot.slane %v938_v28, 5  ;;  %v7817_v19 = vld [vmem:[%s10297_s7 + $0x8] sm:$0xff]  ;;  %v7816_v29 = vld [vmem:[%s10297_s7] sm:$0xff]  ;;  %v974_v45 = vshll.u32 %v6386_v36, 16 }
  0xf6   :  { %v2266_v59 = vpop.f32.mrf.mxu2  ;;  %v2238_v6 = vpop.f32.mrf.mxu0  ;;  %802 = vst [vmem:[#allocation2 + $0xf4] sm:$0xf] %v6358_v0  ;;  %v7808_v43 = vld [vmem:[#allocation2 + $0x30] sm:$0xf0]  ;;  %v966_v28 = vshll.u32 %v6385_v48, 16 }
  0xf7   :  { %v9024_v17 = vadd.f32 %v2238_v6, %v8941_v9  ;;  %v9026_v18 = vadd.f32 %v2266_v59, %v2218_v61  ;;  %v936_v57 = vrot.slane %v935_v50, 4  ;;  %v950_v61 = vrot.slane %v949_v2, 4  ;;  %803 = vst [vmem:[#allocation2 + $0x118] sm:$0xf] %v6359_v3  ;;  %v6360_v0 = vld [vmem:[%s10296_s0 + $0x170] sm:$0xf] }
  0xf8   :  { %2753 = vmatpush.bf16.msra.mxu1 %v7819_v14  ;;  %v954_v59 = vrot.slane %v952_v31, 5  ;;  %v6979_v47 = vor.u32 %v7808_v43, %v6978_v34  ;;  %v959_v14 = vrot.slane %v957_v12, 4  ;;  %v973_v2 = vrot.slane %v971_v40, 4  ;;  %v6361_v3 = vld [vmem:[%s10296_s0 + $0x178] sm:$0xf] }
  0xf9   :  { %v941_v6 = vsel %vm8215_vm2, %v936_v57, %v940_v58  ;;  %v976_v31 = vrot.slane %v974_v45, 5  ;;  %804 = vst [vmem:[#allocation2 + $0x13c] sm:$0xf] %v6360_v0  ;;  %v6390_v30 = vld [vmem:[%s10296_s0 + $0x140] sm:$0xf] }
  0xfa   :  { %1090 = vst [vmem:[#allocation2 + $0xf8] sm:$0xf] %v941_v6  ;;  %v963_v50 = vor.u32 %v962_v13, %v959_v14  ;;  %v999_v53 = vshrl.u32 %v6390_v30, 16  ;;  %v6982_v34 = vld [vmem:[#allocation2 + $0x58] sm:$0xf] }
  0xfb   :  { %805 = vst [vmem:[#allocation2 + $0x160] sm:$0xf] %v6361_v3  ;;  %v7809_v43 = vld [vmem:[#allocation2 + $0x78] sm:$0xf0]  ;;  %v6391_v48 = vld [vmem:[%s10296_s0 + $0x144] sm:$0x1] }
  0xfc   :  { %v9033_v9 = vpop.f32.mrf.mxu3  ;;  %2754 = vmatpush.bf16.msra.mxu1 %v7818_v1  ;;  %v964_v58 = vrot.slane %v963_v50, 4  ;;  %v6983_v45 = vor.u32 %v7809_v43, %v6982_v34  ;;  %v6389_v13 = vld [vmem:[%s10296_s0 + $0x13c] sm:$0x1]  ;;  %v6363_v0 = vld [vmem:[%s10296_s0 + $0x188] sm:$0xf] }
  0xfd   :  { %v994_v50 = vshll.u32 %v6389_v13, 16  ;;  %807 = vst [vmem:[#allocation2 + $0x1a8] sm:$0xf] %v6363_v0  ;;  %v6986_v34 = vld [vmem:[#allocation2 + $0xa0] sm:$0xf] }
  0xfe   :  { %v2329_v37 = vpop.f32.mrf.mxu0  ;;  %v7810_v43 = vld [vmem:[#allocation2 + $0xc0] sm:$0xf0]  ;;  %v6395_v13 = vld [vmem:[%s10296_s0 + $0x154] sm:$0x1]  ;;  %v6365_v0 = vld [vmem:[%s10296_s0 + $0x198] sm:$0xf] }
  0xff   :  { %809 = vst [vmem:[#allocation2 + $0x1f0] sm:$0xf] %v6365_v0  ;;  %v6366_v0 = vld [vmem:[%s10296_s0 + $0x1a0] sm:$0xf] }
 0x100   :  { %2755 = vmatpush.bf16.msra.mxu1 %v7817_v19  ;;  %810 = vst [vmem:[#allocation2 + $0x214] sm:$0xf] %v6366_v0 }
 0x101   :  { %2475 = vmatmul.bf16.vlgmr.msra.gmra.mxu3 %v6431_v27  ;;  %2524 = vmatmul.bf16.vlgmr.msra.gmra.mxu0 %v6435_v8  ;;  %v6467_v27 = vor.u32 %v7676_v11, %v6464_v44  ;;  %v6471_v8 = vor.u32 %v7681_v22, %v6470_v20  ;;  %v6500_v44 = vld [vmem:[#allocation2 + $0xcc] sm:$0xf0]  ;;  %v7690_v22 = vld [vmem:[#allocation2 + $0xd0] sm:$0xf0] }
 0x102   :  { %v6506_v20 = vld [vmem:[#allocation2 + $0xb0] sm:$0xf] }
 0x104   :  { %v2280_v55 = vpop.f32.mrf.mxu3  ;;  %2756 = vmatpush.bf16.msra.mxu1 %v7816_v29  ;;  %v6388_v29 = vld [vmem:[%s10296_s0 + $0x138] sm:$0xf] }
 0x105   :  { %v2281_v33 = vadd.f32 %v2280_v55, %v8965_v42  ;;  %v955_v42 = vsel %vm8215_vm2, %v950_v61, %v954_v59  ;;  %v980_v55 = vshll.u32 %v6387_v49, 16  ;;  %v977_v61 = vor.u32 %v976_v31, %v973_v2 }
 0x106   :  { %v2331_v63 = vpop.f32.mrf.mxu0  ;;  %1091 = vst [vmem:[#allocation2 + $0x11c] sm:$0xf] %v955_v42  ;;  %v988_v12 = vshll.u32 %v6388_v29, 16  ;;  %v1008_v31 = vshll.u32 %v6391_v48, 16 }
 0x107   :  { %v9065_v32 = vadd.f32 %v2329_v37, %v2281_v33  ;;  %2757 = vmatmul.bf16.vlgmr.msra.gmra.mxu1 %v6979_v47  ;;  %v968_v33 = vrot.slane %v966_v28, 5  ;;  %v982_v59 = vrot.slane %v980_v55, 5  ;;  %v978_v11 = vrot.slane %v977_v61, 4 }
 0x108   :  { %v990_v14 = vrot.slane %v988_v12, 5  ;;  %v1001_v28 = vrot.slane %v999_v53, 4  ;;  %v1010_v61 = vrot.slane %v1008_v31, 5 }
 0x109   :  { %v969_v6 = vsel %vm8215_vm2, %v964_v58, %v968_v33  ;;  %v983_v19 = vsel %vm8215_vm2, %v978_v11, %v982_v59  ;;  %v996_v58 = vrot.slane %v994_v50, 5 }
 0x10a   :  { %1092 = vst [vmem:[#allocation2 + $0x140] sm:$0xf] %v969_v6 }
 0x10b   :  { %1093 = vst [vmem:[#allocation2 + $0x164] sm:$0xf] %v983_v19  ;;  %v6542_v19 = vld [vmem:[#allocation2 + $0xf8] sm:$0xf] }
 0x10c   :  { %v2282_v51 = vpop.f32.mrf.mxu3 }
 0x10d   :  { %v2283_v25 = vadd.f32 %v2282_v51, %v8982_v4 }
 0x10e   :  { %v2334_v37 = vpop.f32.mrf.mxu0 }
 0x10f   :  { %v9085_v4 = vadd.f32 %v2331_v63, %v2283_v25 }
 0x111   :  { %2480 = vmatmul.bf16.gmra.mxu3 %v6467_v27  ;;  %2529 = vmatmul.bf16.gmra.mxu0 %v6471_v8  ;;  %v6507_v8 = vor.u32 %v7690_v22, %v6506_v20  ;;  %v7699_v20 = vld [vmem:[#allocation2 + $0x118] sm:$0xf0]  ;;  %v7901_v22 = vld [vmem:[%s10300_s4 + $0x28] sm:$0xff] }
 0x112   :  { %5693 = vmatpush.bf16.msra.mxu2 %v7901_v22  ;;  %v7900_v22 = vld [vmem:[%s10300_s4 + $0x20] sm:$0xff] }
 0x114   :  { %v2285_v57 = vpop.f32.mrf.mxu3 }
 0x115   :  { %v2286_v1 = vadd.f32 %v2285_v57, %v9001_v41  ;;  %v7685_v41 = vld [vmem:[#allocation2 + $0xac] sm:$0xf] }
 0x116   :  { %v2336_v63 = vpop.f32.mrf.mxu0  ;;  %v6503_v27 = vor.u32 %v7685_v41, %v6500_v44  ;;  %v6536_v41 = vld [vmem:[#allocation2 + $0x114] sm:$0xf0]  ;;  %5694 = vmatpush.bf16.msra.mxu2 %v7900_v22 }
 0x117   :  { %v9102_v42 = vadd.f32 %v2334_v37, %v2286_v1  ;;  %v985_v37 = vshrl.u32 %v6388_v29, 16  ;;  %2762 = vmatmul.bf16.gmra.mxu1 %v6983_v45  ;;  %v6394_v29 = vld [vmem:[%s10296_s0 + $0x150] sm:$0xf] }
 0x118   :  { %v1027_v12 = vshrl.u32 %v6394_v29, 16 }
 0x119   :  { %v987_v47 = vrot.slane %v985_v37, 4 }
 0x11a   :  { %v1029_v50 = vrot.slane %v1027_v12, 4 }
 0x11b   :  { %v991_v49 = vor.u32 %v990_v14, %v987_v47  ;;  %v6393_v14 = vld [vmem:[%s10296_s0 + $0x14c] sm:$0x1] }
 0x11c   :  { %v2287_v51 = vpop.f32.mrf.mxu3 }
 0x11d   :  { %v2288_v25 = vadd.f32 %v2287_v51, %v9024_v17  ;;  %v1002_v17 = vshll.u32 %v6390_v30, 16  ;;  %v992_v57 = vrot.slane %v991_v49, 4  ;;  %v1022_v49 = vshll.u32 %v6393_v14, 16 }
 0x11e   :  { %v2339_v36 = vpop.f32.mrf.mxu0 }
 0x11f   :  { %v9116_v40 = vadd.f32 %v2336_v63, %v2288_v25  ;;  %v1004_v2 = vrot.slane %v1002_v17, 5  ;;  %v6362_v63 = vld [vmem:[%s10296_s0 + $0x180] sm:$0xf]  ;;  %v997_v3 = vsel %vm8215_vm2, %v992_v57, %v996_v58  ;;  %v6987_v17 = vor.u32 %v7810_v43, %v6986_v34 }
 0x120   :  { %806 = vst [vmem:[#allocation2 + $0x184] sm:$0xf] %v6362_v63  ;;  %v1024_v57 = vrot.slane %v1022_v49, 5  ;;  %v6364_v63 = vld [vmem:[%s10296_s0 + $0x190] sm:$0xf] }
 0x121   :  { %2485 = vmatmul.bf16.gmra.mxu3 %v6503_v27  ;;  %2534 = vmatmul.bf16.gmra.mxu0 %v6507_v8  ;;  %v1005_v1 = vor.u32 %v1004_v2, %v1001_v28  ;;  %1094 = vst [vmem:[#allocation2 + $0x188] sm:$0xf] %v997_v3  ;;  %v6543_v27 = vor.u32 %v7699_v20, %v6542_v19  ;;  %v6392_v8 = vld [vmem:[%s10296_s0 + $0x148] sm:$0xf]  ;;  %v1036_v2 = vshll.u32 %v6395_v13, 16 }
 0x122   :  { %v1016_v37 = vshll.u32 %v6392_v8, 16  ;;  %808 = vst [vmem:[#allocation2 + $0x1cc] sm:$0xf] %v6364_v63  ;;  %v6578_v19 = vld [vmem:[#allocation2 + $0x140] sm:$0xf] }
 0x123   :  { %v1006_v11 = vrot.slane %v1005_v1, 4  ;;  %v1038_v1 = vrot.slane %v1036_v2, 5  ;;  %v7708_v20 = vld [vmem:[#allocation2 + $0x160] sm:$0xf0]  ;;  %v6397_v13 = vld [vmem:[%s10296_s0 + $0x15c] sm:$0x1] }
 0x124   :  { %v2290_v55 = vpop.f32.mrf.mxu3  ;;  %v1018_v47 = vrot.slane %v1016_v37, 5 }
 0x125   :  { %v2291_v33 = vadd.f32 %v2290_v55, %v8782_v62  ;;  %v7694_v62 = vld [vmem:[#allocation2 + $0xf4] sm:$0xf]  ;;  %v1011_v44 = vsel %vm8215_vm2, %v1006_v11, %v1010_v61  ;;  %v9156_v61 = vpop.f32.mrf.mxu1 }
 0x126   :  { %v2341_v59 = vpop.f32.mrf.mxu0  ;;  %1095 = vst [vmem:[#allocation2 + $0x1ac] sm:$0xf] %v1011_v44  ;;  %v6539_v25 = vor.u32 %v7694_v62, %v6536_v41  ;;  %v7703_v62 = vld [vmem:[#allocation2 + $0x13c] sm:$0xf]  ;;  %v6572_v41 = vld [vmem:[#allocation2 + $0x15c] sm:$0xf0] }
 0x127   :  { %v9133_v6 = vadd.f32 %v2339_v36, %v2291_v33  ;;  %v1013_v36 = vshrl.u32 %v6392_v8, 16  ;;  %2767 = vmatmul.bf16.gmra.mxu1 %v6987_v17  ;;  %v6396_v8 = vld [vmem:[%s10296_s0 + $0x158] sm:$0xf] }
 0x128   :  { %v1041_v37 = vshrl.u32 %v6396_v8, 16  ;;  %v1044_v12 = vshll.u32 %v6396_v8, 16  ;;  %v6614_v22 = vld [vmem:[#allocation2 + $0x188] sm:$0xf] }
 0x129   :  { %v1015_v45 = vrot.slane %v1013_v36, 4 }
 0x12a   :  { %v1046_v14 = vrot.slane %v1044_v12, 5 }
 0x12b   :  { %v1019_v48 = vor.u32 %v1018_v47, %v1015_v45  ;;  %v1043_v47 = vrot.slane %v1041_v37, 4  ;;  %v7812_v37 = vld [vmem:[#allocation2 + $0x150] sm:$0xf0] }
 0x12c   :  { %v2292_v23 = vpop.f32.mrf.mxu3 }
 0x12d   :  { %v2293_v51 = vadd.f32 %v2292_v23, %v8810_v38  ;;  %v1030_v38 = vshll.u32 %v6394_v29, 16  ;;  %v1020_v55 = vrot.slane %v1019_v48, 4  ;;  %v6398_v29 = vld [vmem:[%s10296_s0 + $0x160] sm:$0xf]  ;;  %v6399_v48 = vld [vmem:[%s10296_s0 + $0x164] sm:$0x1]  ;;  %v1047_v49 = vor.u32 %v1046_v14, %v1043_v47  ;;  %v9219_v14 = vpop.f32.mrf.mxu2 }
 0x12e   :  { %v2344_v30 = vpop.f32.mrf.mxu0  ;;  %v1055_v34 = vshrl.u32 %v6398_v29, 16  ;;  %v1058_v17 = vshll.u32 %v6398_v29, 16  ;;  %v7721_v47 = vld [vmem:[#allocation2 + $0x1cc] sm:$0xf]  ;;  %10309 = vst [vmem:[#allocation5_spill] sm:$0xff] %v9219_v14 }
 0x12f   :  { %v9147_v53 = vadd.f32 %v2341_v59, %v2293_v51  ;;  %v1032_v28 = vrot.slane %v1030_v38, 5  ;;  %v1025_v3 = vsel %vm8215_vm2, %v1020_v55, %v1024_v57  ;;  %v7811_v38 = vld [vmem:[#allocation2 + $0x108] sm:$0xf0]  ;;  %v1048_v57 = vrot.slane %v1047_v49, 4 }
 0x130   :  { %1096 = vst [vmem:[#allocation2 + $0x1d0] sm:$0xf] %v1025_v3  ;;  %v1060_v2 = vrot.slane %v1058_v17, 5  ;;  %v6367_v3 = vld [vmem:[%s10296_s0 + $0x1a8] sm:$0xf] }
 0x131   :  { %2490 = vmatmul.bf16.gmra.mxu3 %v6539_v25  ;;  %2539 = vmatmul.bf16.gmra.mxu0 %v6543_v27  ;;  %v1033_v33 = vor.u32 %v1032_v28, %v1029_v50  ;;  %v6575_v25 = vor.u32 %v7703_v62, %v6572_v41  ;;  %v6579_v27 = vor.u32 %v7708_v20, %v6578_v19  ;;  %v1050_v50 = vshll.u32 %v6397_v13, 16  ;;  %v6608_v19 = vld [vmem:[#allocation2 + $0x1a4] sm:$0xf0]  ;;  %v6644_v13 = vld [vmem:[#allocation2 + $0x1ec] sm:$0xf0] }
 0x132   :  { %v1057_v28 = vrot.slane %v1055_v34, 4  ;;  %811 = vst [vmem:[#allocation2 + $0x238] sm:$0xf] %v6367_v3 }
 0x134   :  { %v2295_v31 = vpop.f32.mrf.mxu3 }
 0x135   :  { %v2296_v58 = vadd.f32 %v2295_v31, %v8830_v56  ;;  %v1034_v56 = vrot.slane %v1033_v33, 4  ;;  %v1064_v31 = vshll.u32 %v6399_v48, 16 }
 0x136   :  { %v2346_v59 = vpop.f32.mrf.mxu0 }
 0x137   :  { %v9166_v11 = vadd.f32 %v2344_v30, %v2296_v58  ;;  %v1039_v44 = vsel %vm8215_vm2, %v1034_v56, %v1038_v1  ;;  %v9180_v30 = vpop.f32.mrf.mxu1  ;;  %v1052_v58 = vrot.slane %v1050_v50, 5  ;;  %v1061_v1 = vor.u32 %v1060_v2, %v1057_v28  ;;  %v6650_v48 = vld [vmem:[#allocation2 + $0x1d0] sm:$0xf] }
 0x138   :  { %1097 = vst [vmem:[#allocation2 + $0x1f4] sm:$0xf] %v1039_v44  ;;  %v7712_v44 = vld [vmem:[#allocation2 + $0x184] sm:$0xf]  ;;  %v7898_v50 = vld [vmem:[%s10300_s4 + $0x10] sm:$0xff] }
 0x139   :  { %v1053_v56 = vsel %vm8215_vm2, %v1048_v57, %v1052_v58  ;;  %v1062_v41 = vrot.slane %v1061_v1, 4  ;;  %v6998_v57 = vld [vmem:[#allocation2 + $0x178] sm:$0xf]  ;;  %v7813_v58 = vld [vmem:[#allocation2 + $0x198] sm:$0xf0]  ;;  %v9228_v1 = vpop.f32.mrf.mxu2 }
 0x13a   :  { %1098 = vst [vmem:[#allocation2 + $0x218] sm:$0xf] %v1053_v56 }
 0x13c   :  { %v2297_v23 = vpop.f32.mrf.mxu3 }
 0x13d   :  { %v2298_v51 = vadd.f32 %v2297_v23, %v8859_v35  ;;  %v6990_v35 = vld [vmem:[#allocation2 + $0xe8] sm:$0xf]  ;;  %v7717_v23 = vld [vmem:[#allocation2 + $0x1a8] sm:$0xf0] }
 0x13e   :  { %v2349_v36 = vpop.f32.mrf.mxu0  ;;  %v6991_v45 = vor.u32 %v7811_v38, %v6990_v35  ;;  %v6615_v8 = vor.u32 %v7717_v23, %v6614_v22 }
 0x13f   :  { %v9182_v43 = vadd.f32 %v2346_v59, %v2298_v51  ;;  %v1066_v59 = vrot.slane %v1064_v31, 5  ;;  %v7899_v51 = vld [vmem:[%s10300_s4 + $0x18] sm:$0xff]  ;;  %v7726_v49 = vld [vmem:[#allocation2 + $0x1f0] sm:$0xf0]  ;;  %v6647_v31 = vor.u32 %v7721_v47, %v6644_v13 }
 0x140   :  { %2772 = vmatmul.bf16.gmra.mxu1 %v6991_v45  ;;  %5695 = vmatpush.bf16.msra.mxu2 %v7899_v51 }
 0x141   :  { %2495 = vmatmul.bf16.gmra.mxu3 %v6575_v25  ;;  %2544 = vmatmul.bf16.gmra.mxu0 %v6579_v27  ;;  %v1067_v20 = vsel %vm8215_vm2, %v1062_v41, %v1066_v59  ;;  %v6611_v27 = vor.u32 %v7712_v44, %v6608_v19  ;;  %v7730_v44 = vld [vmem:[#allocation2 + $0x214] sm:$0xf]  ;;  %v6680_v19 = vld [vmem:[#allocation2 + $0x234] sm:$0xf0]  ;;  %v9237_v23 = vpop.f32.mrf.mxu2 }
 0x142   :  { %1099 = vst [vmem:[#allocation2 + $0x23c] sm:$0xf] %v1067_v20  ;;  %v6686_v20 = vld [vmem:[#allocation2 + $0x218] sm:$0xf] }
 0x144   :  { %v2300_v55 = vpop.f32.mrf.mxu3  ;;  %5696 = vmatpush.bf16.msra.mxu2 %v7898_v50 }
 0x145   :  { %v2301_v33 = vadd.f32 %v2300_v55, %v8880_v54  ;;  %v9203_v54 = vpop.f32.mrf.mxu1 }
 0x146   :  { %v9191_v63 = vpop.f32.mrf.mxu0 }
 0x147   :  { %v9201_v62 = vadd.f32 %v2349_v36, %v2301_v33  ;;  %v6994_v36 = vld [vmem:[#allocation2 + $0x130] sm:$0xf]  ;;  %v6999_v33 = vor.u32 %v7813_v58, %v6998_v57 }
 0x148   :  { %v6995_v12 = vor.u32 %v7812_v37, %v6994_v36  ;;  %v2901_v36 = vld [vmem:[#allocation4 + $0xc] sm:$0x1] }
 0x149   :  { %v7735_v22 = vld [vmem:[#allocation2 + $0x238] sm:$0xf0]  ;;  %v2902_v47 = vsel %vm9248_vm7, 0, %v2901_v36 }
 0x14a   :  { %2903 = vst [vmem:[#allocation4 + $0xc] sm:$0x1] %v2902_v47 }
 0x14c   :  { %v9210_v25 = vpop.f32.mrf.mxu3 }
 0x14d   :  { %v9212_v34 = vpop.f32.mrf.mxu1 }
 0x14e   :  { %v2354_v29 = vpop.f32.mrf.mxu0 }
 0x150   :  { %2777 = vmatmul.bf16.gmra.mxu1 %v6995_v12 }
 0x151   :  { %2500 = vmatmul.bf16.gmra.mxu3 %v6611_v27  ;;  %2549 = vmatmul.bf16.gmra.mxu0 %v6615_v8  ;;  %v6683_v27 = vor.u32 %v7730_v44, %v6680_v19  ;;  %v6687_v8 = vor.u32 %v7735_v22, %v6686_v20  ;;  %v2854_v44 = vld [vmem:[#allocation4 + $0x10] sm:$0x1]  ;;  %v2904_v22 = vld [vmem:[#allocation4 + $0x14] sm:$0x1] }
 0x152   :  { %v2855_v20 = vsel %vm9241_vm6, 0, %v2854_v44  ;;  %v7908_v44 = vld [vmem:[%s10300_s4 + $0x60] sm:$0xff] }
 0x153   :  { %2856 = vst [vmem:[#allocation4 + $0x10] sm:$0x1] %v2855_v20 }
 0x154   :  { %v2305_v35 = vpop.f32.mrf.mxu3 }
 0x155   :  { %v2306_v38 = vadd.f32 %v2305_v35, %v8943_v10  ;;  %v9224_v28 = vpop.f32.mrf.mxu1  ;;  %v6651_v10 = vor.u32 %v7726_v49, %v6650_v48  ;;  %v7002_v48 = vld [vmem:[#allocation2 + $0x1c0] sm:$0xf]  ;;  %v7814_v49 = vld [vmem:[#allocation2 + $0x1e0] sm:$0xf0] }
 0x156   :  { %v9215_v17 = vpop.f32.mrf.mxu0  ;;  %v7003_v50 = vor.u32 %v7814_v49, %v7002_v48  ;;  %v7915_v48 = vld [vmem:[%s10300_s4 + $0x98] sm:$0xff] }
 0x157   :  { %v9217_v45 = vadd.f32 %v2354_v29, %v2306_v38  ;;  %v2851_v29 = vld [vmem:[#allocation4 + $0x8] sm:$0x1]  ;;  %v7919_v38 = vld [vmem:[%s10300_s4 + $0xb8] sm:$0xff] }
 0x158   :  { %v2852_v12 = vsel %vm9241_vm6, 0, %v2851_v29  ;;  %5789 = vmatpush.bf16.msrb.mxu0 %v7919_v38  ;;  %v7916_v29 = vld [vmem:[%s10300_s4 + $0xa0] sm:$0xff]  ;;  %v7909_v38 = vld [vmem:[%s10300_s4 + $0x68] sm:$0xff] }
 0x159   :  { %2853 = vst [vmem:[#allocation4 + $0x8] sm:$0x1] %v2852_v12  ;;  %v10306_v12 = vmov 0  }
 0x15a   :  { %2838 = vst [vmem:[#allocation4] sm:$0xf] %v10306_v12 }
 0x15b   :  { %2839 = vst [vmem:[#allocation4 + $0x4] sm:$0x1] %v10306_v12 }
 0x15c   :  { %v9226_v2 = vpop.f32.mrf.mxu3  ;;  %2840 = vst [vmem:[#allocation4 + $0x80] sm:$0xf] %v10306_v12 }
 0x15d   :  { %v9231_v3 = vpop.f32.mrf.mxu1  ;;  %2841 = vst [vmem:[#allocation4 + $0x84] sm:$0x1] %v10306_v12 }
 0x15e   :  { %v2359_v55 = vpop.f32.mrf.mxu0  ;;  %2843 = vst [vmem:[#allocation4 + $0x48] sm:$0xf] %v10306_v12 }
 0x15f   :  { %2844 = vst [vmem:[#allocation4 + $0x4c] sm:$0x1] %v10306_v12 }
 0x160   :  { %2782 = vmatmul.bf16.gmra.mxu1 %v6999_v33  ;;  %v7917_v33 = vld [vmem:[%s10300_s4 + $0xa8] sm:$0xff]  ;;  %2845 = vst [vmem:[#allocation4 + $0xc8] sm:$0xf] %v10306_v12 }
 0x161   :  { %2505 = vmatmul.bf16.gmra.mxu3 %v6647_v31  ;;  %2554 = vmatmul.bf16.gmra.mxu0 %v6651_v10  ;;  %v7918_v31 = vld [vmem:[%s10300_s4 + $0xb0] sm:$0xff]  ;;  %v7927_v10 = vld [vmem:[%s10300_s4 + $0xf8] sm:$0xff] }
 0x162   :  { %5790 = vmatpush.bf16.msrb.mxu0 %v7918_v31  ;;  %5838 = vmatpush.bf16.msrb.mxu1 %v7927_v10  ;;  %v2907_v31 = vld [vmem:[#allocation4 + $0x1c] sm:$0x1]  ;;  %v7924_v10 = vld [vmem:[%s10300_s4 + $0xe0] sm:$0xff] }
 0x164   :  { %v2310_v59 = vpop.f32.mrf.mxu3 }
 0x165   :  { %v2311_v0 = vadd.f32 %v2310_v59, %v8984_v5  ;;  %v9257_v13 = vpop.f32.mrf.mxu1  ;;  %v9272_v59 = vpop.f32.mrf.mxu2 }
 0x166   :  { %v9233_v56 = vpop.f32.mrf.mxu0  ;;  %5791 = vmatpush.bf16.msrb.mxu0 %v7917_v33  ;;  %v2908_v33 = vsel %vm9248_vm7, 0, %v2907_v31 }
 0x167   :  { %v9235_v41 = vadd.f32 %v2359_v55, %v2311_v0  ;;  %v7911_v55 = vld [vmem:[%s10300_s4 + $0x78] sm:$0xff]  ;;  %2909 = vst [vmem:[#allocation4 + $0x1c] sm:$0x1] %v2908_v33 }
 0x168   :  { %5740 = vmatpush.bf16.msrb.mxu3 %v7911_v55  ;;  %v2379_v55 = vadd.f32 %v9180_v30, %v9065_v32  ;;  %v7815_v32 = vld [vmem:[#allocation2 + $0x228] sm:$0xf0]  ;;  %v7914_v30 = vld [vmem:[%s10300_s4 + $0x90] sm:$0xff] }
 0x16a   :  { %5792 = vmatpush.bf16.msrb.mxu0 %v7916_v29  ;;  %v2428_v29 = vadd.f32 %v9228_v1, %v2379_v55  ;;  %v3544_v1 = vld [vmem:[#allocation4 + $0x4] sm:$0x1] }
 0x16b   :  { %v3612_v33 = vrot.slane %v3544_v1, 5 }
 0x16c   :  { %v9239_v51 = vpop.f32.mrf.mxu3 }
 0x16d   :  { %v9291_v36 = vpop.f32.mrf.mxu1  ;;  %v9323_v20 = vpop.f32.mrf.mxu2 }
 0x16e   :  { %v2364_v37 = vpop.f32.mrf.mxu0  ;;  %5793 = vmatpush.bf16.msrb.mxu0 %v7915_v48  ;;  %v3543_v48 = vld [vmem:[#allocation4] sm:$0xe] }
 0x170   :  { %2787 = vmatmul.bf16.gmra.mxu1 %v7003_v50  ;;  %v2857_v50 = vld [vmem:[#allocation4 + $0x18] sm:$0x1] }
 0x171   :  { %2510 = vmatmul.bf16.gmra.mxu3 %v6683_v27  ;;  %2559 = vmatmul.bf16.gmra.mxu0 %v6687_v8  ;;  %v2905_v27 = vsel %vm9248_vm7, 0, %v2904_v22  ;;  %v7910_v8 = vld [vmem:[%s10300_s4 + $0x70] sm:$0xff]  ;;  %v7006_v22 = vld [vmem:[#allocation2 + $0x208] sm:$0xf] }
 0x172   :  { %2906 = vst [vmem:[#allocation4 + $0x14] sm:$0x1] %v2905_v27  ;;  %5741 = vmatpush.bf16.msrb.mxu3 %v7910_v8  ;;  %v7923_v27 = vld [vmem:[%s10300_s4 + $0xd8] sm:$0xff]  ;;  %v3223_v8 = vld [vmem:[#allocation4] sm:$0xf]  ;;  %5794 = vmatpush.bf16.msrb.mxu0 %v7914_v30 }
 0x173   :  { %3239 = vst [vmem:[#allocation3] sm:$0xf] %v3223_v8  ;;  %v2860_v30 = vld [vmem:[#allocation4 + $0x20] sm:$0x1]  ;;  %v2381_v8 = vadd.f32 %v9203_v54, %v9085_v4  ;;  %v7906_v4 = vld [vmem:[%s10300_s4 + $0x50] sm:$0xff] }
 0x174   :  { %v2315_v57 = vpop.f32.mrf.mxu3 }
 0x175   :  { %v2316_v58 = vadd.f32 %v2315_v57, %v9026_v18  ;;  %v7926_v18 = vld [vmem:[%s10300_s4 + $0xf0] sm:$0xff]  ;;  %v7897_v57 = vld [vmem:[%s10300_s4 + $0x8] sm:$0xff]  ;;  %v9376_v12 = vpop.f32.mrf.mxu2 }
 0x176   :  { %v9274_v0 = vpop.f32.mrf.mxu0  ;;  %5839 = vmatpush.bf16.msrb.mxu1 %v7926_v18  ;;  %5742 = vmatpush.bf16.msrb.mxu3 %v7909_v38  ;;  %v7007_v18 = vor.u32 %v7815_v32, %v7006_v22  ;;  %v7907_v38 = vld [vmem:[%s10300_s4 + $0x58] sm:$0xff]  ;;  %v7896_v32 = vld [vmem:[%s10300_s4] sm:$0xff] }
 0x177   :  { %10314 = vst [vmem:[#allocation6_spill] sm:$0xff] %v9274_v0  ;;  %v9276_v19 = vadd.f32 %v2364_v37, %v2316_v58  ;;  %v7925_v37 = vld [vmem:[%s10300_s4 + $0xe8] sm:$0xff]  ;;  %v2858_v58 = vsel %vm9241_vm6, 0, %v2857_v50  ;;  %5697 = vmatpush.bf16.msra.mxu2 %v7897_v57  ;;  %v9341_v50 = vpop.f32.mrf.mxu1  ;;  %v10319_v0 = vmov 0  }
 0x178   :  { %2859 = vst [vmem:[#allocation4 + $0x18] sm:$0x1] %v2858_v58  ;;  %v7913_v57 = vld [vmem:[%s10300_s4 + $0x88] sm:$0xff] }
 0x179   :  { %10315 = vst [vmem:[#allocation7_spill] sm:$0xff] %v9276_v19  ;;  %5795 = vmatpush.bf16.msrb.mxu0 %v7913_v57 }
 0x17a   :  { %5840 = vmatpush.bf16.msrb.mxu1 %v7925_v37  ;;  %5743 = vmatpush.bf16.msrb.mxu3 %v7908_v44  ;;  %v9336_v37 = vld [vmem:[%s10298_s2] ss:$0 sm:$0xff]  ;;  %2846 = vst [vmem:[#allocation4 + $0xcc] sm:$0x1] %v10319_v0  ;;  %v7905_v0 = vld [vmem:[%s10300_s4 + $0x48] sm:$0xff] }
 0x17b   :  { %v3255_v44 = vld [vmem:[#allocation4] sm:$0xf]  ;;  %5698 = vmatpush.bf16.msra.mxu2 %v7896_v32 }
 0x17c   :  { %v9301_v47 = vpop.f32.mrf.mxu3  ;;  %v7912_v32 = vld [vmem:[%s10300_s4 + $0x80] sm:$0xff] }
 0x17d   :  { %10316 = vst [vmem:[#allocation8_spill] sm:$0xff] %v9301_v47  ;;  %5796 = vmatpush.bf16.msrb.mxu0 %v7912_v32 }
 0x17e   :  { %v2525_v49 = vpop.f32.mrf.mxu0  ;;  %5841 = vmatpush.bf16.msrb.mxu1 %v7924_v10  ;;  %v7040_v10 = vrot.slane %v3543_v48, 9  ;;  %5744 = vmatpush.bf16.msrb.mxu3 %v7907_v38  ;;  %v9361_v48 = vld [vmem:[%s10299_s3] ss:$0 sm:$0xff]  ;;  %v7922_v38 = vld [vmem:[%s10300_s4 + $0xd0] sm:$0xff] }
 0x180   :  { %2792 = vmatmul.bf16.gmra.mxu1 %v7007_v18  ;;  %v2910_v18 = vld [vmem:[#allocation4 + $0x24] sm:$0x1]  ;;  %v3613_v54 = vsel %vm9349_vm10, %v7040_v10, %v3612_v33  ;;  %v7921_v33 = vld [vmem:[%s10300_s4 + $0xc8] sm:$0xff] }
 0x181   :  { %v2911_v1 = vsel %vm9248_vm7, 0, %v2910_v18  ;;  %v3256_v18 = vld [vmem:[#allocation4 + $0x4] sm:$0x1]  ;;  %3690 = vst [vmem:[#allocation3 + $0x8] sm:$0xf] %v3613_v54 }
 0x182   :  { %5842 = vmatpush.bf16.msrb.mxu1 %v7923_v27  ;;  %v3288_v27 = vshrl.u32 %v3255_v44, 16  ;;  %2912 = vst [vmem:[#allocation4 + $0x24] sm:$0x1] %v2911_v1  ;;  %5745 = vmatpush.bf16.msrb.mxu3 %v7906_v4  ;;  %v2913_v54 = vld [vmem:[#allocation4 + $0x2c] sm:$0x1] }
 0x184   :  { %v2476_v31 = vpop.f32.mrf.mxu3 }
 0x185   :  { %v2477_v55 = vadd.f32 %v2476_v31, %v2428_v29  ;;  %v2861_v31 = vsel %vm9241_vm6, 0, %v2860_v30 }
 0x186   :  { %v2527_v22 = vpop.f32.mrf.mxu0  ;;  %2862 = vst [vmem:[#allocation4 + $0x20] sm:$0x1] %v2861_v31  ;;  %5843 = vmatpush.bf16.msrb.mxu1 %v7922_v38  ;;  %v2430_v31 = vadd.f32 %v9237_v23, %v2381_v8  ;;  %v2384_v23 = vadd.f32 %v9212_v34, %v9102_v42  ;;  %v9392_v8 = vpop.f32.mrf.mxu1  ;;  %5746 = vmatpush.bf16.msrb.mxu3 %v7905_v0  ;;  %v7920_v42 = vld [vmem:[%s10300_s4 + $0xc0] sm:$0xff] }
 0x187   :  { %v2526_v29 = vadd.f32 %v2525_v49, %v2477_v55  ;;  %v3290_v49 = vrot.slane %v3288_v27, 4  ;;  %v3291_v55 = vshll.u32 %v3255_v44, 16  ;;  %v3297_v44 = vshll.u32 %v3256_v18, 16 }
 0x189   :  { %v2569_v30 = vmul.f32 %v9336_v37, %v2526_v29  ;;  %v3293_v57 = vrot.slane %v3291_v55, 5  ;;  %v3299_v4 = vrot.slane %v3297_v44, 5 }
 0x18a   :  { %5844 = vmatpush.bf16.msrb.mxu1 %v7921_v33 }
 0x18b   :  { %v2589_v10 = vadd.f32 %v9361_v48, %v2569_v30  ;;  %v3294_v29 = vor.u32 %v3293_v57, %v3290_v49  ;;  %v2863_v30 = vld [vmem:[#allocation4 + $0x28] sm:$0x1]  ;;  %v2914_v49 = vsel %vm9248_vm7, 0, %v2913_v54 }
 0x18c   :  { %v2478_v27 = vpop.f32.mrf.mxu3  ;;  %v2864_v19 = vsel %vm9241_vm6, 0, %v2863_v30  ;;  %2915 = vst [vmem:[#allocation4 + $0x2c] sm:$0x1] %v2914_v49 }
 0x18d   :  { %v2605_v1 = vmax.f32 %v2589_v10, 0.0  ;;  %v2479_v38 = vadd.f32 %v2478_v27, %v2430_v31  ;;  %v3295_v18 = vrot.slane %v3294_v29, 4  ;;  %2865 = vst [vmem:[#allocation4 + $0x28] sm:$0x1] %v2864_v19  ;;  %v2433_v19 = vadd.f32 %v9272_v59, %v2384_v23  ;;  %v9409_v27 = vpop.f32.mrf.mxu2  ;;  %v3130_v29 = vld [vmem:[#allocation4 + $0xc] sm:$0x1] }
 0x18e   :  { %v2530_v55 = vpop.f32.mrf.mxu0  ;;  %5845 = vmatpush.bf16.msrb.mxu1 %v7920_v42  ;;  %v2386_v59 = vadd.f32 %v9224_v28, %v9116_v40 }
 0x18f   :  { %v2949_v32 = vpack.c.bf16 %v2605_v1, %v2605_v1  ;;  %v2528_v47 = vadd.f32 %v2527_v22, %v2479_v38  ;;  %v3300_v34 = vsel %vm8215_vm2, %v3295_v18, %v3299_v4  ;;  %v7904_v22 = vld [vmem:[%s10300_s4 + $0x40] sm:$0xff] }
 0x190   :  { %3527 = vst [vmem:[#allocation3 + $0x4] sm:$0xf] %v3300_v34  ;;  %5747 = vmatpush.bf16.msrb.mxu3 %v7904_v22  ;;  %v2866_v34 = vld [vmem:[#allocation4 + $0x30] sm:$0x1] }
 0x191   :  { %v2966_v57 = vshrl.u32 %v2949_v32, 16  ;;  %v2570_v31 = vmul.f32 %v9336_v37, %v2528_v47  ;;  %v2969_v33 = vshll.u32 %v2949_v32, 16  ;;  %v3127_v47 = vld [vmem:[#allocation4 + $0x8] sm:$0xf]  ;;  %v2867_v22 = vsel %vm9241_vm6, 0, %v2866_v34 }
 0x192   :  { %2868 = vst [vmem:[#allocation4 + $0x30] sm:$0x1] %v2867_v22 }
 0x193   :  { %v2968_v10 = vrot.slane %v2966_v57, 7  ;;  %v2590_v44 = vadd.f32 %v9361_v48, %v2570_v31  ;;  %v2916_v57 = vld [vmem:[#allocation4 + $0x34] sm:$0x1]  ;;  %v9422_v31 = vpop.f32.mrf.mxu1 }
 0x194   :  { %v2481_v1 = vpop.f32.mrf.mxu3  ;;  %v2917_v40 = vsel %vm9248_vm7, 0, %v2916_v57 }
 0x195   :  { %v2971_v38 = vor.u32 %v2969_v33, %v2968_v10  ;;  %v2972_v4 = vrot.slane %v2968_v10, 4  ;;  %v2606_v30 = vmax.f32 %v2590_v44, 0.0  ;;  %v2482_v54 = vadd.f32 %v2481_v1, %v2433_v19  ;;  %v7935_v10 = vld [vmem:[%s10300_s4 + $0x138] sm:$0xff]  ;;  %2918 = vst [vmem:[#allocation4 + $0x34] sm:$0x1] %v2917_v40 }
 0x196   :  { %v2532_v23 = vpop.f32.mrf.mxu0  ;;  %5887 = vmatpush.bf16.msrb.mxu2 %v7935_v10  ;;  %v3136_v1 = vld [vmem:[#allocation4 + $0x14] sm:$0x1] }
 0x197   :  { %v3128_v18 = vsel %vm9412_vm12, %v2971_v38, %v3127_v47  ;;  %v3131_v32 = vsel %vm9241_vm6, %v2972_v4, %v3130_v29  ;;  %v2950_v49 = vpack.c.bf16 %v2606_v30, %v2606_v30  ;;  %v2531_v42 = vadd.f32 %v2530_v55, %v2482_v54  ;;  %v3133_v29 = vld [vmem:[#allocation4 + $0x10] sm:$0xf] }
 0x198   :  { %3129 = vst [vmem:[#allocation4 + $0x8] sm:$0xf] %v3128_v18  ;;  %v2435_v55 = vadd.f32 %v9323_v20, %v2386_v59 }
 0x199   :  { %3132 = vst [vmem:[#allocation4 + $0xc] sm:$0x1] %v3131_v32  ;;  %v2974_v28 = vshrl.u32 %v2950_v49, 16  ;;  %v2571_v19 = vmul.f32 %v9336_v37, %v2531_v42  ;;  %v2977_v44 = vshll.u32 %v2950_v49, 16  ;;  %v2389_v32 = vadd.f32 %v9231_v3, %v9133_v6  ;;  %v9436_v42 = vpop.f32.mrf.mxu2 }
 0x19b   :  { %v2976_v33 = vrot.slane %v2974_v28, 7  ;;  %v2591_v47 = vadd.f32 %v9361_v48, %v2571_v19  ;;  %v2438_v3 = vadd.f32 %v9376_v12, %v2389_v32 }
 0x19c   :  { %v2483_v38 = vpop.f32.mrf.mxu3 }
 0x19d   :  { %v2979_v4 = vor.u32 %v2977_v44, %v2976_v33  ;;  %v2980_v30 = vrot.slane %v2976_v33, 4  ;;  %v2607_v54 = vmax.f32 %v2591_v47, 0.0  ;;  %v2484_v18 = vadd.f32 %v2483_v38, %v2435_v55  ;;  %v9444_v55 = vpop.f32.mrf.mxu1  ;;  %v3139_v33 = vld [vmem:[#allocation4 + $0x18] sm:$0xf]  ;;  %v3142_v38 = vld [vmem:[#allocation4 + $0x1c] sm:$0x1] }
 0x19e   :  { %v2535_v34 = vpop.f32.mrf.mxu0 }
 0x19f   :  { %v3257_v20 = vld [vmem:[#allocation4 + $0x8] sm:$0xf]  ;;  %v3134_v59 = vsel %vm9412_vm12, %v2979_v4, %v3133_v29  ;;  %v3137_v49 = vsel %vm9241_vm6, %v2980_v30, %v3136_v1  ;;  %v2951_v57 = vpack.c.bf16 %v2607_v54, %v2607_v54  ;;  %v2533_v22 = vadd.f32 %v2532_v23, %v2484_v18 }
 0x1a0   :  { %v3224_v40 = vld [vmem:[#allocation4 + $0x8] sm:$0xf]  ;;  %3135 = vst [vmem:[#allocation4 + $0x10] sm:$0xf] %v3134_v59  ;;  %v3546_v19 = vld [vmem:[#allocation4 + $0xc] sm:$0x1] }
 0x1a1   :  { %v3545_v28 = vld [vmem:[#allocation4 + $0x8] sm:$0xe]  ;;  %3138 = vst [vmem:[#allocation4 + $0x14] sm:$0x1] %v3137_v49  ;;  %v2982_v10 = vshrl.u32 %v2951_v57, 16  ;;  %v2572_v6 = vmul.f32 %v9336_v37, %v2533_v22  ;;  %v3616_v47 = vrot.slane %v3546_v19, 5 }
 0x1a2   :  { %3240 = vst [vmem:[#allocation3 + $0x24] sm:$0xf] %v3224_v40  ;;  %v7041_v44 = vrot.slane %v3545_v28, 9  ;;  %v2985_v1 = vshll.u32 %v2951_v57, 16  ;;  %v3302_v4 = vshrl.u32 %v3257_v20, 16  ;;  %v3305_v49 = vshll.u32 %v3257_v20, 16 }
 0x1a3   :  { %v2984_v29 = vrot.slane %v2982_v10, 7  ;;  %v2592_v23 = vadd.f32 %v9361_v48, %v2572_v6  ;;  %v3706_v18 = vld [vmem:[#allocation4 + $0x8] sm:$0xf]  ;;  %v3258_v59 = vld [vmem:[#allocation4 + $0xc] sm:$0x1]  ;;  %v2391_v57 = vadd.f32 %v9257_v13, %v9147_v53 }
 0x1a4   :  { %v2486_v30 = vpop.f32.mrf.mxu3  ;;  %v3617_v54 = vsel %vm9349_vm10, %v7041_v44, %v3616_v47  ;;  %v2869_v40 = vld [vmem:[#allocation4 + $0x38] sm:$0x1]  ;;  %3722 = vst [vmem:[#allocation3 + $0xc] sm:$0xf] %v3706_v18  ;;  %v3304_v19 = vrot.slane %v3302_v4, 4  ;;  %v3307_v10 = vrot.slane %v3305_v49, 5 }
 0x1a5   :  { %v2987_v12 = vor.u32 %v2985_v1, %v2984_v29  ;;  %v2988_v32 = vrot.slane %v2984_v29, 4  ;;  %v2608_v22 = vmax.f32 %v2592_v23, 0.0  ;;  %v2487_v14 = vadd.f32 %v2486_v30, %v2438_v3  ;;  %3691 = vst [vmem:[#allocation3 + $0x2c] sm:$0xf] %v3617_v54  ;;  %v7090_v1 = vld [vmem:[#allocation3] sm:$0xf]  ;;  %v9455_v23 = vpop.f32.mrf.mxu2 }
 0x1a6   :  { %v2537_v28 = vpop.f32.mrf.mxu0  ;;  %v3311_v6 = vshll.u32 %v3258_v59, 16  ;;  %v3308_v30 = vor.u32 %v3307_v10, %v3304_v19  ;;  %v2870_v13 = vsel %vm9241_vm6, 0, %v2869_v40  ;;  %v2919_v4 = vld [vmem:[#allocation4 + $0x3c] sm:$0x1]  ;;  %v3145_v49 = vld [vmem:[#allocation4 + $0x20] sm:$0xf]  ;;  %v2440_v19 = vadd.f32 %v9409_v27, %v2391_v57 }
 0x1a7   :  { %v3140_v44 = vsel %vm9412_vm12, %v2987_v12, %v3139_v33  ;;  %v3143_v20 = vsel %vm9241_vm6, %v2988_v32, %v3142_v38  ;;  %v2952_v47 = vpack.c.bf16 %v2608_v22, %v2608_v22  ;;  %v2536_v29 = vadd.f32 %v2535_v34, %v2487_v14  ;;  %v3707_v3 = vld [vmem:[#allocation4 + $0x10] sm:$0xf]  ;;  %v7098_v38 = vld [vmem:[#allocation3 + $0x8] sm:$0xf]  ;;  %v3148_v14 = vld [vmem:[#allocation4 + $0x24] sm:$0x1] }
 0x1a8   :  { %3141 = vst [vmem:[#allocation4 + $0x18] sm:$0xf] %v3140_v44  ;;  %v3313_v53 = vrot.slane %v3311_v6, 5  ;;  %v3309_v12 = vrot.slane %v3308_v30, 4  ;;  %v2920_v32 = vsel %vm9248_vm7, 0, %v2919_v4  ;;  %v7934_v6 = vld [vmem:[%s10300_s4 + $0x130] sm:$0xff] }
 0x1a9   :  { %3144 = vst [vmem:[#allocation4 + $0x1c] sm:$0x1] %v3143_v20  ;;  %v2990_v54 = vshrl.u32 %v2952_v47, 16  ;;  %v2993_v18 = vshll.u32 %v2952_v47, 16  ;;  %v2573_v33 = vmul.f32 %v9336_v37, %v2536_v29  ;;  %v7828_v59 = vld [vmem:[#allocation3 + $0x20] sm:$0xf0]  ;;  %v9467_v20 = vpop.f32.mrf.mxu1  ;;  %5888 = vmatpush.bf16.msrb.mxu2 %v7934_v6 }
 0x1aa   :  { %v7091_v34 = vor.u32 %v7828_v59, %v7090_v1  ;;  %3723 = vst [vmem:[#allocation3 + $0x30] sm:$0xf] %v3707_v3  ;;  %v3225_v22 = vld [vmem:[#allocation4 + $0x10] sm:$0xf]  ;;  %v2872_v44 = vld [vmem:[#allocation4 + $0x40] sm:$0x1]  ;;  %v3314_v1 = vsel %vm8215_vm2, %v3309_v12, %v3313_v53 }
 0x1ab   :  { %v2992_v40 = vrot.slane %v2990_v54, 7  ;;  %v2593_v10 = vadd.f32 %v9361_v48, %v2573_v33  ;;  %2871 = vst [vmem:[#allocation4 + $0x38] sm:$0x1] %v2870_v13  ;;  %v2873_v27 = vsel %vm9241_vm6, 0, %v2872_v44  ;;  %v2922_v33 = vld [vmem:[#allocation4 + $0x44] sm:$0x1] }
 0x1ac   :  { %5699 = vmatmul.bf16.vlgmr.msra.gmra.mxu2 %v7091_v34  ;;  %v2488_v47 = vpop.f32.mrf.mxu3  ;;  %v7829_v29 = vld [vmem:[#allocation3 + $0x28] sm:$0xf0]  ;;  %2921 = vst [vmem:[#allocation4 + $0x3c] sm:$0x1] %v2920_v32  ;;  %v3151_v6 = vld [vmem:[#allocation4 + $0x28] sm:$0xf] }
 0x1ad   :  { %v2995_v57 = vor.u32 %v2993_v18, %v2992_v40  ;;  %v2996_v3 = vrot.slane %v2992_v40, 4  ;;  %v2609_v30 = vmax.f32 %v2593_v10, 0.0  ;;  %v2489_v13 = vadd.f32 %v2488_v47, %v2440_v19  ;;  %3528 = vst [vmem:[#allocation3 + $0x28] sm:$0xf] %v3314_v1  ;;  %v7825_v32 = vld [vmem:[#allocation3 + $0xc] sm:$0xf] }
 0x1ae   :  { %v7099_v4 = vor.u32 %v7829_v29, %v7098_v38  ;;  %v2540_v54 = vpop.f32.mrf.mxu0  ;;  %3241 = vst [vmem:[#allocation3 + $0x48] sm:$0xf] %v3225_v22  ;;  %v3547_v18 = vld [vmem:[#allocation4 + $0x10] sm:$0xe]  ;;  %v2394_v19 = vadd.f32 %v9291_v36, %v9166_v11  ;;  %v7824_v38 = vld [vmem:[#allocation3 + $0x4] sm:$0xf] }
 0x1af   :  { %v3146_v59 = vsel %vm9412_vm12, %v2995_v57, %v3145_v49  ;;  %v3149_v53 = vsel %vm9241_vm6, %v2996_v3, %v3148_v14  ;;  %v2953_v34 = vpack.c.bf16 %v2609_v30, %v2609_v30  ;;  %v2538_v12 = vadd.f32 %v2537_v28, %v2489_v13  ;;  %v3226_v44 = vld [vmem:[#allocation4 + $0x18] sm:$0xf]  ;;  %2874 = vst [vmem:[#allocation4 + $0x40] sm:$0x1] %v2873_v27  ;;  %v3548_v40 = vld [vmem:[#allocation4 + $0x14] sm:$0x1]  ;;  %v9482_v28 = vpop.f32.mrf.mxu2 }
 0x1b0   :  { %3147 = vst [vmem:[#allocation4 + $0x20] sm:$0xf] %v3146_v59  ;;  %5797 = vmatmul.bf16.vlgmr.msrb.gmra.mxu0 %v7099_v4  ;;  %v2923_v22 = vsel %vm9248_vm7, 0, %v2922_v33  ;;  %v3154_v47 = vld [vmem:[#allocation4 + $0x2c] sm:$0x1]  ;;  %v7042_v11 = vrot.slane %v3547_v18, 9  ;;  %v2205_v30 = vadd.f32 %v8888_v60, %v8902_v46  ;;  %v2443_v13 = vadd.f32 %v9436_v42, %v2394_v19 }
 0x1b1   :  { %3150 = vst [vmem:[#allocation4 + $0x24] sm:$0x1] %v3149_v53  ;;  %v2998_v49 = vshrl.u32 %v2953_v34, 16  ;;  %v2574_v14 = vmul.f32 %v9336_v37, %v2538_v12  ;;  %v7100_v10 = vld [vmem:[#allocation3 + $0x2c] sm:$0xf0]  ;;  %v3001_v27 = vshll.u32 %v2953_v34, 16  ;;  %v2396_v4 = vadd.f32 %v9341_v50, %v9182_v43 }
 0x1b2   :  { %v7103_v29 = vor.u32 %v7825_v32, %v7100_v10  ;;  %3242 = vst [vmem:[#allocation3 + $0x6c] sm:$0xf] %v3226_v44  ;;  %v3549_v1 = vld [vmem:[#allocation4 + $0x18] sm:$0xe]  ;;  %v3620_v3 = vrot.slane %v3548_v40, 5 }
 0x1b3   :  { %v3000_v36 = vrot.slane %v2998_v49, 7  ;;  %v2594_v57 = vadd.f32 %v9361_v48, %v2574_v14  ;;  %2924 = vst [vmem:[#allocation4 + $0x44] sm:$0x1] %v2923_v22  ;;  %v3550_v53 = vld [vmem:[#allocation4 + $0x1c] sm:$0x1]  ;;  %v7043_v12 = vrot.slane %v3549_v1, 9  ;;  %v9490_v22 = vpop.f32.mrf.mxu1 }
 0x1b4   :  { %5846 = vmatmul.bf16.vlgmr.msrb.gmra.mxu1 %v7103_v29  ;;  %v7092_v33 = vld [vmem:[#allocation3 + $0x24] sm:$0xf0]  ;;  %v2491_v59 = vpop.f32.mrf.mxu3  ;;  %v3708_v49 = vld [vmem:[#allocation4 + $0x18] sm:$0xf]  ;;  %v3621_v60 = vsel %vm9349_vm10, %v7042_v11, %v3620_v3  ;;  %v3624_v46 = vrot.slane %v3550_v53, 5  ;;  %v2254_v29 = vadd.f32 %v8910_v21, %v2205_v30 }
 0x1b5   :  { %v3003_v32 = vor.u32 %v3001_v27, %v3000_v36  ;;  %v3004_v44 = vrot.slane %v3000_v36, 4  ;;  %v2610_v34 = vmax.f32 %v2594_v57, 0.0  ;;  %v7095_v18 = vor.u32 %v7824_v38, %v7092_v33  ;;  %3724 = vst [vmem:[#allocation3 + $0x54] sm:$0xf] %v3708_v49  ;;  %v7126_v19 = vld [vmem:[#allocation3 + $0x48] sm:$0xf] }
 0x1b6   :  { %v2492_v40 = vadd.f32 %v2491_v59, %v2443_v13  ;;  %v2542_v14 = vpop.f32.mrf.mxu0  ;;  %3692 = vst [vmem:[#allocation3 + $0x50] sm:$0xf] %v3621_v60  ;;  %v3259_v10 = vld [vmem:[#allocation4 + $0x10] sm:$0xf]  ;;  %v3625_v11 = vsel %vm9349_vm10, %v7043_v12, %v3624_v46  ;;  %v3260_v36 = vld [vmem:[#allocation4 + $0x14] sm:$0x1]  ;;  %v2399_v13 = vadd.f32 %v9392_v8, %v9201_v62  ;;  %v2303_v21 = vadd.f32 %v9210_v25, %v2254_v29 }
 0x1b7   :  { %v3152_v43 = vsel %vm9412_vm12, %v3003_v32, %v3151_v6  ;;  %v3155_v50 = vsel %vm9241_vm6, %v3004_v44, %v3154_v47  ;;  %v2954_v42 = vpack.c.bf16 %v2610_v34, %v2610_v34  ;;  %5748 = vmatmul.bf16.vlgmr.msrb.gmra.mxu3 %v7095_v18  ;;  %v3709_v38 = vld [vmem:[#allocation4 + $0x20] sm:$0xf]  ;;  %v3261_v27 = vld [vmem:[#allocation4 + $0x18] sm:$0xf]  ;;  %v9503_v6 = vadd.f32 %v8948_v15, %v8954_v26  ;;  %v3262_v59 = vld [vmem:[#allocation4 + $0x1c] sm:$0x1] }
 0x1b8   :  { %3153 = vst [vmem:[#allocation4 + $0x28] sm:$0xf] %v3152_v43  ;;  %v2541_v1 = vadd.f32 %v2540_v54, %v2492_v40  ;;  %v2445_v47 = vadd.f32 %v9455_v23, %v2396_v4  ;;  %v3157_v54 = vld [vmem:[#allocation4 + $0x30] sm:$0xf]  ;;  %v3316_v15 = vshrl.u32 %v3259_v10, 16  ;;  %v3319_v26 = vshll.u32 %v3259_v10, 16  ;;  %v9510_v23 = vpop.f32.mrf.mxu2 }
 0x1b9   :  { %3156 = vst [vmem:[#allocation4 + $0x2c] sm:$0x1] %v3155_v50  ;;  %v3006_v57 = vshrl.u32 %v2954_v42, 16  ;;  %v7837_v3 = vld [vmem:[#allocation3 + $0x68] sm:$0xf0]  ;;  %v3009_v12 = vshll.u32 %v2954_v42, 16 }
 0x1ba   :  { %v2575_v30 = vmul.f32 %v9336_v37, %v2541_v1  ;;  %v7127_v33 = vor.u32 %v7837_v3, %v7126_v19  ;;  %3693 = vst [vmem:[#allocation3 + $0x74] sm:$0xf] %v3625_v11  ;;  %v3160_v4 = vld [vmem:[#allocation4 + $0x34] sm:$0x1]  ;;  %v3325_v8 = vshll.u32 %v3260_v36, 16  ;;  %v3330_v25 = vshrl.u32 %v3261_v27, 16 }
 0x1bb   :  { %v3008_v53 = vrot.slane %v3006_v57, 7  ;;  %3725 = vst [vmem:[#allocation3 + $0x78] sm:$0xf] %v3709_v38  ;;  %v3333_v44 = vshll.u32 %v3261_v27, 16  ;;  %v7933_v34 = vld [vmem:[%s10300_s4 + $0x128] sm:$0xff]  ;;  %v3318_v60 = vrot.slane %v3316_v15, 4  ;;  %v2448_v27 = vadd.f32 %v9482_v28, %v2399_v13 }
 0x1bc   :  { %v2595_v32 = vadd.f32 %v9361_v48, %v2575_v30  ;;  %5704 = vmatmul.bf16.gmra.mxu2 %v7127_v33  ;;  %v2493_v62 = vpop.f32.mrf.mxu3  ;;  %v2875_v46 = vld [vmem:[#allocation4 + $0x88] sm:$0x1]  ;;  %v3321_v42 = vrot.slane %v3319_v26, 5  ;;  %v3332_v19 = vrot.slane %v3330_v25, 4  ;;  %v3339_v38 = vshll.u32 %v3262_v59, 16 }
 0x1bd   :  { %v3011_v18 = vor.u32 %v3009_v12, %v3008_v53  ;;  %v3012_v49 = vrot.slane %v3008_v53, 4  ;;  %v2494_v40 = vadd.f32 %v2493_v62, %v2445_v47  ;;  %v2925_v10 = vld [vmem:[#allocation4 + $0x8c] sm:$0x1]  ;;  %5889 = vmatpush.bf16.msrb.mxu2 %v7933_v34  ;;  %v3335_v36 = vrot.slane %v3333_v44, 5  ;;  %v9523_v47 = vpop.f32.mrf.mxu1  ;;  %v7134_v3 = vld [vmem:[#allocation3 + $0x50] sm:$0xf] }
 0x1be   :  { %v2611_v43 = vmax.f32 %v2595_v32, 0.0  ;;  %v9516_v50 = vpop.f32.mrf.mxu0  ;;  %v7834_v30 = vld [vmem:[#allocation3 + $0x54] sm:$0xf]  ;;  %v3322_v33 = vor.u32 %v3321_v42, %v3318_v60  ;;  %v2876_v59 = vsel %vm9241_vm6, 0, %v2875_v46  ;;  %v3327_v12 = vrot.slane %v3325_v8, 5 }
 0x1bf   :  { %v3158_v29 = vsel %vm9412_vm12, %v3011_v18, %v3157_v54  ;;  %v3161_v1 = vsel %vm9241_vm6, %v3012_v49, %v3160_v4  ;;  %v2543_v11 = vadd.f32 %v2542_v14, %v2494_v40  ;;  %v3336_v15 = vor.u32 %v3335_v36, %v3332_v19  ;;  %v3227_v62 = vld [vmem:[#allocation4 + $0x20] sm:$0xf]  ;;  %v3163_v25 = vld [vmem:[#allocation4 + $0x38] sm:$0xf]  ;;  %v3166_v44 = vld [vmem:[#allocation4 + $0x3c] sm:$0x1] }
 0x1c0   :  { %3159 = vst [vmem:[#allocation4 + $0x30] sm:$0xf] %v3158_v29  ;;  %v2955_v57 = vpack.c.bf16 %v2611_v43, %v2611_v43  ;;  %v2926_v14 = vsel %vm9248_vm7, 0, %v2925_v10  ;;  %v2352_v28 = vadd.f32 %v9191_v63, %v2303_v21  ;;  %v3323_v32 = vrot.slane %v3322_v33, 4  ;;  %v3228_v8 = vld [vmem:[#allocation4 + $0x28] sm:$0xf] }
 0x1c1   :  { %3162 = vst [vmem:[#allocation4 + $0x34] sm:$0x1] %v3161_v1  ;;  %v2576_v54 = vmul.f32 %v9336_v37, %v2543_v11  ;;  %v7838_v53 = vld [vmem:[#allocation3 + $0x70] sm:$0xf0]  ;;  %v3337_v49 = vrot.slane %v3336_v15, 4  ;;  %v3341_v40 = vrot.slane %v3339_v38, 5 }
 0x1c2   :  { %v3014_v13 = vshrl.u32 %v2955_v57, 16  ;;  %v7135_v26 = vor.u32 %v7838_v53, %v7134_v3  ;;  %v7136_v4 = vld [vmem:[#allocation3 + $0x74] sm:$0xf0]  ;;  %2877 = vst [vmem:[#allocation4 + $0x88] sm:$0x1] %v2876_v59  ;;  %v3017_v43 = vshll.u32 %v2955_v57, 16  ;;  %v3328_v63 = vsel %vm8215_vm2, %v3323_v32, %v3327_v12  ;;  %v9537_v57 = vpop.f32.mrf.mxu2 }
 0x1c3   :  { %v2596_v34 = vadd.f32 %v9361_v48, %v2576_v54  ;;  %v7139_v18 = vor.u32 %v7834_v30, %v7136_v4  ;;  %v2878_v60 = vld [vmem:[#allocation4 + $0x90] sm:$0x1]  ;;  %2927 = vst [vmem:[#allocation4 + $0x8c] sm:$0x1] %v2926_v14  ;;  %v2928_v42 = vld [vmem:[#allocation4 + $0x94] sm:$0x1]  ;;  %v3342_v29 = vsel %vm8215_vm2, %v3337_v49, %v3341_v40  ;;  %v2401_v36 = vadd.f32 %v9422_v31, %v2352_v28 }
 0x1c4   :  { %v3016_v46 = vrot.slane %v3014_v13, 7  ;;  %5802 = vmatmul.bf16.gmra.mxu0 %v7135_v26  ;;  %v2496_v21 = vpop.f32.mrf.mxu3  ;;  %v3551_v19 = vld [vmem:[#allocation4 + $0x20] sm:$0xe]  ;;  %3529 = vst [vmem:[#allocation3 + $0x4c] sm:$0xf] %v3328_v63  ;;  %v2259_v53 = vadd.f32 %v8956_v7, %v9503_v6  ;;  %v2879_v13 = vsel %vm9241_vm6, 0, %v2878_v60 }
 0x1c5   :  { %v2612_v10 = vmax.f32 %v2596_v34, 0.0  ;;  %5851 = vmatmul.bf16.gmra.mxu1 %v7139_v18  ;;  %v2497_v38 = vadd.f32 %v2496_v21, %v2448_v27  ;;  %v3552_v1 = vld [vmem:[#allocation4 + $0x24] sm:$0x1]  ;;  %v7044_v11 = vrot.slane %v3551_v19, 9  ;;  %3530 = vst [vmem:[#allocation3 + $0x70] sm:$0xf] %v3342_v29 }
 0x1c6   :  { %v3019_v3 = vor.u32 %v3017_v43, %v3016_v46  ;;  %v3020_v30 = vrot.slane %v3016_v46, 4  ;;  %v2547_v33 = vpop.f32.mrf.mxu0  ;;  %v3553_v59 = vld [vmem:[#allocation4 + $0x28] sm:$0xe]  ;;  %v3628_v54 = vrot.slane %v3552_v1, 5  ;;  %3243 = vst [vmem:[#allocation3 + $0x90] sm:$0xf] %v3227_v62  ;;  %v2308_v32 = vadd.f32 %v9226_v2, %v2259_v53  ;;  %v9553_v62 = vpop.f32.mrf.mxu1 }
 0x1c7   :  { %v2956_v12 = vpack.c.bf16 %v2612_v10, %v2612_v10  ;;  %v2546_v15 = vadd.f32 %v9516_v50, %v2497_v38  ;;  %v3554_v27 = vld [vmem:[#allocation4 + $0x2c] sm:$0x1]  ;;  %v7045_v14 = vrot.slane %v3553_v59, 9  ;;  %3244 = vst [vmem:[#allocation3 + $0xb4] sm:$0xf] %v3228_v8  ;;  %v2929_v6 = vsel %vm9248_vm7, 0, %v2928_v42 }
 0x1c8   :  { %v3164_v31 = vsel %vm9412_vm12, %v3019_v3, %v3163_v25  ;;  %v3167_v28 = vsel %vm9241_vm6, %v3020_v30, %v3166_v44  ;;  %v3632_v26 = vrot.slane %v3554_v27, 5  ;;  %v2450_v50 = vadd.f32 %v9510_v23, %v2401_v36  ;;  %v3169_v44 = vld [vmem:[#allocation4 + $0x40] sm:$0xf]  ;;  %v3172_v34 = vld [vmem:[#allocation4 + $0x44] sm:$0x1] }
 0x1c9   :  { %3165 = vst [vmem:[#allocation4 + $0x38] sm:$0xf] %v3164_v31  ;;  %v3022_v4 = vshrl.u32 %v2956_v12, 16  ;;  %v2577_v7 = vmul.f32 %v9336_v37, %v2546_v15  ;;  %v3025_v25 = vshll.u32 %v2956_v12, 16  ;;  %v3629_v18 = vsel %vm9349_vm10, %v7044_v11, %v3628_v54  ;;  %v3263_v49 = vld [vmem:[#allocation4 + $0x20] sm:$0xf] }
 0x1ca   :  { %3168 = vst [vmem:[#allocation4 + $0x3c] sm:$0x1] %v3167_v28  ;;  %v3633_v60 = vsel %vm9349_vm10, %v7045_v14, %v3632_v26  ;;  %v3710_v23 = vld [vmem:[#allocation4 + $0x28] sm:$0xf]  ;;  %v3344_v46 = vshrl.u32 %v3263_v49, 16  ;;  %v2404_v38 = vadd.f32 %v9444_v55, %v9217_v45  ;;  %v2357_v1 = vadd.f32 %v9215_v17, %v2308_v32  ;;  %v9567_v14 = vpop.f32.mrf.mxu2  ;;  %v7932_v28 = vld [vmem:[%s10300_s4 + $0x120] sm:$0xff] }
 0x1cb   :  { %v3024_v40 = vrot.slane %v3022_v4, 7  ;;  %v2597_v8 = vadd.f32 %v9361_v48, %v2577_v7  ;;  %2880 = vst [vmem:[#allocation4 + $0x90] sm:$0x1] %v2879_v13  ;;  %v7833_v2 = vld [vmem:[#allocation3 + $0x4c] sm:$0xf]  ;;  %v3347_v55 = vshll.u32 %v3263_v49, 16  ;;  %5890 = vmatpush.bf16.msrb.mxu2 %v7932_v28 }
 0x1cc   :  { %v2498_v43 = vpop.f32.mrf.mxu3  ;;  %2930 = vst [vmem:[#allocation4 + $0x94] sm:$0x1] %v2929_v6  ;;  %v3264_v63 = vld [vmem:[#allocation4 + $0x24] sm:$0x1]  ;;  %v7128_v19 = vld [vmem:[#allocation3 + $0x6c] sm:$0xf0] }
 0x1cd   :  { %v3027_v21 = vor.u32 %v3025_v25, %v3024_v40  ;;  %v3028_v42 = vrot.slane %v3024_v40, 4  ;;  %v2613_v10 = vmax.f32 %v2597_v8, 0.0  ;;  %v2499_v29 = vadd.f32 %v2498_v43, %v2450_v50  ;;  %3694 = vst [vmem:[#allocation3 + $0x98] sm:$0xf] %v3629_v18  ;;  %v3711_v3 = vld [vmem:[#allocation4 + $0x30] sm:$0xf] }
 0x1ce   :  { %v7131_v11 = vor.u32 %v7833_v2, %v7128_v19  ;;  %3695 = vst [vmem:[#allocation3 + $0xbc] sm:$0xf] %v3633_v60  ;;  %v2550_v36 = vpop.f32.mrf.mxu0  ;;  %v3265_v30 = vld [vmem:[#allocation4 + $0x28] sm:$0xf]  ;;  %v7162_v12 = vld [vmem:[#allocation3 + $0x90] sm:$0xf]  ;;  %v2453_v40 = vadd.f32 %v9537_v57, %v2404_v38  ;;  %v2406_v8 = vadd.f32 %v9467_v20, %v2357_v1  ;;  %v9578_v60 = vpop.f32.mrf.mxu1 }
 0x1cf   :  { %v3170_v59 = vsel %vm9412_vm12, %v3027_v21, %v3169_v44  ;;  %v3173_v54 = vsel %vm9241_vm6, %v3028_v42, %v3172_v34  ;;  %v2957_v53 = vpack.c.bf16 %v2613_v10, %v2613_v10  ;;  %v7846_v15 = vld [vmem:[#allocation3 + $0xb0] sm:$0xf0]  ;;  %v2548_v27 = vadd.f32 %v2547_v33, %v2499_v29  ;;  %3726 = vst [vmem:[#allocation3 + $0x9c] sm:$0xf] %v3710_v23  ;;  %v3175_v6 = vld [vmem:[#allocation4 + $0x88] sm:$0xf] }
 0x1d0   :  { %3171 = vst [vmem:[#allocation4 + $0x40] sm:$0xf] %v3170_v59  ;;  %5753 = vmatmul.bf16.gmra.mxu3 %v7131_v11  ;;  %v7163_v17 = vor.u32 %v7846_v15, %v7162_v12  ;;  %v3346_v45 = vrot.slane %v3344_v46, 4  ;;  %v3353_v31 = vshll.u32 %v3264_v63, 16  ;;  %v3358_v4 = vshrl.u32 %v3265_v30, 16 }
 0x1d1   :  { %3174 = vst [vmem:[#allocation4 + $0x44] sm:$0x1] %v3173_v54  ;;  %v3030_v13 = vshrl.u32 %v2957_v53, 16  ;;  %v2578_v26 = vmul.f32 %v9336_v37, %v2548_v27  ;;  %v2215_v33 = vadd.f32 %v8988_v16, %v8990_v24  ;;  %v3033_v7 = vshll.u32 %v2957_v53, 16  ;;  %v3178_v50 = vld [vmem:[#allocation4 + $0x8c] sm:$0x1] }
 0x1d2   :  { %5709 = vmatmul.bf16.gmra.mxu2 %v7163_v17  ;;  %3727 = vst [vmem:[#allocation3 + $0xc0] sm:$0xf] %v3711_v3  ;;  %v3349_v32 = vrot.slane %v3347_v55, 5  ;;  %v3266_v34 = vld [vmem:[#allocation4 + $0x2c] sm:$0x1]  ;;  %v3360_v18 = vrot.slane %v3358_v4, 4  ;;  %v2457_v28 = vpop.f32.mrf.mxu2 }
 0x1d3   :  { %v3032_v25 = vrot.slane %v3030_v13, 7  ;;  %v2598_v44 = vadd.f32 %v9361_v48, %v2578_v26  ;;  %v3361_v49 = vshll.u32 %v3265_v30, 16  ;;  %v3355_v23 = vrot.slane %v3353_v31, 5  ;;  %v2881_v2 = vld [vmem:[#allocation4 + $0x98] sm:$0x1] }
 0x1d4   :  { %v7170_v16 = vld [vmem:[#allocation3 + $0x98] sm:$0xf]  ;;  %v3350_v24 = vor.u32 %v3349_v32, %v3346_v45  ;;  %v2501_v46 = vpop.f32.mrf.mxu3  ;;  %v3367_v11 = vshll.u32 %v3266_v34, 16  ;;  %v2931_v30 = vld [vmem:[#allocation4 + $0x9c] sm:$0x1]  ;;  %v2882_v12 = vsel %vm9241_vm6, 0, %v2881_v2  ;;  %v2264_v27 = vadd.f32 %v8992_v52, %v2215_v33 }
 0x1d5   :  { %v3035_v43 = vor.u32 %v3033_v7, %v3032_v25  ;;  %v3036_v63 = vrot.slane %v3032_v25, 4  ;;  %v2614_v21 = vmax.f32 %v2598_v44, 0.0  ;;  %v7847_v42 = vld [vmem:[#allocation3 + $0xb8] sm:$0xf0]  ;;  %v3363_v19 = vrot.slane %v3361_v49, 5 }
 0x1d6   :  { %v7171_v10 = vor.u32 %v7847_v42, %v7170_v16  ;;  %v3351_v29 = vrot.slane %v3350_v24, 4  ;;  %v2502_v3 = vadd.f32 %v2501_v46, %v2453_v40  ;;  %v7843_v59 = vld [vmem:[#allocation3 + $0x9c] sm:$0xf]  ;;  %v2552_v15 = vpop.f32.mrf.mxu0  ;;  %v2932_v55 = vsel %vm9248_vm7, 0, %v2931_v30  ;;  %v3229_v31 = vld [vmem:[#allocation4 + $0x30] sm:$0xf]  ;;  %v9596_v40 = vpop.f32.mrf.mxu1 }
 0x1d7   :  { %v3176_v20 = vsel %vm9412_vm12, %v3035_v43, %v3175_v6  ;;  %v3179_v57 = vsel %vm9241_vm6, %v3036_v63, %v3178_v50  ;;  %v2958_v38 = vpack.c.bf16 %v2614_v21, %v2614_v21  ;;  %v3364_v1 = vor.u32 %v3363_v19, %v3360_v18  ;;  %v3181_v13 = vld [vmem:[#allocation4 + $0x90] sm:$0xf]  ;;  %v3184_v26 = vld [vmem:[#allocation4 + $0x94] sm:$0x1]  ;;  %v3230_v50 = vld [vmem:[#allocation4 + $0x38] sm:$0xf] }
 0x1d8   :  { %3177 = vst [vmem:[#allocation4 + $0x88] sm:$0xf] %v3176_v20  ;;  %5807 = vmatmul.bf16.gmra.mxu0 %v7171_v10  ;;  %v3356_v54 = vsel %vm8215_vm2, %v3351_v29, %v3355_v23  ;;  %v2551_v53 = vadd.f32 %v2550_v36, %v2502_v3  ;;  %v3369_v6 = vrot.slane %v3367_v11, 5  ;;  %v2884_v32 = vld [vmem:[#allocation4 + $0xa0] sm:$0x1]  ;;  %v2455_v52 = vadd.f32 %v9567_v14, %v2406_v8 }
 0x1d9   :  { %3180 = vst [vmem:[#allocation4 + $0x8c] sm:$0x1] %v3179_v57  ;;  %v3038_v17 = vshrl.u32 %v2958_v38, 16  ;;  %v7172_v45 = vld [vmem:[#allocation3 + $0xbc] sm:$0xf0]  ;;  %v3365_v7 = vrot.slane %v3364_v1, 4  ;;  %v2409_v33 = vadd.f32 %v9490_v22, %v9235_v41  ;;  %v2313_v49 = vadd.f32 %v9239_v51, %v2264_v27 }
 0x1da   :  { %v7175_v4 = vor.u32 %v7843_v59, %v7172_v45  ;;  %3531 = vst [vmem:[#allocation3 + $0x94] sm:$0xf] %v3356_v54  ;;  %v2579_v36 = vmul.f32 %v9336_v37, %v2551_v53  ;;  %v3555_v25 = vld [vmem:[#allocation4 + $0x30] sm:$0xe]  ;;  %v3041_v34 = vshll.u32 %v2958_v38, 16  ;;  %v2885_v10 = vsel %vm9241_vm6, 0, %v2884_v32 }
 0x1db   :  { %v3040_v44 = vrot.slane %v3038_v17, 7  ;;  %2883 = vst [vmem:[#allocation4 + $0x98] sm:$0x1] %v2882_v12  ;;  %v3556_v18 = vld [vmem:[#allocation4 + $0x34] sm:$0x1]  ;;  %v3370_v37 = vsel %vm8215_vm2, %v3365_v7, %v3369_v6  ;;  %v7046_v2 = vrot.slane %v3555_v25, 9  ;;  %v2362_v59 = vadd.f32 %v9233_v56, %v2313_v49 }
 0x1dc   :  { %5856 = vmatmul.bf16.gmra.mxu1 %v7175_v4  ;;  %v2599_v16 = vadd.f32 %v9361_v48, %v2579_v36  ;;  %2933 = vst [vmem:[#allocation4 + $0x9c] sm:$0x1] %v2932_v55  ;;  %v2503_v24 = vpop.f32.mrf.mxu3  ;;  %v3557_v14 = vld [vmem:[#allocation4 + $0x38] sm:$0xe]  ;;  %v3558_v8 = vld [vmem:[#allocation4 + $0x3c] sm:$0x1]  ;;  %v2458_v55 = vadd.f32 %v2457_v28, %v2409_v33  ;;  %v2220_v6 = vadd.f32 %v9156_v61, %v9033_v9  ;;  %v2459_v36 = vpop.f32.mrf.mxu2 }
 0x1dd   :  { %v3043_v23 = vor.u32 %v3041_v34, %v3040_v44  ;;  %v3044_v41 = vrot.slane %v3040_v44, 4  ;;  %3532 = vst [vmem:[#allocation3 + $0xb8] sm:$0xf] %v3370_v37  ;;  %v2504_v22 = vadd.f32 %v2503_v24, %v2455_v52  ;;  %v2934_v46 = vld [vmem:[#allocation4 + $0xa4] sm:$0x1]  ;;  %v3636_v51 = vrot.slane %v3556_v18, 5 }
 0x1de   :  { %v2615_v43 = vmax.f32 %v2599_v16, 0.0  ;;  %3245 = vst [vmem:[#allocation3 + $0xd8] sm:$0xf] %v3229_v31  ;;  %v7047_v63 = vrot.slane %v3557_v14, 9  ;;  %v3640_v21 = vrot.slane %v3558_v8, 5  ;;  %v2935_v11 = vsel %vm9248_vm7, 0, %v2934_v46  ;;  %v2555_v27 = vpop.f32.mrf.mxu0  ;;  %v9629_v37 = vpop.f32.mrf.mxu1 }
 0x1df   :  { %v3182_v42 = vsel %vm9412_vm12, %v3043_v23, %v3181_v13  ;;  %v3185_v48 = vsel %vm9241_vm6, %v3044_v41, %v3184_v26  ;;  %3246 = vst [vmem:[#allocation3 + $0xfc] sm:$0xf] %v3230_v50  ;;  %v2553_v19 = vadd.f32 %v2552_v15, %v2504_v22  ;;  %v3267_v3 = vld [vmem:[#allocation4 + $0x30] sm:$0xf]  ;;  %v9612_v30 = vld [vmem:[%s10298_s2] ss:$0 sm:$0xff]  ;;  %v3637_v57 = vsel %vm9349_vm10, %v7046_v2, %v3636_v51 }
 0x1e0   :  { %3183 = vst [vmem:[#allocation4 + $0x90] sm:$0xf] %v3182_v42  ;;  %v2959_v29 = vpack.c.bf16 %v2615_v43, %v2615_v43  ;;  %v3712_v38 = vld [vmem:[#allocation4 + $0x38] sm:$0xf]  ;;  %v3268_v1 = vld [vmem:[#allocation4 + $0x34] sm:$0x1]  ;;  %v3641_v15 = vsel %vm9349_vm10, %v7047_v63, %v3640_v21  ;;  %v2411_v49 = vadd.f32 %v9523_v47, %v2362_v59 }
 0x1e1   :  { %3186 = vst [vmem:[#allocation4 + $0x94] sm:$0x1] %v3185_v48  ;;  %v2580_v20 = vmul.f32 %v9612_v30, %v2553_v19  ;;  %v7842_v54 = vld [vmem:[#allocation3 + $0x94] sm:$0xf]  ;;  %v3713_v17 = vld [vmem:[#allocation4 + $0x40] sm:$0xf] }
 0x1e2   :  { %v3046_v53 = vshrl.u32 %v2959_v29, 16  ;;  %v3049_v12 = vshll.u32 %v2959_v29, 16  ;;  %2886 = vst [vmem:[#allocation4 + $0xa0] sm:$0x1] %v2885_v10  ;;  %v3269_v45 = vld [vmem:[#allocation4 + $0x38] sm:$0xf] }
 0x1e3   :  { %v3187_v31 = vld [vmem:[#allocation4 + $0x98] sm:$0xf]  ;;  %v3190_v13 = vld [vmem:[#allocation4 + $0x9c] sm:$0x1]  ;;  %v9623_v26 = vld [vmem:[%s10299_s3] ss:$0 sm:$0xff] }
 0x1e4   :  { %v2600_v56 = vadd.f32 %v9623_v26, %v2580_v20  ;;  %2936 = vst [vmem:[#allocation4 + $0xa4] sm:$0x1] %v2935_v11  ;;  %v3372_v4 = vshrl.u32 %v3267_v3, 16  ;;  %v3375_v7 = vshll.u32 %v3267_v3, 16  ;;  %v7164_v50 = vld [vmem:[#allocation3 + $0xb4] sm:$0xf0]  ;;  %v2506_v25 = vpop.f32.mrf.mxu3  ;;  %v2460_v11 = vadd.f32 %v2459_v36, %v2411_v49 }
 0x1e5   :  { %v3048_v32 = vrot.slane %v3046_v53, 7  ;;  %3696 = vst [vmem:[#allocation3 + $0xe0] sm:$0xf] %v3637_v57  ;;  %v3381_v28 = vshll.u32 %v3268_v1, 16  ;;  %v7167_v52 = vor.u32 %v7842_v54, %v7164_v50  ;;  %v7198_v33 = vld [vmem:[#allocation3 + $0xd8] sm:$0xf]  ;;  %v2507_v18 = vadd.f32 %v2506_v25, %v2458_v55 }
 0x1e6   :  { %v2616_v44 = vmax.f32 %v2600_v56, 0.0  ;;  %3697 = vst [vmem:[#allocation3 + $0x104] sm:$0xf] %v3641_v15  ;;  %v3374_v34 = vrot.slane %v3372_v4, 4  ;;  %v7855_v14 = vld [vmem:[#allocation3 + $0xf8] sm:$0xf0] }
 0x1e7   :  { %v3051_v16 = vor.u32 %v3049_v12, %v3048_v32  ;;  %v3052_v24 = vrot.slane %v3048_v32, 4  ;;  %3728 = vst [vmem:[#allocation3 + $0xe4] sm:$0xf] %v3712_v38  ;;  %v3377_v9 = vrot.slane %v3375_v7, 5  ;;  %5758 = vmatmul.bf16.gmra.mxu3 %v7167_v52  ;;  %v7199_v61 = vor.u32 %v7855_v14, %v7198_v33  ;;  %v3270_v47 = vld [vmem:[#allocation4 + $0x3c] sm:$0x1] }
 0x1e8   :  { %v2960_v8 = vpack.c.bf16 %v2616_v44, %v2616_v44  ;;  %3729 = vst [vmem:[#allocation3 + $0x108] sm:$0xf] %v3713_v17  ;;  %v3383_v23 = vrot.slane %v3381_v28, 5  ;;  %v3386_v41 = vshrl.u32 %v3269_v45, 16  ;;  %v3389_v43 = vshll.u32 %v3269_v45, 16  ;;  %v7931_v63 = vld [vmem:[%s10300_s4 + $0x118] sm:$0xff] }
 0x1e9   :  { %v3188_v22 = vsel %vm9412_vm12, %v3051_v16, %v3187_v31  ;;  %v3191_v46 = vsel %vm9241_vm6, %v3052_v24, %v3190_v13  ;;  %v3378_v2 = vor.u32 %v3377_v9, %v3374_v34  ;;  %v2887_v51 = vld [vmem:[#allocation4 + $0xa8] sm:$0x1]  ;;  %5714 = vmatmul.bf16.gmra.mxu2 %v7199_v61  ;;  %v2556_v48 = vadd.f32 %v2555_v27, %v2507_v18  ;;  %v2937_v19 = vld [vmem:[#allocation4 + $0xac] sm:$0x1]  ;;  %v10322_v10 = vld [vmem:[#allocation5_spill] sm:$0xff]  ;;  %v2557_v13 = vpop.f32.mrf.mxu0  ;;  %v9654_v61 = vpop.f32.mrf.mxu1 }
 0x1ea   :  { %3189 = vst [vmem:[#allocation4 + $0x98] sm:$0xf] %v3188_v22  ;;  %v3054_v21 = vshrl.u32 %v2960_v8, 16  ;;  %v3057_v42 = vshll.u32 %v2960_v8, 16  ;;  %v2269_v29 = vadd.f32 %v10322_v10, %v2220_v6  ;;  %v3193_v3 = vld [vmem:[#allocation4 + $0xa0] sm:$0xf]  ;;  %5891 = vmatpush.bf16.msrb.mxu2 %v7931_v63 }
 0x1eb   :  { %3192 = vst [vmem:[#allocation4 + $0x9c] sm:$0x1] %v3191_v46  ;;  %v3379_v20 = vrot.slane %v3378_v2, 4  ;;  %v3388_v57 = vrot.slane %v3386_v41, 4  ;;  %v3196_v1 = vld [vmem:[#allocation4 + $0xa4] sm:$0x1]  ;;  %v2581_v53 = vmul.f32 %v9612_v30, %v2556_v48 }
 0x1ec   :  { %v3056_v38 = vrot.slane %v3054_v21, 7  ;;  %v3391_v59 = vrot.slane %v3389_v43, 5  ;;  %v3395_v54 = vshll.u32 %v3270_v47, 16  ;;  %v10323_v12 = vld [vmem:[#allocation7_spill] sm:$0xff]  ;;  %v7206_v17 = vld [vmem:[#allocation3 + $0xe0] sm:$0xf]  ;;  %v2508_v56 = vpop.f32.mrf.mxu3 }
 0x1ed   :  { %v2414_v15 = vadd.f32 %v9553_v62, %v10323_v12  ;;  %v7856_v27 = vld [vmem:[#allocation3 + $0x100] sm:$0xf0]  ;;  %v3384_v45 = vsel %vm8215_vm2, %v3379_v20, %v3383_v23  ;;  %v2888_v55 = vsel %vm9241_vm6, 0, %v2887_v51  ;;  %v2938_v31 = vsel %vm9248_vm7, 0, %v2937_v19  ;;  %v2462_v62 = vpop.f32.mrf.mxu2  ;;  %v10324_v32 = vld [vmem:[#allocation8_spill] sm:$0xff]  ;;  %v10325_v48 = vld [vmem:[#allocation6_spill] sm:$0xff] }
 0x1ee   :  { %v3059_v4 = vor.u32 %v3057_v42, %v3056_v38  ;;  %v3060_v7 = vrot.slane %v3056_v38, 4  ;;  %v7207_v6 = vor.u32 %v7856_v27, %v7206_v17  ;;  %v7852_v36 = vld [vmem:[#allocation3 + $0xe4] sm:$0xf]  ;;  %v3392_v50 = vor.u32 %v3391_v59, %v3388_v57  ;;  %3533 = vst [vmem:[#allocation3 + $0xdc] sm:$0xf] %v3384_v45 }
 0x1ef   :  { %v2318_v28 = vadd.f32 %v10324_v32, %v2269_v29  ;;  %v7208_v25 = vld [vmem:[#allocation3 + $0x104] sm:$0xf0]  ;;  %v3397_v52 = vrot.slane %v3395_v54, 5  ;;  %v2601_v33 = vadd.f32 %v9623_v26, %v2581_v53  ;;  %2889 = vst [vmem:[#allocation4 + $0xa8] sm:$0x1] %v2888_v55  ;;  %v2509_v34 = vadd.f32 %v2508_v56, %v2460_v11  ;;  %v7930_v32 = vld [vmem:[%s10300_s4 + $0x110] sm:$0xff] }
 0x1f0   :  { %v3231_v44 = vld [vmem:[#allocation4 + $0x80] sm:$0xf]  ;;  %v3194_v18 = vsel %vm9412_vm12, %v3059_v4, %v3193_v3  ;;  %v3197_v49 = vsel %vm9241_vm6, %v3060_v7, %v3196_v1  ;;  %5812 = vmatmul.bf16.gmra.mxu0 %v7207_v6  ;;  %v7211_v16 = vor.u32 %v7852_v36, %v7208_v25  ;;  %v3393_v24 = vrot.slane %v3392_v50, 4  ;;  %2939 = vst [vmem:[#allocation4 + $0xac] sm:$0x1] %v2938_v31 }
 0x1f1   :  { %v3232_v14 = vld [vmem:[#allocation4 + $0x88] sm:$0xf]  ;;  %v2890_v9 = vld [vmem:[#allocation4 + $0xb0] sm:$0x1]  ;;  %3195 = vst [vmem:[#allocation4 + $0xa0] sm:$0xf] %v3194_v18  ;;  %v2558_v23 = vadd.f32 %v2557_v13, %v2509_v34  ;;  %v2463_v42 = vadd.f32 %v2462_v62, %v2414_v15  ;;  %v2367_v19 = vadd.f32 %v10325_v48, %v2318_v28  ;;  %v2560_v45 = vpop.f32.mrf.mxu0  ;;  %5892 = vmatpush.bf16.msrb.mxu2 %v7930_v32 }
 0x1f2   :  { %v2617_v8 = vmax.f32 %v2601_v33, 0.0  ;;  %v2940_v41 = vld [vmem:[#allocation4 + $0xb4] sm:$0x1]  ;;  %3198 = vst [vmem:[#allocation4 + $0xa4] sm:$0x1] %v3197_v49  ;;  %5861 = vmatmul.bf16.gmra.mxu1 %v7211_v16  ;;  %v3398_v22 = vsel %vm8215_vm2, %v3393_v24, %v3397_v52  ;;  %v2891_v46 = vsel %vm9241_vm6, 0, %v2890_v9  ;;  %v9674_v52 = vpop.f32.mrf.mxu1 }
 0x1f3   :  { %v2941_v47 = vsel %vm9248_vm7, 0, %v2940_v41  ;;  %v3559_v2 = vld [vmem:[#allocation4 + $0x80] sm:$0xe]  ;;  %3534 = vst [vmem:[#allocation3 + $0x100] sm:$0xf] %v3398_v22  ;;  %v2582_v51 = vmul.f32 %v9612_v30, %v2558_v23  ;;  %v2416_v55 = vadd.f32 %v9578_v60, %v2367_v19 }
 0x1f4   :  { %v2961_v43 = vpack.c.bf16 %v2617_v8, %v2617_v8  ;;  %v3560_v63 = vld [vmem:[#allocation4 + $0x84] sm:$0x1]  ;;  %v3561_v21 = vld [vmem:[#allocation4 + $0x88] sm:$0xe]  ;;  %3247 = vst [vmem:[#allocation3 + $0x120] sm:$0xf] %v3231_v44  ;;  %v2511_v38 = vpop.f32.mrf.mxu3 }
 0x1f5   :  { %v3562_v10 = vld [vmem:[#allocation4 + $0x8c] sm:$0x1]  ;;  %v7048_v29 = vrot.slane %v3559_v2, 9  ;;  %v3644_v11 = vrot.slane %v3560_v63, 5  ;;  %3248 = vst [vmem:[#allocation3 + $0x144] sm:$0xf] %v3232_v14  ;;  %v2602_v57 = vadd.f32 %v9623_v26, %v2582_v51  ;;  %v2512_v12 = vadd.f32 %v2511_v38, %v2463_v42  ;;  %v2464_v7 = vpop.f32.mrf.mxu2 }
 0x1f6   :  { %v3062_v3 = vshrl.u32 %v2961_v43, 16  ;;  %v3065_v20 = vshll.u32 %v2961_v43, 16  ;;  %v3199_v1 = vld [vmem:[#allocation4 + $0xa8] sm:$0xf]  ;;  %2892 = vst [vmem:[#allocation4 + $0xb0] sm:$0x1] %v2891_v46  ;;  %v2465_v24 = vadd.f32 %v2464_v7, %v2416_v55 }
 0x1f7   :  { %v3645_v59 = vsel %vm9349_vm10, %v7048_v29, %v3644_v11  ;;  %v7049_v54 = vrot.slane %v3561_v21, 9  ;;  %v3648_v53 = vrot.slane %v3562_v10, 5  ;;  %v3202_v17 = vld [vmem:[#allocation4 + $0xac] sm:$0x1]  ;;  %v2618_v27 = vmax.f32 %v2602_v57, 0.0 }
 0x1f8   :  { %v3064_v15 = vrot.slane %v3062_v3, 7  ;;  %2942 = vst [vmem:[#allocation4 + $0xb4] sm:$0x1] %v2941_v47  ;;  %v3714_v13 = vld [vmem:[#allocation4 + $0x88] sm:$0xf]  ;;  %v2561_v4 = vadd.f32 %v2560_v45, %v2512_v12 }
 0x1f9   :  { %v3649_v31 = vsel %vm9349_vm10, %v7049_v54, %v3648_v53  ;;  %3698 = vst [vmem:[#allocation3 + $0x128] sm:$0xf] %v3645_v59  ;;  %v3715_v56 = vld [vmem:[#allocation4 + $0x90] sm:$0xf]  ;;  %v2962_v50 = vpack.c.bf16 %v2618_v27, %v2618_v27  ;;  %v3271_v62 = vld [vmem:[#allocation4 + $0x80] sm:$0xf]  ;;  %v2562_v27 = vpop.f32.mrf.mxu0 }
 0x1fa   :  { %v3067_v6 = vor.u32 %v3065_v20, %v3064_v15  ;;  %v3068_v36 = vrot.slane %v3064_v15, 4  ;;  %3699 = vst [vmem:[#allocation3 + $0x14c] sm:$0xf] %v3649_v31  ;;  %v7851_v28 = vld [vmem:[#allocation3 + $0xdc] sm:$0xf]  ;;  %v2583_v60 = vmul.f32 %v9612_v30, %v2561_v4  ;;  %v3400_v8 = vshrl.u32 %v3271_v62, 16 }
 0x1fb   :  { %v7200_v25 = vld [vmem:[#allocation3 + $0xfc] sm:$0xf0]  ;;  %3730 = vst [vmem:[#allocation3 + $0x12c] sm:$0xf] %v3714_v13  ;;  %v3070_v49 = vshrl.u32 %v2962_v50, 16  ;;  %v3073_v9 = vshll.u32 %v2962_v50, 16 }
 0x1fc   :  { %v7203_v33 = vor.u32 %v7851_v28, %v7200_v25  ;;  %v3200_v44 = vsel %vm9412_vm12, %v3067_v6, %v3199_v1  ;;  %v3203_v34 = vsel %vm9241_vm6, %v3068_v36, %v3202_v17  ;;  %v7234_v18 = vld [vmem:[#allocation3 + $0x120] sm:$0xf]  ;;  %3731 = vst [vmem:[#allocation3 + $0x150] sm:$0xf] %v3715_v56  ;;  %v3272_v16 = vld [vmem:[#allocation4 + $0x84] sm:$0x1]  ;;  %v2513_v47 = vpop.f32.mrf.mxu3  ;;  %v2603_v63 = vadd.f32 %v9623_v26, %v2583_v60  ;;  %v9690_v28 = vpop.f32.mrf.mxu1 }
 0x1fd   :  { %3201 = vst [vmem:[#allocation4 + $0xa8] sm:$0xf] %v3200_v44  ;;  %v7864_v14 = vld [vmem:[#allocation3 + $0x140] sm:$0xf0]  ;;  %v3072_v41 = vrot.slane %v3070_v49, 7  ;;  %v3403_v46 = vshll.u32 %v3271_v62, 16  ;;  %v2514_v21 = vadd.f32 %v2513_v47, %v2465_v24 }
 0x1fe   :  { %5763 = vmatmul.bf16.gmra.mxu3 %v7203_v33  ;;  %3204 = vst [vmem:[#allocation4 + $0xac] sm:$0x1] %v3203_v34  ;;  %v7235_v23 = vor.u32 %v7864_v14, %v7234_v18  ;;  %v3205_v22 = vld [vmem:[#allocation4 + $0xb0] sm:$0xf]  ;;  %v3273_v43 = vld [vmem:[#allocation4 + $0x88] sm:$0xf] }
 0x1ff   :  { %v3208_v2 = vld [vmem:[#allocation4 + $0xb4] sm:$0x1]  ;;  %v3274_v51 = vld [vmem:[#allocation4 + $0x8c] sm:$0x1]  ;;  %v3075_v42 = vor.u32 %v3073_v9, %v3072_v41  ;;  %v3076_v48 = vrot.slane %v3072_v41, 4  ;;  %v3402_v10 = vrot.slane %v3400_v8, 4  ;;  %v2563_v13 = vadd.f32 %v2562_v27, %v2514_v21 }
 0x200   :  { %5719 = vmatmul.bf16.gmra.mxu2 %v7235_v23  ;;  %v7242_v19 = vld [vmem:[#allocation3 + $0x128] sm:$0xf]  ;;  %v3405_v29 = vrot.slane %v3403_v46, 5  ;;  %v3409_v3 = vshll.u32 %v3272_v16, 16  ;;  %v3414_v20 = vshrl.u32 %v3273_v43, 16  ;;  %v3417_v57 = vshll.u32 %v3273_v43, 16 }
 0x201   :  { %v7865_v11 = vld [vmem:[#allocation3 + $0x148] sm:$0xf0]  ;;  %v3423_v38 = vshll.u32 %v3274_v51, 16  ;;  %v3206_v1 = vsel %vm9412_vm12, %v3075_v42, %v3205_v22  ;;  %v3209_v59 = vsel %vm9241_vm6, %v3076_v48, %v3208_v2  ;;  %v2893_v15 = vld [vmem:[#allocation4 + $0xb8] sm:$0x1]  ;;  %v2619_v6 = vmax.f32 %v2603_v63, 0.0 }
 0x202   :  { %v7243_v54 = vor.u32 %v7865_v11, %v7242_v19  ;;  %v7861_v53 = vld [vmem:[#allocation3 + $0x12c] sm:$0xf]  ;;  %v3406_v12 = vor.u32 %v3405_v29, %v3402_v10  ;;  %v2943_v17 = vld [vmem:[#allocation4 + $0xbc] sm:$0x1]  ;;  %3207 = vst [vmem:[#allocation4 + $0xb0] sm:$0xf] %v3206_v1  ;;  %v2584_v32 = vmul.f32 %v9612_v30, %v2563_v13 }
 0x203   :  { %v7244_v45 = vld [vmem:[#allocation3 + $0x14c] sm:$0xf0]  ;;  %v3411_v55 = vrot.slane %v3409_v3, 5  ;;  %v3416_v31 = vrot.slane %v3414_v20, 4  ;;  %3210 = vst [vmem:[#allocation4 + $0xb4] sm:$0x1] %v3209_v59  ;;  %v2963_v18 = vpack.c.bf16 %v2619_v6, %v2619_v6 }
 0x204   :  { %5817 = vmatmul.bf16.gmra.mxu0 %v7243_v54  ;;  %v7247_v56 = vor.u32 %v7861_v53, %v7244_v45  ;;  %v3407_v4 = vrot.slane %v3406_v12, 4  ;;  %v3419_v7 = vrot.slane %v3417_v57, 5  ;;  %v2894_v36 = vsel %vm9241_vm6, 0, %v2893_v15  ;;  %v3233_v62 = vld [vmem:[#allocation4 + $0x90] sm:$0xf]  ;;  %v7951_v53 = vld [vmem:[%s10300_s4 + $0x1b8] sm:$0xff]  ;;  %v9713_v12 = vpop.f32.mrf.mxu1 }
 0x205   :  { %v2944_v50 = vsel %vm9248_vm7, 0, %v2943_v17  ;;  %2895 = vst [vmem:[#allocation4 + $0xb8] sm:$0x1] %v2894_v36  ;;  %v3234_v33 = vld [vmem:[#allocation4 + $0x98] sm:$0xf]  ;;  %v3425_v34 = vrot.slane %v3423_v38, 5  ;;  %v2604_v49 = vadd.f32 %v9623_v26, %v2584_v32  ;;  %5985 = vmatpush.bf16.msra.mxu0 %v7951_v53 }
 0x206   :  { %5866 = vmatmul.bf16.gmra.mxu1 %v7247_v56  ;;  %v3412_v25 = vsel %vm8215_vm2, %v3407_v4, %v3411_v55  ;;  %v3420_v60 = vor.u32 %v3419_v7, %v3416_v31  ;;  %v2896_v44 = vld [vmem:[#allocation4 + $0xc0] sm:$0x1]  ;;  %v2946_v24 = vld [vmem:[#allocation4 + $0xc4] sm:$0x1]  ;;  %2945 = vst [vmem:[#allocation4 + $0xbc] sm:$0x1] %v2944_v50 }
 0x207   :  { %3535 = vst [vmem:[#allocation3 + $0x124] sm:$0xf] %v3412_v25  ;;  %v2897_v16 = vsel %vm9241_vm6, 0, %v2896_v44  ;;  %v2947_v14 = vsel %vm9248_vm7, 0, %v2946_v24  ;;  %v3563_v9 = vld [vmem:[#allocation4 + $0x90] sm:$0xe] }
 0x208   :  { %v3421_v30 = vrot.slane %v3420_v60, 4  ;;  %v3078_v8 = vshrl.u32 %v2963_v18, 16  ;;  %v3081_v23 = vshll.u32 %v2963_v18, 16  ;;  %3249 = vst [vmem:[#allocation3 + $0x168] sm:$0xf] %v3233_v62  ;;  %v2620_v41 = vmax.f32 %v2604_v49, 0.0 }
 0x209   :  { %v7050_v22 = vrot.slane %v3563_v9, 9  ;;  %3250 = vst [vmem:[#allocation3 + $0x18c] sm:$0xf] %v3234_v33  ;;  %v3564_v26 = vld [vmem:[#allocation4 + $0x94] sm:$0x1]  ;;  %v7929_v38 = vld [vmem:[%s10300_s4 + $0x108] sm:$0xff] }
 0x20a   :  { %v3426_v46 = vsel %vm8215_vm2, %v3421_v30, %v3425_v34  ;;  %v3565_v47 = vld [vmem:[#allocation4 + $0x98] sm:$0xe]  ;;  %v3080_v2 = vrot.slane %v3078_v8, 7  ;;  %v2964_v43 = vpack.c.bf16 %v2620_v41, %v2620_v41  ;;  %v3566_v51 = vld [vmem:[#allocation4 + $0x9c] sm:$0x1]  ;;  %v3652_v63 = vrot.slane %v3564_v26, 5  ;;  %5893 = vmatpush.bf16.msrb.mxu2 %v7929_v38 }
 0x20b   :  { %3536 = vst [vmem:[#allocation3 + $0x148] sm:$0xf] %v3426_v46  ;;  %v7051_v35 = vrot.slane %v3565_v47, 9  ;;  %v3656_v21 = vrot.slane %v3566_v51, 5  ;;  %v3716_v11 = vld [vmem:[#allocation4 + $0x98] sm:$0xf] }
 0x20c   :  { %2898 = vst [vmem:[#allocation4 + $0xc0] sm:$0x1] %v2897_v16  ;;  %v3083_v42 = vor.u32 %v3081_v23, %v3080_v2  ;;  %v3084_v48 = vrot.slane %v3080_v2, 4  ;;  %v3211_v19 = vld [vmem:[#allocation4 + $0xb8] sm:$0xf]  ;;  %v3086_v10 = vshrl.u32 %v2964_v43, 16  ;;  %v3653_v29 = vsel %vm9349_vm10, %v7050_v22, %v3652_v63  ;;  %v9727_v51 = vpop.f32.mrf.mxu1 }
 0x20d   :  { %2948 = vst [vmem:[#allocation4 + $0xc4] sm:$0x1] %v2947_v14  ;;  %v3089_v20 = vshll.u32 %v2964_v43, 16  ;;  %v3657_v57 = vsel %vm9349_vm10, %v7051_v35, %v3656_v21  ;;  %v3214_v59 = vld [vmem:[#allocation4 + $0xbc] sm:$0x1]  ;;  %v7950_v13 = vld [vmem:[%s10300_s4 + $0x1b0] sm:$0xff] }
 0x20e   :  { %v7860_v3 = vld [vmem:[#allocation3 + $0x124] sm:$0xf]  ;;  %3700 = vst [vmem:[#allocation3 + $0x170] sm:$0xf] %v3653_v29  ;;  %v3212_v1 = vsel %vm9412_vm12, %v3083_v42, %v3211_v19  ;;  %v3088_v54 = vrot.slane %v3086_v10, 7  ;;  %v3215_v15 = vsel %vm9241_vm6, %v3084_v48, %v3214_v59  ;;  %5986 = vmatpush.bf16.msra.mxu0 %v7950_v13  ;;  %v7959_v21 = vld [vmem:[%s10300_s4 + $0x1f8] sm:$0xff] }
 0x20f   :  { %3701 = vst [vmem:[#allocation3 + $0x194] sm:$0xf] %v3657_v57  ;;  %v7270_v17 = vld [vmem:[#allocation3 + $0x168] sm:$0xf]  ;;  %v3717_v27 = vld [vmem:[#allocation4 + $0xa0] sm:$0xf]  ;;  %6034 = vmatpush.bf16.msra.mxu1 %v7959_v21 }
 0x210   :  { %3213 = vst [vmem:[#allocation4 + $0xb8] sm:$0xf] %v3212_v1  ;;  %v7873_v45 = vld [vmem:[#allocation3 + $0x188] sm:$0xf0]  ;;  %v3091_v55 = vor.u32 %v3089_v20, %v3088_v54  ;;  %v3092_v31 = vrot.slane %v3088_v54, 4 }
 0x211   :  { %3216 = vst [vmem:[#allocation4 + $0xbc] sm:$0x1] %v3215_v15  ;;  %v7271_v4 = vor.u32 %v7873_v45, %v7270_v17  ;;  %v3275_v7 = vld [vmem:[#allocation4 + $0x90] sm:$0xf]  ;;  %v3276_v50 = vld [vmem:[#allocation4 + $0x94] sm:$0x1] }
 0x212   :  { %v7236_v56 = vld [vmem:[#allocation3 + $0x144] sm:$0xf0]  ;;  %3732 = vst [vmem:[#allocation3 + $0x174] sm:$0xf] %v3716_v11  ;;  %v3277_v60 = vld [vmem:[#allocation4 + $0x98] sm:$0xf] }
 0x213   :  { %v7239_v6 = vor.u32 %v7860_v3, %v7236_v56  ;;  %v3217_v36 = vld [vmem:[#allocation4 + $0xc0] sm:$0xf]  ;;  %3733 = vst [vmem:[#allocation3 + $0x198] sm:$0xf] %v3717_v27  ;;  %v9720_v62 = vld [vmem:[#allocation4 + $0x8] sm:$0xf]  ;;  %5724 = vmatmul.bf16.gmra.mxu2 %v7271_v4 }
 0x214   :  { %v3218_v32 = vsel %vm9412_vm12, %v3091_v55, %v3217_v36  ;;  %v3220_v25 = vld [vmem:[#allocation4 + $0xc4] sm:$0x1]  ;;  %v3278_v33 = vld [vmem:[#allocation4 + $0x9c] sm:$0x1]  ;;  %v3428_v18 = vshrl.u32 %v3275_v7, 16  ;;  %v3431_v49 = vshll.u32 %v3275_v7, 16 }
 0x215   :  { %5768 = vmatmul.bf16.gmra.mxu3 %v7239_v6  ;;  %3219 = vst [vmem:[#allocation4 + $0xc0] sm:$0xf] %v3218_v32  ;;  %v3221_v44 = vsel %vm9241_vm6, %v3092_v31, %v3220_v25  ;;  %v7278_v34 = vld [vmem:[#allocation3 + $0x170] sm:$0xf]  ;;  %v3437_v24 = vshll.u32 %v3276_v50, 16  ;;  %v3442_v30 = vshrl.u32 %v3277_v60, 16 }
 0x216   :  { %3222 = vst [vmem:[#allocation4 + $0xc4] sm:$0x1] %v3221_v44  ;;  %v7874_v16 = vld [vmem:[#allocation3 + $0x190] sm:$0xf0]  ;;  %v3430_v9 = vrot.slane %v3428_v18, 4  ;;  %v3433_v0 = vrot.slane %v3431_v49, 5 }
 0x217   :  { %v7279_v14 = vor.u32 %v7874_v16, %v7278_v34  ;;  %v3445_v8 = vshll.u32 %v3277_v60, 16  ;;  %v3235_v23 = vld [vmem:[#allocation4 + $0xa0] sm:$0xf]  ;;  %v3439_v41 = vrot.slane %v3437_v24, 5  ;;  %v3444_v22 = vrot.slane %v3442_v30, 4  ;;  %v7943_v11 = vld [vmem:[%s10300_s4 + $0x178] sm:$0xff]  ;;  %v9752_v30 = vpop.f32.mrf.mxu1 }
 0x218   :  { %v3451_v46 = vshll.u32 %v3278_v33, 16  ;;  %v3236_v26 = vld [vmem:[#allocation4 + $0xa8] sm:$0xf]  ;;  %v3434_v47 = vor.u32 %v3433_v0, %v3430_v9  ;;  %3251 = vst [vmem:[#allocation3 + $0x1b0] sm:$0xf] %v3235_v23  ;;  %v3771_v43 = vshrl.u32 %v9720_v62, 16  ;;  %5936 = vmatpush.bf16.msra.mxu3 %v7943_v11 }
 0x219   :  { %5822 = vmatmul.bf16.gmra.mxu0 %v7279_v14  ;;  %v7870_v5 = vld [vmem:[#allocation3 + $0x174] sm:$0xf]  ;;  %v3447_v2 = vrot.slane %v3445_v8, 5  ;;  %3252 = vst [vmem:[#allocation3 + $0x1d4] sm:$0xf] %v3236_v26  ;;  %v7949_v17 = vld [vmem:[%s10300_s4 + $0x1a8] sm:$0xff] }
 0x21a   :  { %v7280_v63 = vld [vmem:[#allocation3 + $0x194] sm:$0xf0]  ;;  %v3453_v35 = vrot.slane %v3451_v46, 5  ;;  %v3435_v48 = vrot.slane %v3434_v47, 4  ;;  %v3567_v10 = vld [vmem:[#allocation4 + $0xa0] sm:$0xe]  ;;  %5987 = vmatpush.bf16.msra.mxu0 %v7949_v17 }
 0x21b   :  { %v7283_v42 = vor.u32 %v7870_v5, %v7280_v63  ;;  %v3448_v19 = vor.u32 %v3447_v2, %v3444_v22  ;;  %v3568_v29 = vld [vmem:[#allocation4 + $0xa4] sm:$0x1]  ;;  %v3569_v3 = vld [vmem:[#allocation4 + $0xa8] sm:$0xe]  ;;  %v3570_v20 = vld [vmem:[#allocation4 + $0xac] sm:$0x1] }
 0x21c   :  { %v7052_v57 = vrot.slane %v3567_v10, 9  ;;  %v3660_v38 = vrot.slane %v3568_v29, 5  ;;  %v3440_v1 = vsel %vm8215_vm2, %v3435_v48, %v3439_v41  ;;  %v7053_v54 = vrot.slane %v3569_v3, 9  ;;  %v3718_v15 = vld [vmem:[#allocation4 + $0xa8] sm:$0xf]  ;;  %v7958_v34 = vld [vmem:[%s10300_s4 + $0x1f0] sm:$0xff] }
 0x21d   :  { %5871 = vmatmul.bf16.gmra.mxu1 %v7283_v42  ;;  %v3449_v59 = vrot.slane %v3448_v19, 4  ;;  %v3664_v53 = vrot.slane %v3570_v20, 5  ;;  %3537 = vst [vmem:[#allocation3 + $0x16c] sm:$0xf] %v3440_v1  ;;  %v3719_v45 = vld [vmem:[#allocation4 + $0xb0] sm:$0xf] }
 0x21e   :  { %v3661_v27 = vsel %vm9349_vm10, %v7052_v57, %v3660_v38  ;;  %v3279_v55 = vld [vmem:[#allocation4 + $0xa0] sm:$0xf]  ;;  %v3280_v56 = vld [vmem:[#allocation4 + $0xa4] sm:$0x1]  ;;  %v3281_v4 = vld [vmem:[#allocation4 + $0xa8] sm:$0xf]  ;;  %6035 = vmatpush.bf16.msra.mxu1 %v7958_v34 }
 0x21f   :  { %v3454_v31 = vsel %vm8215_vm2, %v3449_v59, %v3453_v35  ;;  %v3665_v13 = vsel %vm9349_vm10, %v7053_v54, %v3664_v53  ;;  %3702 = vst [vmem:[#allocation3 + $0x1b8] sm:$0xf] %v3661_v27  ;;  %v7306_v7 = vld [vmem:[#allocation3 + $0x1b0] sm:$0xf]  ;;  %v3282_v6 = vld [vmem:[#allocation4 + $0xac] sm:$0x1] }
 0x220   :  { %3538 = vst [vmem:[#allocation3 + $0x190] sm:$0xf] %v3454_v31  ;;  %v7882_v36 = vld [vmem:[#allocation3 + $0x1d0] sm:$0xf0]  ;;  %v3456_v50 = vshrl.u32 %v3279_v55, 16  ;;  %v3459_v32 = vshll.u32 %v3279_v55, 16 }
 0x221   :  { %3703 = vst [vmem:[#allocation3 + $0x1dc] sm:$0xf] %v3665_v13  ;;  %v7307_v25 = vor.u32 %v7882_v36, %v7306_v7  ;;  %v3465_v60 = vshll.u32 %v3280_v56, 16  ;;  %v3470_v33 = vshrl.u32 %v3281_v4, 16  ;;  %v3473_v44 = vshll.u32 %v3281_v4, 16  ;;  %v7942_v24 = vld [vmem:[%s10300_s4 + $0x170] sm:$0xff] }
 0x222   :  { %3734 = vst [vmem:[#allocation3 + $0x1bc] sm:$0xf] %v3718_v15  ;;  %v3458_v18 = vrot.slane %v3456_v50, 4  ;;  %v3461_v49 = vrot.slane %v3459_v32, 5  ;;  %v3479_v16 = vshll.u32 %v3282_v6, 16  ;;  %v7928_v23 = vld [vmem:[%s10300_s4 + $0x100] sm:$0xff]  ;;  %5937 = vmatpush.bf16.msra.mxu3 %v7942_v24  ;;  %v9784_v32 = vpop.f32.mrf.mxu1 }
 0x223   :  { %3735 = vst [vmem:[#allocation3 + $0x1e0] sm:$0xf] %v3719_v45  ;;  %5729 = vmatmul.bf16.gmra.mxu2 %v7307_v25  ;;  %v3467_v14 = vrot.slane %v3465_v60, 5  ;;  %v3472_v9 = vrot.slane %v3470_v33, 4  ;;  %v3475_v0 = vrot.slane %v3473_v44, 5  ;;  %v7948_v5 = vld [vmem:[%s10300_s4 + $0x1a0] sm:$0xff] }
 0x224   :  { %v3237_v8 = vld [vmem:[#allocation4 + $0xb0] sm:$0xf]  ;;  %v7869_v41 = vld [vmem:[#allocation3 + $0x16c] sm:$0xf]  ;;  %v3462_v22 = vor.u32 %v3461_v49, %v3458_v18  ;;  %v3481_v46 = vrot.slane %v3479_v16, 5  ;;  %5894 = vmatpush.bf16.msrb.mxu2 %v7928_v23  ;;  %5988 = vmatpush.bf16.msra.mxu0 %v7948_v5  ;;  %v7947_v48 = vld [vmem:[%s10300_s4 + $0x198] sm:$0xff] }
 0x225   :  { %v3238_v26 = vld [vmem:[#allocation4 + $0xb8] sm:$0xf]  ;;  %v3476_v2 = vor.u32 %v3475_v0, %v3472_v9  ;;  %3253 = vst [vmem:[#allocation3 + $0x1f8] sm:$0xf] %v3237_v8  ;;  %v7957_v63 = vld [vmem:[%s10300_s4 + $0x1e8] sm:$0xff]  ;;  %v7956_v3 = vld [vmem:[%s10300_s4 + $0x1e0] sm:$0xff] }
 0x226   :  { %v7314_v47 = vld [vmem:[#allocation3 + $0x1b8] sm:$0xf]  ;;  %v7941_v35 = vld [vmem:[%s10300_s4 + $0x168] sm:$0xff]  ;;  %v3463_v42 = vrot.slane %v3462_v22, 4  ;;  %3254 = vst [vmem:[#allocation3 + $0x21c] sm:$0xf] %v3238_v26  ;;  %6036 = vmatpush.bf16.msra.mxu1 %v7957_v63 }
 0x227   :  { %v7272_v21 = vld [vmem:[#allocation3 + $0x18c] sm:$0xf0]  ;;  %v3477_v29 = vrot.slane %v3476_v2, 4  ;;  %5938 = vmatpush.bf16.msra.mxu3 %v7941_v35  ;;  %v3572_v1 = vld [vmem:[#allocation4 + $0xb4] sm:$0x1]  ;;  %v7940_v31 = vld [vmem:[%s10300_s4 + $0x160] sm:$0xff] }
 0x228   :  { %v7275_v19 = vor.u32 %v7869_v41, %v7272_v21  ;;  %v7883_v10 = vld [vmem:[#allocation3 + $0x1d8] sm:$0xf0]  ;;  %v3571_v11 = vld [vmem:[#allocation4 + $0xb0] sm:$0xe]  ;;  %v3468_v38 = vsel %vm8215_vm2, %v3463_v42, %v3467_v14  ;;  %v3573_v59 = vld [vmem:[#allocation4 + $0xb8] sm:$0xe]  ;;  %5989 = vmatpush.bf16.msra.mxu0 %v7947_v48 }
 0x229   :  { %v7315_v20 = vor.u32 %v7883_v10, %v7314_v47  ;;  %v7879_v57 = vld [vmem:[#allocation3 + $0x1bc] sm:$0xf]  ;;  %v3482_v53 = vsel %vm8215_vm2, %v3477_v29, %v3481_v46  ;;  %3539 = vst [vmem:[#allocation3 + $0x1b4] sm:$0xf] %v3468_v38  ;;  %v7054_v27 = vrot.slane %v3571_v11, 9  ;;  %v3668_v45 = vrot.slane %v3572_v1, 5 }
 0x22a   :  { %5773 = vmatmul.bf16.gmra.mxu3 %v7275_v19  ;;  %v7316_v54 = vld [vmem:[#allocation3 + $0x1dc] sm:$0xf0]  ;;  %v3574_v15 = vld [vmem:[#allocation4 + $0xbc] sm:$0x1]  ;;  %3540 = vst [vmem:[#allocation3 + $0x1d8] sm:$0xf] %v3482_v53  ;;  %6037 = vmatpush.bf16.msra.mxu1 %v7956_v3 }
 0x22b   :  { %5827 = vmatmul.bf16.gmra.mxu0 %v7315_v20  ;;  %v7319_v17 = vor.u32 %v7879_v57, %v7316_v54  ;;  %v7055_v55 = vrot.slane %v3573_v59, 9  ;;  %v3672_v13 = vrot.slane %v3574_v15, 5  ;;  %v3720_v56 = vld [vmem:[#allocation4 + $0xb8] sm:$0xf]  ;;  %v3721_v4 = vld [vmem:[#allocation4 + $0xc0] sm:$0xf]  ;;  %v3669_v36 = vsel %vm9349_vm10, %v7054_v27, %v3668_v45  ;;  %5939 = vmatpush.bf16.msra.mxu3 %v7940_v31 }
 0x22c   :  { %v7946_v7 = vld [vmem:[%s10300_s4 + $0x190] sm:$0xff]  ;;  %v7342_v6 = vld [vmem:[#allocation3 + $0x1f8] sm:$0xf]  ;;  %3736 = vst [vmem:[#allocation3 + $0x204] sm:$0xf] %v3720_v56  ;;  %v3774_v22 = vshll.u32 %v9720_v62, 16 }
 0x22d   :  { %5876 = vmatmul.bf16.gmra.mxu1 %v7319_v17  ;;  %v3283_v50 = vld [vmem:[#allocation4 + $0xb0] sm:$0xf]  ;;  %v7891_v25 = vld [vmem:[#allocation3 + $0x218] sm:$0xf0]  ;;  %v3673_v60 = vsel %vm9349_vm10, %v7055_v55, %v3672_v13  ;;  %3704 = vst [vmem:[#allocation3 + $0x200] sm:$0xf] %v3669_v36  ;;  %5990 = vmatpush.bf16.msra.mxu0 %v7946_v7 }
 0x22e   :  { %v3284_v33 = vld [vmem:[#allocation4 + $0xb4] sm:$0x1]  ;;  %v7343_v44 = vor.u32 %v7891_v25, %v7342_v6  ;;  %3705 = vst [vmem:[#allocation3 + $0x224] sm:$0xf] %v3673_v60  ;;  %v3285_v34 = vld [vmem:[#allocation4 + $0xb8] sm:$0xf] }
 0x22f   :  { %v3286_v18 = vld [vmem:[#allocation4 + $0xbc] sm:$0x1]  ;;  %v3740_v49 = vld [vmem:[#allocation4 + $0x10] sm:$0xf]  ;;  %3737 = vst [vmem:[#allocation3 + $0x228] sm:$0xf] %v3721_v4  ;;  %v9806_v19 = vpop.f32.mrf.mxu2 }
 0x230   :  { %v3484_v16 = vshrl.u32 %v3283_v50, 16  ;;  %v3487_v24 = vshll.u32 %v3283_v50, 16  ;;  %v3493_v14 = vshll.u32 %v3284_v33, 16  ;;  %v3498_v9 = vshrl.u32 %v3285_v34, 16  ;;  %v7955_v23 = vld [vmem:[%s10300_s4 + $0x1d8] sm:$0xff]  ;;  %v7945_v35 = vld [vmem:[%s10300_s4 + $0x188] sm:$0xff]  ;;  %v9817_v50 = vpop.f32.mrf.mxu1 }
 0x231   :  { %v3501_v0 = vshll.u32 %v3285_v34, 16  ;;  %v3507_v8 = vshll.u32 %v3286_v18, 16  ;;  %v7939_v41 = vld [vmem:[%s10300_s4 + $0x158] sm:$0xff]  ;;  %v7878_v2 = vld [vmem:[#allocation3 + $0x1b4] sm:$0xf]  ;;  %6038 = vmatpush.bf16.msra.mxu1 %v7955_v23  ;;  %v3773_v48 = vrot.slane %v3771_v43, 4  ;;  %5991 = vmatpush.bf16.msra.mxu0 %v7945_v35 }
 0x232   :  { %v7308_v46 = vld [vmem:[#allocation3 + $0x1d4] sm:$0xf0]  ;;  %v3486_v26 = vrot.slane %v3484_v16, 4  ;;  %v3489_v5 = vrot.slane %v3487_v24, 5  ;;  %v3500_v47 = vrot.slane %v3498_v9, 4  ;;  %5940 = vmatpush.bf16.msra.mxu3 %v7939_v41  ;;  %v7954_v21 = vld [vmem:[%s10300_s4 + $0x1d0] sm:$0xff] }
 0x233   :  { %v3503_v63 = vrot.slane %v3501_v0, 5  ;;  %v7938_v42 = vld [vmem:[%s10300_s4 + $0x150] sm:$0xff]  ;;  %5734 = vmatmul.bf16.gmra.mxu2 %v7343_v44  ;;  %v3495_v29 = vrot.slane %v3493_v14, 5  ;;  %v3509_v11 = vrot.slane %v3507_v8, 5  ;;  %v3739_v3 = vld [vmem:[#allocation4 + $0xc] sm:$0x1]  ;;  %v7311_v43 = vor.u32 %v7878_v2, %v7308_v46 }
 0x234   :  { %v3490_v10 = vor.u32 %v3489_v5, %v3486_v26  ;;  %v3741_v20 = vld [vmem:[#allocation4 + $0x14] sm:$0x1]  ;;  %v7350_v57 = vld [vmem:[#allocation3 + $0x200] sm:$0xf]  ;;  %v3776_v1 = vrot.slane %v3774_v22, 5  ;;  %v3780_v59 = vshll.u32 %v3739_v3, 16  ;;  %v5798_v3 = vpop.f32.mrf.mxu0 }
 0x235   :  { %v3504_v38 = vor.u32 %v3503_v63, %v3500_v47  ;;  %v3785_v54 = vshrl.u32 %v3740_v49, 16  ;;  %v7944_v53 = vld [vmem:[%s10300_s4 + $0x180] sm:$0xff]  ;;  %v4219_v62 = vld [vmem:[#allocation4 + $0x10] sm:$0xf]  ;;  %v3788_v27 = vshll.u32 %v3740_v49, 16  ;;  %v3794_v45 = vshll.u32 %v3741_v20, 16  ;;  %6039 = vmatpush.bf16.msra.mxu1 %v7954_v21 }
 0x236   :  { %v7892_v15 = vld [vmem:[#allocation3 + $0x220] sm:$0xf0]  ;;  %v3491_v17 = vrot.slane %v3490_v10, 4  ;;  %v7967_v55 = vld [vmem:[%s10300_s4 + $0x238] sm:$0xff]  ;;  %v7352_v4 = vld [vmem:[#allocation3 + $0x224] sm:$0xf0]  ;;  %5941 = vmatpush.bf16.msra.mxu3 %v7938_v42  ;;  %v3777_v6 = vor.u32 %v3776_v1, %v3773_v48  ;;  %5992 = vmatpush.bf16.msra.mxu0 %v7944_v53 }
 0x237   :  { %v4221_v31 = vld [vmem:[#allocation4 + $0x18] sm:$0xf]  ;;  %v7351_v13 = vor.u32 %v7892_v15, %v7350_v57  ;;  %v7888_v56 = vld [vmem:[#allocation3 + $0x204] sm:$0xf]  ;;  %v3505_v7 = vrot.slane %v3504_v38, 4  ;;  %v7953_v36 = vld [vmem:[%s10300_s4 + $0x1c8] sm:$0xff]  ;;  %6083 = vmatpush.bf16.msra.mxu2 %v7967_v55 }
 0x238   :  { %10326 = vst [vmem:[#allocation5_spill] sm:$0xff] %v9817_v50  ;;  %v3496_v25 = vsel %vm8215_vm2, %v3491_v17, %v3495_v29  ;;  %v3782_v60 = vrot.slane %v3780_v59, 5  ;;  %v3787_v33 = vrot.slane %v3785_v54, 4  ;;  %v3790_v44 = vrot.slane %v3788_v27, 5  ;;  %v7937_v34 = vld [vmem:[%s10300_s4 + $0x148] sm:$0xff]  ;;  %v7952_v22 = vld [vmem:[%s10300_s4 + $0x1c0] sm:$0xff]  ;;  %v9837_v29 = vpop.f32.mrf.mxu2 }
 0x239   :  { %v4187_v18 = vld [vmem:[#allocation4 + $0x10] sm:$0xf]  ;;  %v7355_v49 = vor.u32 %v7888_v56, %v7352_v4  ;;  %v3510_v16 = vsel %vm8215_vm2, %v3505_v7, %v3509_v11  ;;  %3541 = vst [vmem:[#allocation3 + $0x1fc] sm:$0xf] %v3496_v25  ;;  %v3778_v24 = vrot.slane %v3777_v6, 4  ;;  %v3796_v14 = vrot.slane %v3794_v45, 5  ;;  %6040 = vmatpush.bf16.msra.mxu1 %v7953_v36  ;;  %v9844_v56 = vpop.f32.mrf.mxu1 }
 0x23a   :  { %v4188_v9 = vld [vmem:[#allocation4 + $0x18] sm:$0xf]  ;;  %5778 = vmatmul.bf16.gmra.mxu3 %v7311_v43  ;;  %3542 = vst [vmem:[#allocation3 + $0x220] sm:$0xf] %v3510_v16  ;;  %v3791_v0 = vor.u32 %v3790_v44, %v3787_v33  ;;  %v4220_v8 = vld [vmem:[#allocation4 + $0x14] sm:$0x1]  ;;  %v5749_v21 = vpop.f32.mrf.mxu3 }
 0x23b   :  { %v4222_v23 = vld [vmem:[#allocation4 + $0x1c] sm:$0x1]  ;;  %5832 = vmatmul.bf16.gmra.mxu0 %v7351_v13  ;;  %v3783_v41 = vsel %vm8215_vm2, %v3778_v24, %v3782_v60  ;;  %4203 = vst [vmem:[#allocation3 + $0x18] sm:$0xf] %v4187_v18  ;;  %v4252_v46 = vshrl.u32 %v4219_v62, 16  ;;  %v4255_v26 = vshll.u32 %v4219_v62, 16  ;;  %5942 = vmatpush.bf16.msra.mxu3 %v7937_v34  ;;  %v5750_v11 = vadd.f32 %v5749_v21, %v9806_v19 }
 0x23c   :  { %v7966_v5 = vld [vmem:[%s10300_s4 + $0x230] sm:$0xff]  ;;  %v3792_v47 = vrot.slane %v3791_v0, 4  ;;  %4010 = vst [vmem:[#allocation3 + $0x10] sm:$0xf] %v3783_v41  ;;  %v7936_v2 = vld [vmem:[%s10300_s4 + $0x140] sm:$0xff]  ;;  %v4266_v63 = vshrl.u32 %v4221_v31, 16 }
 0x23d   :  { %v4269_v35 = vshll.u32 %v4221_v31, 16  ;;  %5881 = vmatmul.bf16.gmra.mxu1 %v7355_v49  ;;  %4204 = vst [vmem:[#allocation3 + $0x3c] sm:$0xf] %v4188_v9  ;;  %v4254_v42 = vrot.slane %v4252_v46, 4  ;;  %v4257_v48 = vrot.slane %v4255_v26, 5  ;;  %v4261_v10 = vshll.u32 %v4220_v8, 16  ;;  %6084 = vmatpush.bf16.msra.mxu2 %v7966_v5 }
 0x23e   :  { %v3797_v20 = vsel %vm8215_vm2, %v3792_v47, %v3796_v14  ;;  %v4268_v57 = vrot.slane %v4266_v63, 4  ;;  %v4275_v1 = vshll.u32 %v4222_v23, 16  ;;  %v4026_v59 = vld [vmem:[#allocation4 + $0x8] sm:$0xe]  ;;  %6041 = vmatpush.bf16.msra.mxu1 %v7952_v22  ;;  %v4027_v53 = vld [vmem:[#allocation4 + $0xc] sm:$0x1]  ;;  %v9842_v43 = vadd.f32 %v5798_v3, %v5750_v11 }
 0x23f   :  { %v4271_v38 = vrot.slane %v4269_v35, 5  ;;  %4011 = vst [vmem:[#allocation3 + $0x34] sm:$0xf] %v3797_v20  ;;  %v4258_v54 = vor.u32 %v4257_v48, %v4254_v42  ;;  %v4028_v62 = vld [vmem:[#allocation4 + $0x10] sm:$0xe]  ;;  %5943 = vmatpush.bf16.msra.mxu3 %v7936_v2  ;;  %v7056_v19 = vrot.slane %v4026_v59, 9  ;;  %v9856_v59 = vpop.f32.mrf.mxu0 }
 0x240   :  { %v4029_v17 = vld [vmem:[#allocation4 + $0x14] sm:$0x1]  ;;  %v4092_v27 = vrot.slane %v4027_v53, 5  ;;  %v4263_v55 = vrot.slane %v4261_v10, 5  ;;  %v7057_v31 = vrot.slane %v4028_v62, 9  ;;  %10327 = vst [vmem:[#allocation7_spill] sm:$0xff] %v9844_v56  ;;  %v9854_v2 = vpop.f32.mrf.mxu2 }
 0x241   :  { %v4272_v15 = vor.u32 %v4271_v38, %v4268_v57  ;;  %v4259_v45 = vrot.slane %v4258_v54, 4  ;;  %v4096_v13 = vrot.slane %v4029_v17, 5  ;;  %v4277_v7 = vrot.slane %v4275_v1, 5  ;;  %v3742_v36 = vld [vmem:[#allocation4 + $0x18] sm:$0xf] }
 0x242   :  { %v4093_v6 = vsel %vm9349_vm10, %v7056_v19, %v4092_v27  ;;  %v7887_v25 = vld [vmem:[#allocation3 + $0x1fc] sm:$0xf]  ;;  %v7344_v60 = vld [vmem:[#allocation3 + $0x21c] sm:$0xf0]  ;;  %v3745_v14 = vld [vmem:[#allocation4 + $0x24] sm:$0x1]  ;;  %v9860_v27 = vpop.f32.mrf.mxu1 }
 0x243   :  { %v4273_v4 = vrot.slane %v4272_v15, 4  ;;  %v4264_v33 = vsel %vm8215_vm2, %v4259_v45, %v4263_v55  ;;  %v4097_v44 = vsel %vm9349_vm10, %v7057_v31, %v4096_v13  ;;  %4170 = vst [vmem:[#allocation3 + $0x14] sm:$0xf] %v4093_v6  ;;  %v3743_v34 = vld [vmem:[#allocation4 + $0x1c] sm:$0x1]  ;;  %v3799_v9 = vshrl.u32 %v3742_v36, 16  ;;  %v9858_v15 = vpop.f32.mrf.mxu3 }
 0x244   :  { %v7106_v18 = vld [vmem:[#allocation3 + $0x10] sm:$0xf]  ;;  %v7831_v49 = vld [vmem:[#allocation3 + $0x38] sm:$0xf0]  ;;  %4491 = vst [vmem:[#allocation3 + $0x1c] sm:$0xf] %v4264_v33  ;;  %v7347_v8 = vor.u32 %v7887_v25, %v7344_v60 }
 0x245   :  { %v4278_v16 = vsel %vm8215_vm2, %v4273_v4, %v4277_v7  ;;  %v3744_v24 = vld [vmem:[#allocation4 + $0x20] sm:$0xf]  ;;  %v3802_v0 = vshll.u32 %v3742_v36, 16  ;;  %4171 = vst [vmem:[#allocation3 + $0x38] sm:$0xf] %v4097_v44  ;;  %v3808_v41 = vshll.u32 %v3743_v34, 16 }
 0x246   :  { %4492 = vst [vmem:[#allocation3 + $0x40] sm:$0xf] %v4278_v16  ;;  %v7830_v23 = vld [vmem:[#allocation3 + $0x30] sm:$0xf0]  ;;  %v3813_v22 = vshrl.u32 %v3744_v24, 16  ;;  %v3801_v26 = vrot.slane %v3799_v9, 4 }
 0x247   :  { %v7107_v46 = vor.u32 %v7830_v23, %v7106_v18  ;;  %v3804_v5 = vrot.slane %v3802_v0, 5  ;;  %v3816_v47 = vshll.u32 %v3744_v24, 16  ;;  %v4189_v63 = vld [vmem:[#allocation4 + $0x20] sm:$0xf]  ;;  %v7114_v35 = vld [vmem:[#allocation3 + $0x18] sm:$0xf] }
 0x248   :  { %v3815_v21 = vrot.slane %v3813_v22, 4  ;;  %v3822_v42 = vshll.u32 %v3745_v14, 16  ;;  %v4190_v48 = vld [vmem:[#allocation4 + $0x28] sm:$0xf]  ;;  %v7115_v10 = vor.u32 %v7831_v49, %v7114_v35  ;;  %4205 = vst [vmem:[#allocation3 + $0x60] sm:$0xf] %v4189_v63 }
 0x249   :  { %5895 = vmatmul.bf16.vlgmr.msrb.gmra.mxu2 %v7107_v46  ;;  %v3805_v11 = vor.u32 %v3804_v5, %v3801_v26  ;;  %v3818_v3 = vrot.slane %v3816_v47, 5  ;;  %v4223_v20 = vld [vmem:[#allocation4 + $0x20] sm:$0xf]  ;;  %v3810_v57 = vrot.slane %v3808_v41, 5  ;;  %4206 = vst [vmem:[#allocation3 + $0x84] sm:$0xf] %v4190_v48  ;;  %v9869_v41 = vpop.f32.mrf.mxu2 }
 0x24a   :  { %5783 = vmatmul.bf16.gmra.mxu3 %v7347_v8  ;;  %v3824_v38 = vrot.slane %v3822_v42, 5  ;;  %v4280_v1 = vshrl.u32 %v4223_v20, 16  ;;  %v4224_v17 = vld [vmem:[#allocation4 + $0x24] sm:$0x1]  ;;  %v4283_v19 = vshll.u32 %v4223_v20, 16  ;;  %10328 = vst [vmem:[#allocation8_spill] sm:$0xff] %v9860_v27 }
 0x24b   :  { %5993 = vmatmul.bf16.vlgmr.msra.gmra.mxu0 %v7115_v10  ;;  %v7827_v54 = vld [vmem:[#allocation3 + $0x1c] sm:$0xf]  ;;  %v3806_v53 = vrot.slane %v3805_v11, 4  ;;  %v3819_v62 = vor.u32 %v3818_v3, %v3815_v21  ;;  %v4225_v55 = vld [vmem:[#allocation4 + $0x28] sm:$0xf]  ;;  %v4289_v25 = vshll.u32 %v4224_v17, 16 }
 0x24c   :  { %v4226_v31 = vld [vmem:[#allocation4 + $0x2c] sm:$0x1]  ;;  %v4282_v6 = vrot.slane %v4280_v1, 4  ;;  %v4285_v36 = vrot.slane %v4283_v19, 5  ;;  %v4294_v60 = vshrl.u32 %v4225_v55, 16  ;;  %v4297_v34 = vshll.u32 %v4225_v55, 16 }
 0x24d   :  { %v7116_v45 = vld [vmem:[#allocation3 + $0x3c] sm:$0xf0]  ;;  %v3811_v4 = vsel %vm8215_vm2, %v3806_v53, %v3810_v57  ;;  %v3820_v7 = vrot.slane %v3819_v62, 4  ;;  %v7965_v33 = vld [vmem:[%s10300_s4 + $0x228] sm:$0xff]  ;;  %v4303_v18 = vshll.u32 %v4226_v31, 16  ;;  %v4291_v0 = vrot.slane %v4289_v25, 5  ;;  %v5803_v62 = vpop.f32.mrf.mxu0 }
 0x24e   :  { %v7119_v13 = vor.u32 %v7827_v54, %v7116_v45  ;;  %4012 = vst [vmem:[#allocation3 + $0x58] sm:$0xf] %v3811_v4  ;;  %v4030_v49 = vld [vmem:[#allocation4 + $0x18] sm:$0xe]  ;;  %v4031_v16 = vld [vmem:[#allocation4 + $0x1c] sm:$0x1]  ;;  %v4286_v24 = vor.u32 %v4285_v36, %v4282_v6  ;;  %6085 = vmatpush.bf16.msra.mxu2 %v7965_v33 }
 0x24f   :  { %v3825_v44 = vsel %vm8215_vm2, %v3820_v7, %v3824_v38  ;;  %v4296_v14 = vrot.slane %v4294_v60, 4  ;;  %v4032_v9 = vld [vmem:[#allocation4 + $0x20] sm:$0xe]  ;;  %v4299_v8 = vrot.slane %v4297_v34, 5  ;;  %v4033_v23 = vld [vmem:[#allocation4 + $0x24] sm:$0x1] }
 0x250   :  { %6042 = vmatmul.bf16.vlgmr.msra.gmra.mxu1 %v7119_v13  ;;  %4013 = vst [vmem:[#allocation3 + $0x7c] sm:$0xf] %v3825_v44  ;;  %v7108_v22 = vld [vmem:[#allocation3 + $0x34] sm:$0xf0]  ;;  %v4287_v46 = vrot.slane %v4286_v24, 4  ;;  %v4305_v26 = vrot.slane %v4303_v18, 5  ;;  %v9877_v13 = vpop.f32.mrf.mxu1 }
 0x251   :  { %v7058_v5 = vrot.slane %v4030_v49, 9  ;;  %v4100_v47 = vrot.slane %v4031_v16, 5  ;;  %v3746_v63 = vld [vmem:[#allocation4 + $0x28] sm:$0xf]  ;;  %v4300_v35 = vor.u32 %v4299_v8, %v4296_v14  ;;  %v7059_v21 = vrot.slane %v4032_v9, 9  ;;  %10329 = vst [vmem:[#allocation6_spill] sm:$0xff] %v9877_v13 }
 0x252   :  { %v4104_v42 = vrot.slane %v4033_v23, 5  ;;  %v3747_v48 = vld [vmem:[#allocation4 + $0x2c] sm:$0x1]  ;;  %v3748_v10 = vld [vmem:[#allocation4 + $0x30] sm:$0xf]  ;;  %v4292_v20 = vsel %vm8215_vm2, %v4287_v46, %v4291_v0  ;;  %v3827_v1 = vshrl.u32 %v3746_v63, 16 }
 0x253   :  { %v7826_v11 = vld [vmem:[#allocation3 + $0x14] sm:$0xf]  ;;  %v7840_v3 = vld [vmem:[#allocation3 + $0x80] sm:$0xf0]  ;;  %v4101_v57 = vsel %vm9349_vm10, %v7058_v5, %v4100_v47  ;;  %v3830_v54 = vshll.u32 %v3746_v63, 16  ;;  %v4301_v19 = vrot.slane %v4300_v35, 4  ;;  %v5754_v55 = vpop.f32.mrf.mxu3 }
 0x254   :  { %v3749_v38 = vld [vmem:[#allocation4 + $0x34] sm:$0x1]  ;;  %v4191_v53 = vld [vmem:[#allocation4 + $0x30] sm:$0xf]  ;;  %4493 = vst [vmem:[#allocation3 + $0x64] sm:$0xf] %v4292_v20  ;;  %v4105_v45 = vsel %vm9349_vm10, %v7059_v21, %v4104_v42  ;;  %v5755_v7 = vadd.f32 %v5754_v55, %v9854_v2  ;;  %v7111_v60 = vor.u32 %v7826_v11, %v7108_v22 }
 0x255   :  { %v7142_v17 = vld [vmem:[#allocation3 + $0x58] sm:$0xf]  ;;  %v3836_v31 = vshll.u32 %v3747_v48, 16  ;;  %v7150_v4 = vld [vmem:[#allocation3 + $0x60] sm:$0xf]  ;;  %v3829_v6 = vrot.slane %v3827_v1, 4  ;;  %v4306_v44 = vsel %vm8215_vm2, %v4301_v19, %v4305_v26  ;;  %v9884_v47 = vpop.f32.mrf.mxu2 }
 0x256   :  { %4172 = vst [vmem:[#allocation3 + $0x5c] sm:$0xf] %v4101_v57  ;;  %v3832_v36 = vrot.slane %v3830_v54, 5  ;;  %v3841_v25 = vshrl.u32 %v3748_v10, 16  ;;  %v3844_v18 = vshll.u32 %v3748_v10, 16  ;;  %v9882_v16 = vadd.f32 %v5803_v62, %v5755_v7  ;;  %v7964_v11 = vld [vmem:[%s10300_s4 + $0x220] sm:$0xff]  ;;  %v9891_v62 = vpop.f32.mrf.mxu0 }
 0x257   :  { %v7839_v33 = vld [vmem:[#allocation3 + $0x78] sm:$0xf0]  ;;  %4173 = vst [vmem:[#allocation3 + $0x80] sm:$0xf] %v4105_v45  ;;  %v3838_v34 = vrot.slane %v3836_v31, 5  ;;  %v7151_v0 = vor.u32 %v7840_v3, %v7150_v4  ;;  %v3850_v8 = vshll.u32 %v3749_v38, 16  ;;  %6086 = vmatpush.bf16.msra.mxu2 %v7964_v11 }
 0x258   :  { %v7143_v49 = vor.u32 %v7839_v33, %v7142_v17  ;;  %4494 = vst [vmem:[#allocation3 + $0x88] sm:$0xf] %v4306_v44  ;;  %v3833_v24 = vor.u32 %v3832_v36, %v3829_v6  ;;  %v3843_v14 = vrot.slane %v3841_v25, 4  ;;  %v4192_v9 = vld [vmem:[#allocation4 + $0x38] sm:$0xf]  ;;  %v3846_v2 = vrot.slane %v3844_v18, 5  ;;  %v9895_v4 = vpop.f32.mrf.mxu1 }
 0x259   :  { %4207 = vst [vmem:[#allocation3 + $0xa8] sm:$0xf] %v4191_v53  ;;  %v4227_v23 = vld [vmem:[#allocation4 + $0x30] sm:$0xf]  ;;  %v4228_v46 = vld [vmem:[#allocation4 + $0x34] sm:$0x1] }
 0x25a   :  { %5944 = vmatmul.bf16.vlgmr.msra.gmra.mxu3 %v7111_v60  ;;  %5900 = vmatmul.bf16.gmra.mxu2 %v7143_v49  ;;  %v3834_v22 = vrot.slane %v3833_v24, 4  ;;  %4208 = vst [vmem:[#allocation3 + $0xcc] sm:$0xf] %v4192_v9  ;;  %v4308_v26 = vshrl.u32 %v4227_v23, 16  ;;  %v3847_v5 = vor.u32 %v3846_v2, %v3843_v14  ;;  %v4229_v63 = vld [vmem:[#allocation4 + $0x38] sm:$0xf] }
 0x25b   :  { %5998 = vmatmul.bf16.gmra.mxu0 %v7151_v0  ;;  %v4311_v35 = vshll.u32 %v4227_v23, 16  ;;  %v4230_v42 = vld [vmem:[#allocation4 + $0x3c] sm:$0x1]  ;;  %v4322_v10 = vshrl.u32 %v4229_v63, 16  ;;  %v3852_v20 = vrot.slane %v3850_v8, 5  ;;  %v4317_v38 = vshll.u32 %v4228_v46, 16 }
 0x25c   :  { %v3839_v21 = vsel %vm8215_vm2, %v3834_v22, %v3838_v34  ;;  %v4310_v48 = vrot.slane %v4308_v26, 4  ;;  %v3848_v3 = vrot.slane %v3847_v5, 4  ;;  %v7836_v1 = vld [vmem:[#allocation3 + $0x64] sm:$0xf]  ;;  %v4325_v53 = vshll.u32 %v4229_v63, 16  ;;  %10330 = vst [vmem:[#allocation9_spill] sm:$0xff] %v9895_v4  ;;  %v9897_v34 = vpop.f32.mrf.mxu3 }
 0x25d   :  { %4014 = vst [vmem:[#allocation3 + $0xa0] sm:$0xf] %v3839_v21  ;;  %v4313_v57 = vrot.slane %v4311_v35, 5  ;;  %v4324_v54 = vrot.slane %v4322_v10, 4  ;;  %v4331_v55 = vshll.u32 %v4230_v42, 16  ;;  %v4319_v60 = vrot.slane %v4317_v38, 5  ;;  %v9905_v42 = vpop.f32.mrf.mxu2 }
 0x25e   :  { %v3853_v19 = vsel %vm8215_vm2, %v3848_v3, %v3852_v20  ;;  %v4034_v31 = vld [vmem:[#allocation4 + $0x28] sm:$0xe]  ;;  %v4327_v6 = vrot.slane %v4325_v53, 5  ;;  %v4035_v33 = vld [vmem:[#allocation4 + $0x2c] sm:$0x1] }
 0x25f   :  { %v7152_v17 = vld [vmem:[#allocation3 + $0x84] sm:$0xf0]  ;;  %v4314_v45 = vor.u32 %v4313_v57, %v4310_v48  ;;  %4015 = vst [vmem:[#allocation3 + $0xc4] sm:$0xf] %v3853_v19  ;;  %v7060_v36 = vrot.slane %v4034_v31, 9  ;;  %v4108_v14 = vrot.slane %v4035_v33, 5 }
 0x260   :  { %v7155_v7 = vor.u32 %v7836_v1, %v7152_v17  ;;  %v7144_v44 = vld [vmem:[#allocation3 + $0x7c] sm:$0xf0]  ;;  %v4328_v18 = vor.u32 %v4327_v6, %v4324_v54  ;;  %v4036_v49 = vld [vmem:[#allocation4 + $0x30] sm:$0xe]  ;;  %v4037_v24 = vld [vmem:[#allocation4 + $0x34] sm:$0x1]  ;;  %v5808_v6 = vpop.f32.mrf.mxu0 }
 0x261   :  { %v4315_v25 = vrot.slane %v4314_v45, 4  ;;  %v4333_v0 = vrot.slane %v4331_v55, 5  ;;  %v7061_v2 = vrot.slane %v4036_v49, 9  ;;  %v4112_v8 = vrot.slane %v4037_v24, 5  ;;  %v3750_v23 = vld [vmem:[#allocation4 + $0x38] sm:$0xf] }
 0x262   :  { %6047 = vmatmul.bf16.gmra.mxu1 %v7155_v7  ;;  %v7835_v22 = vld [vmem:[#allocation3 + $0x5c] sm:$0xf]  ;;  %v7849_v46 = vld [vmem:[#allocation3 + $0xc8] sm:$0xf0]  ;;  %v4329_v26 = vrot.slane %v4328_v18, 4  ;;  %v4109_v5 = vsel %vm9349_vm10, %v7060_v36, %v4108_v14  ;;  %v3855_v35 = vshrl.u32 %v3750_v23, 16  ;;  %v9909_v18 = vpop.f32.mrf.mxu1 }
 0x263   :  { %v4320_v9 = vsel %vm8215_vm2, %v4315_v25, %v4319_v60  ;;  %v3751_v63 = vld [vmem:[#allocation4 + $0x3c] sm:$0x1]  ;;  %v4113_v21 = vsel %vm9349_vm10, %v7061_v2, %v4112_v8  ;;  %4174 = vst [vmem:[#allocation3 + $0xa4] sm:$0xf] %v4109_v5  ;;  %v3752_v48 = vld [vmem:[#allocation4 + $0x40] sm:$0xf]  ;;  %v7147_v1 = vor.u32 %v7835_v22, %v7144_v44 }
 0x264   :  { %4495 = vst [vmem:[#allocation3 + $0xac] sm:$0xf] %v4320_v9  ;;  %v3753_v10 = vld [vmem:[#allocation4 + $0x44] sm:$0x1]  ;;  %v7178_v11 = vld [vmem:[#allocation3 + $0xa0] sm:$0xf]  ;;  %v4334_v20 = vsel %vm8215_vm2, %v4329_v26, %v4333_v0 }
 0x265   :  { %v7186_v3 = vld [vmem:[#allocation3 + $0xa8] sm:$0xf]  ;;  %4175 = vst [vmem:[#allocation3 + $0xc8] sm:$0xf] %v4113_v21  ;;  %v3857_v57 = vrot.slane %v3855_v35, 4  ;;  %v3858_v38 = vshll.u32 %v3750_v23, 16 }
 0x266   :  { %v7848_v54 = vld [vmem:[#allocation3 + $0xc0] sm:$0xf0]  ;;  %4496 = vst [vmem:[#allocation3 + $0xd0] sm:$0xf] %v4334_v20  ;;  %v3869_v53 = vshrl.u32 %v3752_v48, 16  ;;  %v3872_v17 = vshll.u32 %v3752_v48, 16  ;;  %v7187_v36 = vor.u32 %v7849_v46, %v7186_v3 }
 0x267   :  { %v7179_v19 = vor.u32 %v7848_v54, %v7178_v11  ;;  %v3860_v45 = vrot.slane %v3858_v38, 5  ;;  %v3864_v55 = vshll.u32 %v3751_v63, 16  ;;  %v3878_v31 = vshll.u32 %v3753_v10, 16  ;;  %v4193_v7 = vld [vmem:[#allocation4 + $0x40] sm:$0xf]  ;;  %10331 = vst [vmem:[#allocation10_spill] sm:$0xff] %v9909_v18 }
 0x268   :  { %v3871_v25 = vrot.slane %v3869_v53, 4  ;;  %v3874_v60 = vrot.slane %v3872_v17, 5  ;;  %v4194_v33 = vld [vmem:[#allocation4 + $0x48] sm:$0xf]  ;;  %4209 = vst [vmem:[#allocation3 + $0xf0] sm:$0xf] %v4193_v7 }
 0x269   :  { %v3861_v44 = vor.u32 %v3860_v45, %v3857_v57  ;;  %4210 = vst [vmem:[#allocation3 + $0x114] sm:$0xf] %v4194_v33  ;;  %v4231_v49 = vld [vmem:[#allocation4 + $0x40] sm:$0xf]  ;;  %v4232_v14 = vld [vmem:[#allocation4 + $0x44] sm:$0x1] }
 0x26a   :  { %5949 = vmatmul.bf16.gmra.mxu3 %v7147_v1  ;;  %5905 = vmatmul.bf16.gmra.mxu2 %v7179_v19  ;;  %v3875_v24 = vor.u32 %v3874_v60, %v3871_v25  ;;  %v4233_v9 = vld [vmem:[#allocation4 + $0x48] sm:$0xf]  ;;  %v5759_v0 = vpop.f32.mrf.mxu3  ;;  %v3866_v8 = vrot.slane %v3864_v55, 5  ;;  %v3880_v23 = vrot.slane %v3878_v31, 5  ;;  %v4336_v22 = vshrl.u32 %v4231_v49, 16  ;;  %v7963_v48 = vld [vmem:[%s10300_s4 + $0x218] sm:$0xff] }
 0x26b   :  { %6003 = vmatmul.bf16.gmra.mxu0 %v7187_v36  ;;  %v3862_v2 = vrot.slane %v3861_v44, 4  ;;  %v7845_v46 = vld [vmem:[#allocation3 + $0xac] sm:$0xf]  ;;  %v5760_v26 = vadd.f32 %v5759_v0, %v9884_v47  ;;  %v4339_v35 = vshll.u32 %v4231_v49, 16  ;;  %v4345_v21 = vshll.u32 %v4232_v14, 16  ;;  %6087 = vmatpush.bf16.msra.mxu2 %v7963_v48  ;;  %v5810_v49 = vpop.f32.mrf.mxu0 }
 0x26c   :  { %v3876_v5 = vrot.slane %v3875_v24, 4  ;;  %v4234_v63 = vld [vmem:[#allocation4 + $0x4c] sm:$0x1]  ;;  %v4338_v3 = vrot.slane %v4336_v22, 4  ;;  %v4350_v20 = vshrl.u32 %v4233_v9, 16  ;;  %v9921_v1 = vpop.f32.mrf.mxu2  ;;  %v4353_v55 = vshll.u32 %v4233_v9, 16 }
 0x26d   :  { %v7188_v10 = vld [vmem:[#allocation3 + $0xcc] sm:$0xf0]  ;;  %v3867_v11 = vsel %vm8215_vm2, %v3862_v2, %v3866_v8  ;;  %v4038_v57 = vld [vmem:[#allocation4 + $0x38] sm:$0xe]  ;;  %v9917_v38 = vadd.f32 %v5808_v6, %v5760_v26  ;;  %v4341_v54 = vrot.slane %v4339_v35, 5  ;;  %v4359_v31 = vshll.u32 %v4234_v63, 16 }
 0x26e   :  { %v3881_v47 = vsel %vm8215_vm2, %v3876_v5, %v3880_v23  ;;  %4016 = vst [vmem:[#allocation3 + $0xe8] sm:$0xf] %v3867_v11  ;;  %v4039_v53 = vld [vmem:[#allocation4 + $0x3c] sm:$0x1]  ;;  %v7191_v17 = vor.u32 %v7845_v46, %v7188_v10  ;;  %v4352_v45 = vrot.slane %v4350_v20, 4  ;;  %v4347_v6 = vrot.slane %v4345_v21, 5  ;;  %v9923_v23 = vpop.f32.mrf.mxu1 }
 0x26f   :  { %4017 = vst [vmem:[#allocation3 + $0x10c] sm:$0xf] %v3881_v47  ;;  %v4342_v19 = vor.u32 %v4341_v54, %v4338_v3  ;;  %v4040_v7 = vld [vmem:[#allocation4 + $0x40] sm:$0xe]  ;;  %v7180_v36 = vld [vmem:[#allocation3 + $0xc4] sm:$0xf0] }
 0x270   :  { %v4041_v25 = vld [vmem:[#allocation4 + $0x44] sm:$0x1]  ;;  %v7062_v60 = vrot.slane %v4038_v57, 9  ;;  %v4116_v33 = vrot.slane %v4039_v53, 5  ;;  %v7063_v44 = vrot.slane %v4040_v7, 9  ;;  %v4355_v14 = vrot.slane %v4353_v55, 5 }
 0x271   :  { %v4343_v24 = vrot.slane %v4342_v19, 4  ;;  %v4361_v0 = vrot.slane %v4359_v31, 5  ;;  %v4120_v2 = vrot.slane %v4041_v25, 5  ;;  %v3754_v8 = vld [vmem:[#allocation4 + $0x88] sm:$0xf]  ;;  %10332 = vst [vmem:[#allocation11_spill] sm:$0xff] %v9923_v23 }
 0x272   :  { %6052 = vmatmul.bf16.gmra.mxu1 %v7191_v17  ;;  %v7844_v22 = vld [vmem:[#allocation3 + $0xa4] sm:$0xf]  ;;  %v7222_v46 = vld [vmem:[#allocation3 + $0xf0] sm:$0xf]  ;;  %v7858_v9 = vld [vmem:[#allocation3 + $0x110] sm:$0xf0]  ;;  %v5761_v26 = vpop.f32.mrf.mxu3  ;;  %v4117_v5 = vsel %vm9349_vm10, %v7062_v60, %v4116_v33  ;;  %v4356_v11 = vor.u32 %v4355_v14, %v4352_v45 }
 0x273   :  { %v3755_v63 = vld [vmem:[#allocation4 + $0x8c] sm:$0x1]  ;;  %v3756_v35 = vld [vmem:[#allocation4 + $0x90] sm:$0xf]  ;;  %v3757_v21 = vld [vmem:[#allocation4 + $0x94] sm:$0x1]  ;;  %v5762_v48 = vadd.f32 %v5761_v26, %v9905_v42  ;;  %v4348_v10 = vsel %vm8215_vm2, %v4343_v24, %v4347_v6  ;;  %v4121_v3 = vsel %vm9349_vm10, %v7063_v44, %v4120_v2  ;;  %v7183_v17 = vor.u32 %v7844_v22, %v7180_v36 }
 0x274   :  { %4176 = vst [vmem:[#allocation3 + $0xec] sm:$0xf] %v4117_v5  ;;  %v4195_v20 = vld [vmem:[#allocation4 + $0x90] sm:$0xf]  ;;  %v4196_v57 = vld [vmem:[#allocation4 + $0x98] sm:$0xf]  ;;  %v7223_v60 = vor.u32 %v7858_v9, %v7222_v46  ;;  %v9936_v44 = vpop.f32.mrf.mxu2 }
 0x275   :  { %v7214_v47 = vld [vmem:[#allocation3 + $0xe8] sm:$0xf]  ;;  %4497 = vst [vmem:[#allocation3 + $0xf4] sm:$0xf] %v4348_v10  ;;  %v3883_v54 = vshrl.u32 %v3754_v8, 16  ;;  %v3886_v53 = vshll.u32 %v3754_v8, 16  ;;  %v9932_v55 = vadd.f32 %v5810_v49, %v5762_v48  ;;  %v5813_v48 = vpop.f32.mrf.mxu0 }
 0x276   :  { %v7857_v19 = vld [vmem:[#allocation3 + $0x108] sm:$0xf0]  ;;  %v4357_v31 = vrot.slane %v4356_v11, 4  ;;  %4177 = vst [vmem:[#allocation3 + $0x110] sm:$0xf] %v4121_v3  ;;  %v3892_v42 = vshll.u32 %v3755_v63, 16 }
 0x277   :  { %v7215_v7 = vor.u32 %v7857_v19, %v7214_v47  ;;  %v3885_v6 = vrot.slane %v3883_v54, 4  ;;  %v3888_v45 = vrot.slane %v3886_v53, 5  ;;  %v3897_v25 = vshrl.u32 %v3756_v35, 16  ;;  %4211 = vst [vmem:[#allocation3 + $0x138] sm:$0xf] %v4195_v20  ;;  %v7962_v3 = vld [vmem:[%s10300_s4 + $0x210] sm:$0xff]  ;;  %v9941_v20 = vpop.f32.mrf.mxu1 }
 0x278   :  { %v4362_v33 = vsel %vm8215_vm2, %v4357_v31, %v4361_v0  ;;  %v3900_v24 = vshll.u32 %v3756_v35, 16  ;;  %v3906_v14 = vshll.u32 %v3757_v21, 16  ;;  %4212 = vst [vmem:[#allocation3 + $0x15c] sm:$0xf] %v4196_v57  ;;  %v4235_v2 = vld [vmem:[#allocation4 + $0x90] sm:$0xf]  ;;  %6088 = vmatpush.bf16.msra.mxu2 %v7962_v3 }
 0x279   :  { %4498 = vst [vmem:[#allocation3 + $0x118] sm:$0xf] %v4362_v33  ;;  %v3889_v36 = vor.u32 %v3888_v45, %v3885_v6  ;;  %v3899_v49 = vrot.slane %v3897_v25, 4  ;;  %v4236_v22 = vld [vmem:[#allocation4 + $0x94] sm:$0x1]  ;;  %v3894_v46 = vrot.slane %v3892_v42, 5 }
 0x27a   :  { %5954 = vmatmul.bf16.gmra.mxu3 %v7183_v17  ;;  %5910 = vmatmul.bf16.gmra.mxu2 %v7215_v7  ;;  %v3902_v8 = vrot.slane %v3900_v24, 5  ;;  %v4237_v26 = vld [vmem:[#allocation4 + $0x98] sm:$0xf]  ;;  %v3908_v9 = vrot.slane %v3906_v14, 5  ;;  %v4238_v63 = vld [vmem:[#allocation4 + $0x9c] sm:$0x1] }
 0x27b   :  { %6008 = vmatmul.bf16.gmra.mxu0 %v7223_v60  ;;  %v3890_v5 = vrot.slane %v3889_v36, 4  ;;  %v4364_v0 = vshrl.u32 %v4235_v2, 16  ;;  %v4367_v35 = vshll.u32 %v4235_v2, 16  ;;  %v4373_v21 = vshll.u32 %v4236_v22, 16  ;;  %v4042_v14 = vld [vmem:[#allocation4 + $0x88] sm:$0xe] }
 0x27c   :  { %v3903_v10 = vor.u32 %v3902_v8, %v3899_v49  ;;  %v4378_v11 = vshrl.u32 %v4237_v26, 16  ;;  %v4381_v54 = vshll.u32 %v4237_v26, 16  ;;  %v4387_v53 = vshll.u32 %v4238_v63, 16  ;;  %v7854_v17 = vld [vmem:[#allocation3 + $0xf4] sm:$0xf] }
 0x27d   :  { %v3895_v57 = vsel %vm8215_vm2, %v3890_v5, %v3894_v46  ;;  %v4366_v47 = vrot.slane %v4364_v0, 4  ;;  %v4369_v31 = vrot.slane %v4367_v35, 5  ;;  %v4375_v42 = vrot.slane %v4373_v21, 5  ;;  %v4043_v36 = vld [vmem:[#allocation4 + $0x8c] sm:$0x1] }
 0x27e   :  { %v3904_v19 = vrot.slane %v3903_v10, 4  ;;  %4018 = vst [vmem:[#allocation3 + $0x130] sm:$0xf] %v3895_v57  ;;  %v4380_v7 = vrot.slane %v4378_v11, 4  ;;  %v4383_v6 = vrot.slane %v4381_v54, 5  ;;  %v4389_v45 = vrot.slane %v4387_v53, 5 }
 0x27f   :  { %v4370_v24 = vor.u32 %v4369_v31, %v4366_v47  ;;  %v4044_v22 = vld [vmem:[#allocation4 + $0x90] sm:$0xe]  ;;  %v4045_v26 = vld [vmem:[#allocation4 + $0x94] sm:$0x1]  ;;  %v7064_v0 = vrot.slane %v4042_v14, 9  ;;  %v4124_v10 = vrot.slane %v4043_v36, 5  ;;  %v5815_v14 = vpop.f32.mrf.mxu0 }
 0x280   :  { %v7224_v25 = vld [vmem:[#allocation3 + $0x114] sm:$0xf0]  ;;  %v3909_v33 = vsel %vm8215_vm2, %v3904_v19, %v3908_v9  ;;  %v4384_v8 = vor.u32 %v4383_v6, %v4380_v7  ;;  %v7216_v5 = vld [vmem:[#allocation3 + $0x10c] sm:$0xf0]  ;;  %v7065_v35 = vrot.slane %v4044_v22, 9  ;;  %v4128_v3 = vrot.slane %v4045_v26, 5 }
 0x281   :  { %v5764_v60 = vpop.f32.mrf.mxu3  ;;  %v7227_v49 = vor.u32 %v7854_v17, %v7224_v25  ;;  %4019 = vst [vmem:[#allocation3 + $0x154] sm:$0xf] %v3909_v33  ;;  %v4371_v63 = vrot.slane %v4370_v24, 4  ;;  %v3758_v21 = vld [vmem:[#allocation4 + $0x98] sm:$0xf]  ;;  %v4125_v17 = vsel %vm9349_vm10, %v7064_v0, %v4124_v10 }
 0x282   :  { %v5765_v2 = vadd.f32 %v5764_v60, %v9921_v1  ;;  %v4385_v11 = vrot.slane %v4384_v8, 4  ;;  %v3759_v57 = vld [vmem:[#allocation4 + $0x9c] sm:$0x1]  ;;  %v3760_v47 = vld [vmem:[#allocation4 + $0xa0] sm:$0xf]  ;;  %v3911_v31 = vshrl.u32 %v3758_v21, 16  ;;  %v4129_v25 = vsel %vm9349_vm10, %v7065_v35, %v4128_v3  ;;  %v9960_v8 = vpop.f32.mrf.mxu1 }
 0x283   :  { %v9948_v46 = vpop.f32.mrf.mxu2  ;;  %6057 = vmatmul.bf16.gmra.mxu1 %v7227_v49  ;;  %v7853_v1 = vld [vmem:[#allocation3 + $0xec] sm:$0xf]  ;;  %v7867_v54 = vld [vmem:[#allocation3 + $0x158] sm:$0xf0]  ;;  %v4376_v53 = vsel %vm8215_vm2, %v4371_v63, %v4375_v42  ;;  %v3761_v19 = vld [vmem:[#allocation4 + $0xa4] sm:$0x1] }
 0x284   :  { %v9950_v9 = vadd.f32 %v5813_v48, %v5765_v2  ;;  %v3914_v7 = vshll.u32 %v3758_v21, 16  ;;  %v7258_v6 = vld [vmem:[#allocation3 + $0x138] sm:$0xf]  ;;  %v4390_v48 = vsel %vm8215_vm2, %v4385_v11, %v4389_v45  ;;  %4499 = vst [vmem:[#allocation3 + $0x13c] sm:$0xf] %v4376_v53  ;;  %v3920_v60 = vshll.u32 %v3759_v57, 16 }
 0x285   :  { %v3925_v33 = vshrl.u32 %v3760_v47, 16  ;;  %v4197_v24 = vld [vmem:[#allocation4 + $0xa0] sm:$0xf]  ;;  %v7250_v36 = vld [vmem:[#allocation3 + $0x130] sm:$0xf]  ;;  %v3913_v42 = vrot.slane %v3911_v31, 4  ;;  %v7219_v22 = vor.u32 %v7853_v1, %v7216_v5  ;;  %v7259_v10 = vor.u32 %v7867_v54, %v7258_v6 }
 0x286   :  { %4500 = vst [vmem:[#allocation3 + $0x160] sm:$0xf] %v4390_v48  ;;  %v3916_v49 = vrot.slane %v3914_v7, 5  ;;  %v3928_v2 = vshll.u32 %v3760_v47, 16  ;;  %v3934_v63 = vshll.u32 %v3761_v19, 16  ;;  %v3922_v11 = vrot.slane %v3920_v60, 5 }
 0x287   :  { %4178 = vst [vmem:[#allocation3 + $0x134] sm:$0xf] %v4125_v17  ;;  %v3927_v26 = vrot.slane %v3925_v33, 4  ;;  %v4198_v45 = vld [vmem:[#allocation4 + $0xa8] sm:$0xf] }
 0x288   :  { %v7866_v0 = vld [vmem:[#allocation3 + $0x150] sm:$0xf0]  ;;  %4179 = vst [vmem:[#allocation3 + $0x158] sm:$0xf] %v4129_v25  ;;  %v3917_v35 = vor.u32 %v3916_v49, %v3913_v42  ;;  %v3930_v3 = vrot.slane %v3928_v2, 5  ;;  %v3936_v7 = vrot.slane %v3934_v63, 5 }
 0x289   :  { %v5766_v21 = vpop.f32.mrf.mxu3  ;;  %v7251_v57 = vor.u32 %v7866_v0, %v7250_v36  ;;  %4213 = vst [vmem:[#allocation3 + $0x180] sm:$0xf] %v4197_v24  ;;  %v4239_v47 = vld [vmem:[#allocation4 + $0xa0] sm:$0xf]  ;;  %v4240_v31 = vld [vmem:[#allocation4 + $0xa4] sm:$0x1] }
 0x28a   :  { %5959 = vmatmul.bf16.gmra.mxu3 %v7219_v22  ;;  %v5767_v53 = vadd.f32 %v5766_v21, %v9936_v44  ;;  %v3918_v5 = vrot.slane %v3917_v35, 4  ;;  %v3931_v1 = vor.u32 %v3930_v3, %v3927_v26  ;;  %4214 = vst [vmem:[#allocation3 + $0x1a4] sm:$0xf] %v4198_v45  ;;  %v4241_v17 = vld [vmem:[#allocation4 + $0xa8] sm:$0xf]  ;;  %v4392_v19 = vshrl.u32 %v4239_v47, 16  ;;  %v5818_v21 = vpop.f32.mrf.mxu0 }
 0x28b   :  { %6013 = vmatmul.bf16.gmra.mxu0 %v7259_v10  ;;  %5915 = vmatmul.bf16.gmra.mxu2 %v7251_v57  ;;  %v4395_v6 = vshll.u32 %v4239_v47, 16  ;;  %v4406_v48 = vshrl.u32 %v4241_v17, 16  ;;  %v9965_v25 = vpop.f32.mrf.mxu2  ;;  %v4242_v33 = vld [vmem:[#allocation4 + $0xac] sm:$0x1]  ;;  %v4409_v36 = vshll.u32 %v4241_v17, 16  ;;  %v4401_v49 = vshll.u32 %v4240_v31, 16 }
 0x28c   :  { %v9963_v54 = vadd.f32 %v5815_v14, %v5767_v53  ;;  %v3923_v44 = vsel %vm8215_vm2, %v3918_v5, %v3922_v11  ;;  %v3932_v60 = vrot.slane %v3931_v1, 4  ;;  %v4394_v24 = vrot.slane %v4392_v19, 4  ;;  %v4046_v63 = vld [vmem:[#allocation4 + $0x98] sm:$0xe]  ;;  %v7863_v45 = vld [vmem:[#allocation3 + $0x13c] sm:$0xf]  ;;  %v9971_v53 = vpop.f32.mrf.mxu1 }
 0x28d   :  { %4020 = vst [vmem:[#allocation3 + $0x178] sm:$0xf] %v3923_v44  ;;  %v4397_v42 = vrot.slane %v4395_v6, 5  ;;  %v7260_v2 = vld [vmem:[#allocation3 + $0x15c] sm:$0xf0]  ;;  %v4408_v22 = vrot.slane %v4406_v48, 4 }
 0x28e   :  { %v3937_v14 = vsel %vm8215_vm2, %v3932_v60, %v3936_v7  ;;  %v4411_v26 = vrot.slane %v4409_v36, 5  ;;  %v4415_v10 = vshll.u32 %v4242_v33, 16  ;;  %v4047_v11 = vld [vmem:[#allocation4 + $0x9c] sm:$0x1]  ;;  %v4048_v3 = vld [vmem:[#allocation4 + $0xa0] sm:$0xe]  ;;  %v7263_v47 = vor.u32 %v7863_v45, %v7260_v2 }
 0x28f   :  { %4021 = vst [vmem:[#allocation3 + $0x19c] sm:$0xf] %v3937_v14  ;;  %v4398_v0 = vor.u32 %v4397_v42, %v4394_v24  ;;  %v7066_v57 = vrot.slane %v4046_v63, 9  ;;  %v4403_v5 = vrot.slane %v4401_v49, 5  ;;  %v4049_v17 = vld [vmem:[#allocation4 + $0xa4] sm:$0x1] }
 0x290   :  { %v4412_v35 = vor.u32 %v4411_v26, %v4408_v22  ;;  %v4417_v1 = vrot.slane %v4415_v10, 5  ;;  %v4132_v7 = vrot.slane %v4047_v11, 5  ;;  %v7067_v6 = vrot.slane %v4048_v3, 9  ;;  %v3762_v48 = vld [vmem:[#allocation4 + $0xa8] sm:$0xf] }
 0x291   :  { %v4399_v31 = vrot.slane %v4398_v0, 4  ;;  %v7961_v44 = vld [vmem:[%s10300_s4 + $0x208] sm:$0xff]  ;;  %v7252_v60 = vld [vmem:[#allocation3 + $0x154] sm:$0xf0]  ;;  %v4136_v24 = vrot.slane %v4049_v17, 5  ;;  %v3939_v42 = vshrl.u32 %v3762_v48, 16 }
 0x292   :  { %v4413_v19 = vrot.slane %v4412_v35, 4  ;;  %v3764_v36 = vld [vmem:[#allocation4 + $0xb0] sm:$0xf]  ;;  %v7862_v2 = vld [vmem:[#allocation3 + $0x134] sm:$0xf]  ;;  %v4133_v14 = vsel %vm9349_vm10, %v7066_v57, %v4132_v7  ;;  %6089 = vmatpush.bf16.msra.mxu2 %v7961_v44  ;;  %v3942_v35 = vshll.u32 %v3762_v48, 16  ;;  %v5820_v18 = vpop.f32.mrf.mxu0 }
 0x293   :  { %6062 = vmatmul.bf16.gmra.mxu1 %v7263_v47  ;;  %v4404_v33 = vsel %vm8215_vm2, %v4399_v31, %v4403_v5  ;;  %v3763_v22 = vld [vmem:[#allocation4 + $0xac] sm:$0x1]  ;;  %v3765_v26 = vld [vmem:[#allocation4 + $0xb4] sm:$0x1]  ;;  %v7294_v63 = vld [vmem:[#allocation3 + $0x180] sm:$0xf]  ;;  %v4137_v0 = vsel %vm9349_vm10, %v7067_v6, %v4136_v24 }
 0x294   :  { %v4418_v49 = vsel %vm8215_vm2, %v4413_v19, %v4417_v1  ;;  %4501 = vst [vmem:[#allocation3 + $0x184] sm:$0xf] %v4404_v33  ;;  %v7876_v45 = vld [vmem:[#allocation3 + $0x1a0] sm:$0xf0]  ;;  %v3941_v10 = vrot.slane %v3939_v42, 4  ;;  %v3953_v31 = vshrl.u32 %v3764_v36, 16  ;;  %v7255_v1 = vor.u32 %v7862_v2, %v7252_v60 }
 0x295   :  { %4502 = vst [vmem:[#allocation3 + $0x1a8] sm:$0xf] %v4418_v49  ;;  %v7286_v11 = vld [vmem:[#allocation3 + $0x178] sm:$0xf]  ;;  %v3956_v5 = vshll.u32 %v3764_v36, 16  ;;  %v3944_v17 = vrot.slane %v3942_v35, 5  ;;  %v7295_v33 = vor.u32 %v7876_v45, %v7294_v63 }
 0x296   :  { %v7875_v3 = vld [vmem:[#allocation3 + $0x198] sm:$0xf0]  ;;  %v9984_v47 = vpop.f32.mrf.mxu2  ;;  %4180 = vst [vmem:[#allocation3 + $0x17c] sm:$0xf] %v4133_v14  ;;  %v3948_v19 = vshll.u32 %v3763_v22, 16  ;;  %v3962_v7 = vshll.u32 %v3765_v26, 16  ;;  %v9989_v26 = vpop.f32.mrf.mxu1 }
 0x297   :  { %4181 = vst [vmem:[#allocation3 + $0x1a0] sm:$0xf] %v4137_v0  ;;  %v3955_v49 = vrot.slane %v3953_v31, 4  ;;  %v3958_v6 = vrot.slane %v3956_v5, 5  ;;  %v4199_v24 = vld [vmem:[#allocation4 + $0xb0] sm:$0xf]  ;;  %v7287_v42 = vor.u32 %v7875_v3, %v7286_v11  ;;  %v3945_v23 = vor.u32 %v3944_v17, %v3941_v10 }
 0x298   :  { %v5769_v57 = vpop.f32.mrf.mxu3  ;;  %v4200_v48 = vld [vmem:[#allocation4 + $0xb8] sm:$0xf]  ;;  %4215 = vst [vmem:[#allocation3 + $0x1c8] sm:$0xf] %v4199_v24  ;;  %v4243_v14 = vld [vmem:[#allocation4 + $0xb0] sm:$0xf] }
 0x299   :  { %v5770_v44 = vadd.f32 %v5769_v57, %v9948_v46  ;;  %v3959_v60 = vor.u32 %v3958_v6, %v3955_v49  ;;  %4216 = vst [vmem:[#allocation3 + $0x1ec] sm:$0xf] %v4200_v48  ;;  %v4244_v2 = vld [vmem:[#allocation4 + $0xb4] sm:$0x1]  ;;  %v4245_v22 = vld [vmem:[#allocation4 + $0xb8] sm:$0xf] }
 0x29a   :  { %5964 = vmatmul.bf16.gmra.mxu3 %v7255_v1  ;;  %v3946_v46 = vrot.slane %v3945_v23, 4  ;;  %v3950_v63 = vrot.slane %v3948_v19, 5  ;;  %v4420_v45 = vshrl.u32 %v4243_v14, 16  ;;  %v3964_v35 = vrot.slane %v3962_v7, 5  ;;  %v4246_v11 = vld [vmem:[#allocation4 + $0xbc] sm:$0x1] }
 0x29b   :  { %v9987_v36 = vadd.f32 %v5818_v21, %v5770_v44  ;;  %6018 = vmatmul.bf16.gmra.mxu0 %v7295_v33  ;;  %5920 = vmatmul.bf16.gmra.mxu2 %v7287_v42  ;;  %v3960_v0 = vrot.slane %v3959_v60, 4  ;;  %v4423_v10 = vshll.u32 %v4243_v14, 16  ;;  %v4434_v3 = vshrl.u32 %v4245_v22, 16  ;;  %v7872_v31 = vld [vmem:[#allocation3 + $0x184] sm:$0xf] }
 0x29c   :  { %v7296_v5 = vld [vmem:[#allocation3 + $0x1a4] sm:$0xf0]  ;;  %v3951_v21 = vsel %vm8215_vm2, %v3946_v46, %v3950_v63  ;;  %v4422_v1 = vrot.slane %v4420_v45, 4  ;;  %v4429_v57 = vshll.u32 %v4244_v2, 16  ;;  %v4437_v17 = vshll.u32 %v4245_v22, 16  ;;  %v7960_v48 = vld [vmem:[%s10300_s4 + $0x200] sm:$0xff] }
 0x29d   :  { %v3965_v23 = vsel %vm8215_vm2, %v3960_v0, %v3964_v35  ;;  %4022 = vst [vmem:[#allocation3 + $0x1c0] sm:$0xf] %v3951_v21  ;;  %v4425_v19 = vrot.slane %v4423_v10, 5  ;;  %v4050_v33 = vld [vmem:[#allocation4 + $0xa8] sm:$0xe]  ;;  %v4436_v49 = vrot.slane %v4434_v3, 4  ;;  %v7299_v14 = vor.u32 %v7872_v31, %v7296_v5  ;;  %6090 = vmatpush.bf16.msra.mxu2 %v7960_v48 }
 0x29e   :  { %v9993_v44 = vpop.f32.mrf.mxu2  ;;  %4023 = vst [vmem:[#allocation3 + $0x1e4] sm:$0xf] %v3965_v23  ;;  %v4439_v6 = vrot.slane %v4437_v17, 5  ;;  %v4443_v24 = vshll.u32 %v4246_v11, 16  ;;  %v4051_v2 = vld [vmem:[#allocation4 + $0xac] sm:$0x1]  ;;  %v10009_v48 = vpop.f32.mrf.mxu1 }
 0x29f   :  { %v4426_v60 = vor.u32 %v4425_v19, %v4422_v1  ;;  %v4052_v22 = vld [vmem:[#allocation4 + $0xb0] sm:$0xe]  ;;  %v4431_v46 = vrot.slane %v4429_v57, 5  ;;  %v4053_v0 = vld [vmem:[#allocation4 + $0xb4] sm:$0x1]  ;;  %v7068_v35 = vrot.slane %v4050_v33, 9  ;;  %v10003_v19 = vpop.f32.mrf.mxu0 }
 0x2a0   :  { %v5771_v7 = vpop.f32.mrf.mxu3  ;;  %v4440_v63 = vor.u32 %v4439_v6, %v4436_v49  ;;  %v4445_v45 = vrot.slane %v4443_v24, 5  ;;  %v7288_v3 = vld [vmem:[#allocation3 + $0x19c] sm:$0xf0]  ;;  %v4140_v21 = vrot.slane %v4051_v2, 5  ;;  %v3766_v17 = vld [vmem:[#allocation4 + $0xb8] sm:$0xf] }
 0x2a1   :  { %v5772_v42 = vadd.f32 %v5771_v7, %v9965_v25  ;;  %v4427_v11 = vrot.slane %v4426_v60, 4  ;;  %v3767_v23 = vld [vmem:[#allocation4 + $0xbc] sm:$0x1]  ;;  %v7069_v25 = vrot.slane %v4052_v22, 9  ;;  %v4144_v31 = vrot.slane %v4053_v0, 5 }
 0x2a2   :  { %v4441_v4 = vrot.slane %v4440_v63, 4  ;;  %v3768_v5 = vld [vmem:[#allocation4 + $0xc0] sm:$0xf]  ;;  %v3967_v1 = vshrl.u32 %v3766_v17, 16  ;;  %v7871_v57 = vld [vmem:[#allocation3 + $0x17c] sm:$0xf] }
 0x2a3   :  { %v10001_v10 = vadd.f32 %v5820_v18, %v5772_v42  ;;  %6067 = vmatmul.bf16.gmra.mxu1 %v7299_v14  ;;  %v7885_v7 = vld [vmem:[#allocation3 + $0x1e8] sm:$0xf0]  ;;  %v4432_v33 = vsel %vm8215_vm2, %v4427_v11, %v4431_v46  ;;  %v4141_v18 = vsel %vm9349_vm10, %v7068_v35, %v4140_v21  ;;  %v3769_v49 = vld [vmem:[#allocation4 + $0xc4] sm:$0x1]  ;;  %v3970_v6 = vshll.u32 %v3766_v17, 16 }
 0x2a4   :  { %v3976_v24 = vshll.u32 %v3767_v23, 16  ;;  %v7330_v42 = vld [vmem:[#allocation3 + $0x1c8] sm:$0xf]  ;;  %v4446_v14 = vsel %vm8215_vm2, %v4441_v4, %v4445_v45  ;;  %4503 = vst [vmem:[#allocation3 + $0x1cc] sm:$0xf] %v4432_v33  ;;  %v4145_v60 = vsel %vm9349_vm10, %v7069_v25, %v4144_v31  ;;  %v3969_v2 = vrot.slane %v3967_v1, 4 }
 0x2a5   :  { %v3981_v22 = vshrl.u32 %v3768_v5, 16  ;;  %v4201_v63 = vld [vmem:[#allocation4 + $0xc0] sm:$0xf]  ;;  %v7884_v0 = vld [vmem:[#allocation3 + $0x1e0] sm:$0xf0]  ;;  %v3972_v35 = vrot.slane %v3970_v6, 5  ;;  %v7291_v21 = vor.u32 %v7871_v57, %v7288_v3  ;;  %v7331_v27 = vor.u32 %v7885_v7, %v7330_v42 }
 0x2a6   :  { %v7322_v46 = vld [vmem:[#allocation3 + $0x1c0] sm:$0xf]  ;;  %v10015_v11 = vpop.f32.mrf.mxu2  ;;  %4504 = vst [vmem:[#allocation3 + $0x1f0] sm:$0xf] %v4446_v14  ;;  %v3984_v23 = vshll.u32 %v3768_v5, 16  ;;  %v3990_v13 = vshll.u32 %v3769_v49, 16 }
 0x2a7   :  { %4182 = vst [vmem:[#allocation3 + $0x1c4] sm:$0xf] %v4141_v18  ;;  %v3983_v17 = vrot.slane %v3981_v22, 4  ;;  %v3973_v4 = vor.u32 %v3972_v35, %v3969_v2  ;;  %v4202_v45 = vld [vmem:[#allocation4 + $0xc8] sm:$0xf]  ;;  %v7323_v25 = vor.u32 %v7884_v0, %v7322_v46  ;;  %v3978_v31 = vrot.slane %v3976_v24, 5  ;;  %v5825_v0 = vpop.f32.mrf.mxu0 }
 0x2a8   :  { %4183 = vst [vmem:[#allocation3 + $0x1e8] sm:$0xf] %v4145_v60  ;;  %v4247_v33 = vld [vmem:[#allocation4 + $0xc0] sm:$0xf]  ;;  %v3986_v1 = vrot.slane %v3984_v23, 5  ;;  %v3992_v5 = vrot.slane %v3990_v13, 5  ;;  %v10022_v23 = vpop.f32.mrf.mxu1 }
 0x2a9   :  { %4217 = vst [vmem:[#allocation3 + $0x210] sm:$0xf] %v4201_v63  ;;  %v4248_v56 = vld [vmem:[#allocation4 + $0xc4] sm:$0x1]  ;;  %v3974_v50 = vrot.slane %v3973_v4, 4  ;;  %v4448_v3 = vshrl.u32 %v4247_v33, 16 }
 0x2aa   :  { %5969 = vmatmul.bf16.gmra.mxu3 %v7291_v21  ;;  %4218 = vst [vmem:[#allocation3 + $0x234] sm:$0xf] %v4202_v45  ;;  %v4249_v6 = vld [vmem:[#allocation4 + $0xc8] sm:$0xf]  ;;  %v3987_v57 = vor.u32 %v3986_v1, %v3983_v17  ;;  %v4250_v18 = vld [vmem:[#allocation4 + $0xcc] sm:$0x1] }
 0x2ab   :  { %6023 = vmatmul.bf16.gmra.mxu0 %v7331_v27  ;;  %5925 = vmatmul.bf16.gmra.mxu2 %v7323_v25  ;;  %v4451_v7 = vshll.u32 %v4247_v33, 16  ;;  %v4462_v49 = vshrl.u32 %v4249_v6, 16  ;;  %v3979_v14 = vsel %vm8215_vm2, %v3974_v50, %v3978_v31  ;;  %v4450_v60 = vrot.slane %v4448_v3, 4  ;;  %v7881_v50 = vld [vmem:[#allocation3 + $0x1cc] sm:$0xf] }
 0x2ac   :  { %v4465_v24 = vshll.u32 %v4249_v6, 16  ;;  %v4471_v2 = vshll.u32 %v4250_v18, 16  ;;  %v3988_v27 = vrot.slane %v3987_v57, 4  ;;  %4024 = vst [vmem:[#allocation3 + $0x208] sm:$0xf] %v3979_v14  ;;  %v4457_v46 = vshll.u32 %v4248_v56, 16 }
 0x2ad   :  { %v5774_v42 = vpop.f32.mrf.mxu3  ;;  %v4453_v63 = vrot.slane %v4451_v7, 5  ;;  %v7332_v35 = vld [vmem:[#allocation3 + $0x1ec] sm:$0xf0]  ;;  %v4464_v13 = vrot.slane %v4462_v49, 4  ;;  %v4054_v33 = vld [vmem:[#allocation4 + $0xb8] sm:$0xe] }
 0x2ae   :  { %v5775_v22 = vadd.f32 %v5774_v42, %v9984_v47  ;;  %v10020_v21 = vpop.f32.mrf.mxu2  ;;  %v4467_v17 = vrot.slane %v4465_v24, 5  ;;  %v3993_v45 = vsel %vm8215_vm2, %v3988_v27, %v3992_v5  ;;  %v4473_v56 = vrot.slane %v4471_v2, 5  ;;  %v4055_v31 = vld [vmem:[#allocation4 + $0xbc] sm:$0x1]  ;;  %v4056_v57 = vld [vmem:[#allocation4 + $0xc0] sm:$0xe] }
 0x2af   :  { %v4454_v47 = vor.u32 %v4453_v63, %v4450_v60  ;;  %4025 = vst [vmem:[#allocation3 + $0x22c] sm:$0xf] %v3993_v45  ;;  %v7335_v1 = vor.u32 %v7881_v50, %v7332_v35  ;;  %v4459_v3 = vrot.slane %v4457_v46, 5  ;;  %v7070_v18 = vrot.slane %v4054_v33, 9  ;;  %v7324_v7 = vld [vmem:[#allocation3 + $0x1e4] sm:$0xf0] }
 0x2b0   :  { %v10025_v4 = vadd.f32 %v10003_v19, %v5775_v22  ;;  %v4468_v25 = vor.u32 %v4467_v17, %v4464_v13  ;;  %v4057_v42 = vld [vmem:[#allocation4 + $0xc4] sm:$0x1]  ;;  %v4148_v19 = vrot.slane %v4055_v31, 5  ;;  %v7071_v14 = vrot.slane %v4056_v57, 9  ;;  %v7366_v24 = vld [vmem:[#allocation3 + $0x210] sm:$0xf] }
 0x2b1   :  { %v4455_v6 = vrot.slane %v4454_v47, 4  ;;  %v4152_v60 = vrot.slane %v4057_v42, 5  ;;  %v4507_v22 = vld [vmem:[#allocation4 + $0x10] sm:$0xe]  ;;  %v4508_v27 = vld [vmem:[#allocation4 + $0x14] sm:$0x1]  ;;  %v5828_v42 = vpop.f32.mrf.mxu0 }
 0x2b2   :  { %v4469_v49 = vrot.slane %v4468_v25, 4  ;;  %v7880_v63 = vld [vmem:[#allocation3 + $0x1c4] sm:$0xf]  ;;  %v7894_v35 = vld [vmem:[#allocation3 + $0x230] sm:$0xf0]  ;;  %v4149_v13 = vsel %vm9349_vm10, %v7070_v18, %v4148_v19  ;;  %v7072_v25 = vrot.slane %v4507_v22, 9 }
 0x2b3   :  { %6072 = vmatmul.bf16.gmra.mxu1 %v7335_v1  ;;  %v4460_v5 = vsel %vm8215_vm2, %v4455_v6, %v4459_v3  ;;  %v4509_v17 = vld [vmem:[#allocation4 + $0x18] sm:$0xe]  ;;  %v7358_v45 = vld [vmem:[#allocation3 + $0x208] sm:$0xf]  ;;  %v4153_v47 = vsel %vm9349_vm10, %v7071_v14, %v4152_v60  ;;  %v4510_v33 = vld [vmem:[#allocation4 + $0x1c] sm:$0x1]  ;;  %v7327_v3 = vor.u32 %v7880_v63, %v7324_v7  ;;  %v7367_v14 = vor.u32 %v7894_v35, %v7366_v24 }
 0x2b4   :  { %v4474_v46 = vsel %vm8215_vm2, %v4469_v49, %v4473_v56  ;;  %4505 = vst [vmem:[#allocation3 + $0x214] sm:$0xf] %v4460_v5  ;;  %v4573_v31 = vrot.slane %v4508_v27, 5  ;;  %v7073_v1 = vrot.slane %v4509_v17, 9  ;;  %v4577_v6 = vrot.slane %v4510_v33, 5 }
 0x2b5   :  { %v5776_v2 = vpop.f32.mrf.mxu3  ;;  %4506 = vst [vmem:[#allocation3 + $0x238] sm:$0xf] %v4474_v46  ;;  %v4511_v39 = vld [vmem:[#allocation4 + $0x20] sm:$0xe]  ;;  %v4512_v49 = vld [vmem:[#allocation4 + $0x24] sm:$0x1] }
 0x2b6   :  { %v5777_v50 = vadd.f32 %v5776_v2, %v9993_v44  ;;  %4184 = vst [vmem:[#allocation3 + $0x20c] sm:$0xf] %v4149_v13  ;;  %v7893_v57 = vld [vmem:[#allocation3 + $0x228] sm:$0xf0]  ;;  %v10040_v18 = vpop.f32.mrf.mxu2  ;;  %v4574_v44 = vsel %vm9349_vm10, %v7072_v25, %v4573_v31  ;;  %v4578_v5 = vsel %vm9349_vm10, %v7073_v1, %v4577_v6  ;;  %v4513_v60 = vld [vmem:[#allocation4 + $0x28] sm:$0xe] }
 0x2b7   :  { %4185 = vst [vmem:[#allocation3 + $0x230] sm:$0xf] %v4153_v47  ;;  %v7359_v19 = vor.u32 %v7893_v57, %v7358_v45  ;;  %v4514_v22 = vld [vmem:[#allocation4 + $0x2c] sm:$0x1]  ;;  %v7074_v7 = vrot.slane %v4511_v39, 9  ;;  %v4581_v27 = vrot.slane %v4512_v49, 5 }
 0x2b8   :  { %v10038_v56 = vadd.f32 %v5825_v0, %v5777_v50  ;;  %4651 = vst [vmem:[#allocation3 + $0x20] sm:$0xf] %v4574_v44  ;;  %v10046_v0 = vpop.f32.mrf.mxu1  ;;  %v7075_v2 = vrot.slane %v4513_v60, 9  ;;  %v4585_v63 = vrot.slane %v4514_v22, 5  ;;  %v4515_v46 = vld [vmem:[#allocation4 + $0x30] sm:$0xe] }
 0x2b9   :  { %4652 = vst [vmem:[#allocation3 + $0x44] sm:$0xf] %v4578_v5  ;;  %v4516_v13 = vld [vmem:[#allocation4 + $0x34] sm:$0x1]  ;;  %v4582_v24 = vsel %vm9349_vm10, %v7074_v7, %v4581_v27  ;;  %v7076_v17 = vrot.slane %v4515_v46, 9 }
 0x2ba   :  { %5974 = vmatmul.bf16.gmra.mxu3 %v7327_v3  ;;  %v4586_v35 = vsel %vm9349_vm10, %v7075_v2, %v4585_v63  ;;  %v4589_v50 = vrot.slane %v4516_v13, 5  ;;  %4653 = vst [vmem:[#allocation3 + $0x68] sm:$0xf] %v4582_v24  ;;  %v4517_v47 = vld [vmem:[#allocation4 + $0x38] sm:$0xe] }
 0x2bb   :  { %6028 = vmatmul.bf16.gmra.mxu0 %v7367_v14  ;;  %5930 = vmatmul.bf16.gmra.mxu2 %v7359_v19  ;;  %v7890_v25 = vld [vmem:[#allocation3 + $0x214] sm:$0xf]  ;;  %4654 = vst [vmem:[#allocation3 + $0x8c] sm:$0xf] %v4586_v35  ;;  %v4518_v31 = vld [vmem:[#allocation4 + $0x3c] sm:$0x1]  ;;  %v5830_v14 = vpop.f32.mrf.mxu0 }
 0x2bc   :  { %v4590_v1 = vsel %vm9349_vm10, %v7076_v17, %v4589_v50  ;;  %v7368_v6 = vld [vmem:[#allocation3 + $0x234] sm:$0xf0]  ;;  %v7077_v39 = vrot.slane %v4517_v47, 9  ;;  %v4593_v3 = vrot.slane %v4518_v31, 5  ;;  %v4519_v22 = vld [vmem:[#allocation4 + $0x40] sm:$0xe]  ;;  %v5848_v31 = vadd.f32 %v9941_v20, %v9842_v43 }
 0x2bd   :  { %v5779_v45 = vpop.f32.mrf.mxu3  ;;  %4655 = vst [vmem:[#allocation3 + $0xb0] sm:$0xf] %v4590_v1  ;;  %v7371_v49 = vor.u32 %v7890_v25, %v7368_v6  ;;  %v4520_v7 = vld [vmem:[#allocation4 + $0x44] sm:$0x1]  ;;  %v7889_v2 = vld [vmem:[#allocation3 + $0x20c] sm:$0xf] }
 0x2be   :  { %v5780_v33 = vadd.f32 %v5779_v45, %v10015_v11  ;;  %v4594_v44 = vsel %vm9349_vm10, %v7077_v39, %v4593_v3  ;;  %v5737_v19 = vpop.f32.mrf.mxu2  ;;  %v7360_v60 = vld [vmem:[#allocation3 + $0x22c] sm:$0xf0]  ;;  %v4521_v63 = vld [vmem:[#allocation4 + $0x48] sm:$0xe]  ;;  %v7078_v13 = vrot.slane %v4519_v22, 9  ;;  %v4597_v24 = vrot.slane %v4520_v7, 5 }
 0x2bf   :  { %4656 = vst [vmem:[#allocation3 + $0xd4] sm:$0xf] %v4594_v44  ;;  %v7079_v35 = vrot.slane %v4521_v63, 9  ;;  %v7363_v45 = vor.u32 %v7889_v2, %v7360_v60  ;;  %v7122_v47 = vld [vmem:[#allocation3 + $0x20] sm:$0xf] }
 0x2c0   :  { %v10055_v57 = vadd.f32 %v5828_v42, %v5780_v33  ;;  %v10059_v11 = vpop.f32.mrf.mxu1  ;;  %v4522_v42 = vld [vmem:[#allocation4 + $0x4c] sm:$0x1]  ;;  %v7832_v46 = vld [vmem:[#allocation3 + $0x40] sm:$0xf0]  ;;  %v4598_v33 = vsel %vm9349_vm10, %v7078_v13, %v4597_v24  ;;  %v4523_v60 = vld [vmem:[#allocation4 + $0x90] sm:$0xe]  ;;  %v5853_v13 = vadd.f32 %v9971_v53, %v9882_v16 }
 0x2c1   :  { %v4601_v17 = vrot.slane %v4522_v42, 5  ;;  %4657 = vst [vmem:[#allocation3 + $0xf8] sm:$0xf] %v4598_v33  ;;  %v4524_v22 = vld [vmem:[#allocation4 + $0x94] sm:$0x1] }
 0x2c2   :  { %v4605_v2 = vrot.slane %v4524_v22, 5  ;;  %v7841_v20 = vld [vmem:[#allocation3 + $0x88] sm:$0xf0]  ;;  %v5858_v22 = vadd.f32 %v10009_v48, %v9917_v38 }
 0x2c3   :  { %6077 = vmatmul.bf16.gmra.mxu1 %v7371_v49  ;;  %v4602_v25 = vsel %vm9349_vm10, %v7079_v35, %v4601_v17  ;;  %v5833_v6 = vpop.f32.mrf.mxu0  ;;  %v4525_v35 = vld [vmem:[#allocation4 + $0x98] sm:$0xe]  ;;  %v4526_v17 = vld [vmem:[#allocation4 + $0x9c] sm:$0x1] }
 0x2c4   :  { %4658 = vst [vmem:[#allocation3 + $0x11c] sm:$0xf] %v4602_v25  ;;  %v4609_v33 = vrot.slane %v4526_v17, 5  ;;  %v4532_v17 = vld [vmem:[#allocation4 + $0xb4] sm:$0x1] }
 0x2c5   :  { %v5781_v5 = vpop.f32.mrf.mxu3  ;;  %v4621_v48 = vrot.slane %v4532_v17, 5 }
 0x2c6   :  { %v5782_v27 = vadd.f32 %v5781_v5, %v10020_v21  ;;  %v7123_v21 = vor.u32 %v7832_v46, %v7122_v47  ;;  %v7158_v46 = vld [vmem:[#allocation3 + $0x68] sm:$0xf]  ;;  %v7081_v47 = vrot.slane %v4525_v35, 9  ;;  %v7850_v16 = vld [vmem:[#allocation3 + $0xd0] sm:$0xf0] }
 0x2c7   :  { %v4531_v35 = vld [vmem:[#allocation4 + $0xb0] sm:$0xe] }
 0x2c8   :  { %v10062_v50 = vadd.f32 %v5830_v14, %v5782_v27  ;;  %v7080_v27 = vrot.slane %v4523_v60, 9  ;;  %v4610_v25 = vsel %vm9349_vm10, %v7081_v47, %v4609_v33  ;;  %v7084_v38 = vrot.slane %v4531_v35, 9  ;;  %v7230_v33 = vld [vmem:[#allocation3 + $0xf8] sm:$0xf] }
 0x2c9   :  { %4660 = vst [vmem:[#allocation3 + $0x164] sm:$0xf] %v4610_v25 }
 0x2ca   :  { %5979 = vmatmul.bf16.gmra.mxu3 %v7363_v45  ;;  %v4606_v42 = vsel %vm9349_vm10, %v7080_v27, %v4605_v2  ;;  %v4529_v27 = vld [vmem:[#allocation4 + $0xa8] sm:$0xe]  ;;  %v4530_v2 = vld [vmem:[#allocation4 + $0xac] sm:$0x1] }
 0x2cb   :  { %6091 = vmatmul.bf16.vlgmr.msra.gmra.mxu2 %v7123_v21  ;;  %v5835_v43 = vpop.f32.mrf.mxu0  ;;  %4659 = vst [vmem:[#allocation3 + $0x140] sm:$0xf] %v4606_v42  ;;  %v4617_v42 = vrot.slane %v4530_v2, 5  ;;  %v7859_v25 = vld [vmem:[#allocation3 + $0x118] sm:$0xf0] }
 0x2cc   :  { %v5896_v1 = vpop.f32.mrf.mxu2  ;;  %v4535_v2 = vld [vmem:[#allocation4 + $0xc0] sm:$0xe] }
 0x2cd   :  { %v5784_v39 = vpop.f32.mrf.mxu3  ;;  %v10070_v3 = vadd.f32 %v5896_v1, %v5848_v31  ;;  %v4527_v31 = vld [vmem:[#allocation4 + $0xa0] sm:$0xe]  ;;  %v4528_v1 = vld [vmem:[#allocation4 + $0xa4] sm:$0x1] }
 0x2ce   :  { %v5785_v44 = vadd.f32 %v5784_v39, %v10040_v18  ;;  %v7159_v18 = vor.u32 %v7841_v20, %v7158_v46  ;;  %v4613_v39 = vrot.slane %v4528_v1, 5  ;;  %v7083_v20 = vrot.slane %v4529_v27, 9 }
 0x2cf   :  { %v7231_v1 = vor.u32 %v7859_v25, %v7230_v33 }
 0x2d0   :  { %v10073_v49 = vadd.f32 %v5833_v6, %v5785_v44  ;;  %v7082_v6 = vrot.slane %v4527_v31, 9  ;;  %v4618_v46 = vsel %vm9349_vm10, %v7083_v20, %v4617_v42  ;;  %v4622_v31 = vsel %vm9349_vm10, %v7084_v38, %v4621_v48  ;;  %v4536_v20 = vld [vmem:[#allocation4 + $0xc4] sm:$0x1]  ;;  %v4537_v42 = vld [vmem:[#allocation4 + $0xc8] sm:$0xe] }
 0x2d1   :  { %4662 = vst [vmem:[#allocation3 + $0x1ac] sm:$0xf] %v4618_v46  ;;  %v7868_v35 = vld [vmem:[#allocation3 + $0x160] sm:$0xf0]  ;;  %v7087_v17 = vrot.slane %v4537_v42, 9 }
 0x2d2   :  { %v4614_v44 = vsel %vm9349_vm10, %v7082_v6, %v4613_v39  ;;  %4663 = vst [vmem:[#allocation3 + $0x1d0] sm:$0xf] %v4622_v31  ;;  %v5863_v39 = vadd.f32 %v10046_v0, %v9950_v9  ;;  %v4538_v0 = vld [vmem:[#allocation4 + $0xcc] sm:$0x1]  ;;  %v7266_v33 = vld [vmem:[#allocation3 + $0x140] sm:$0xf] }
 0x2d3   :  { %4661 = vst [vmem:[#allocation3 + $0x188] sm:$0xf] %v4614_v44  ;;  %v4633_v38 = vrot.slane %v4538_v0, 5 }
 0x2d4   :  { %v10075_v14 = vpop.f32.mrf.mxu2 }
 0x2d5   :  { %v5786_v5 = vpop.f32.mrf.mxu3 }
 0x2d6   :  { %v5787_v7 = vadd.f32 %v5786_v5, %v5737_v19  ;;  %v10083_v19 = vpop.f32.mrf.mxu1  ;;  %v7194_v5 = vld [vmem:[#allocation3 + $0xb0] sm:$0xf] }
 0x2d7   :  { %v7195_v60 = vor.u32 %v7850_v16, %v7194_v5  ;;  %v4534_v16 = vld [vmem:[#allocation4 + $0xbc] sm:$0x1]  ;;  %v5868_v25 = vadd.f32 %v10083_v19, %v9987_v36 }
 0x2d8   :  { %v10077_v63 = vadd.f32 %v5835_v43, %v5787_v7 }
 0x2da   :  { %v7302_v58 = vld [vmem:[#allocation3 + $0x188] sm:$0xf] }
 0x2db   :  { %6096 = vmatmul.bf16.gmra.mxu2 %v7159_v18 }
 0x2dd   :  { %v5901_v24 = vpop.f32.mrf.mxu2  ;;  %v5945_v19 = vpop.f32.mrf.mxu3 }
 0x2de   :  { %v10085_v45 = vadd.f32 %v5901_v24, %v5853_v13  ;;  %v10091_v53 = vpop.f32.mrf.mxu1  ;;  %v5860_v13 = vadd.f32 %v10022_v23, %v9932_v55  ;;  %v4533_v23 = vld [vmem:[#allocation4 + $0xb8] sm:$0xe] }
 0x2df   :  { %v7085_v5 = vrot.slane %v4533_v23, 9 }
 0x2e5   :  { %v10089_v21 = vpop.f32.mrf.mxu2 }
 0x2e6   :  { %v5872_v18 = vpop.f32.mrf.mxu1 }
 0x2eb   :  { %6101 = vmatmul.bf16.gmra.mxu2 %v7195_v60  ;;  %v4625_v60 = vrot.slane %v4534_v16, 5  ;;  %v7877_v16 = vld [vmem:[#allocation3 + $0x1a8] sm:$0xf0] }
 0x2ed   :  { %v5906_v7 = vpop.f32.mrf.mxu2 }
 0x2ee   :  { %v10097_v43 = vadd.f32 %v5906_v7, %v5858_v22  ;;  %v5874_v6 = vpop.f32.mrf.mxu1  ;;  %v4626_v22 = vsel %vm9349_vm10, %v7085_v5, %v4625_v60  ;;  %v5865_v7 = vadd.f32 %v10059_v11, %v9963_v54  ;;  %v4634_v54 = vsel %vm9349_vm10, %v7087_v17, %v4633_v38  ;;  %v5947_v38 = vpop.f32.mrf.mxu3 }
 0x2ef   :  { %4664 = vst [vmem:[#allocation3 + $0x1f4] sm:$0xf] %v4626_v22  ;;  %v7267_v11 = vor.u32 %v7868_v35, %v7266_v33  ;;  %v7303_v22 = vor.u32 %v7877_v16, %v7302_v58  ;;  %v5752_v58 = vadd.f32 %v9858_v15, %v9837_v29  ;;  %v10156_v29 = vld [vmem:[%s10301_s8] ss:$0 sm:$0xff] }
 0x2f0   :  { %4666 = vst [vmem:[#allocation3 + $0x23c] sm:$0xf] %v4634_v54 }
 0x2f5   :  { %v5908_v24 = vpop.f32.mrf.mxu2 }
 0x2f6   :  { %v10103_v47 = vadd.f32 %v5908_v24, %v5860_v13  ;;  %v5877_v46 = vpop.f32.mrf.mxu1  ;;  %v7086_v13 = vrot.slane %v4535_v2, 9  ;;  %v4629_v24 = vrot.slane %v4536_v20, 5  ;;  %v5875_v20 = vadd.f32 %v5874_v6, %v10038_v56  ;;  %v7886_v0 = vld [vmem:[#allocation3 + $0x1f0] sm:$0xf0] }
 0x2f7   :  { %v5878_v17 = vadd.f32 %v5877_v46, %v10055_v57  ;;  %v7895_v6 = vld [vmem:[#allocation3 + $0x238] sm:$0xf0] }
 0x2f8   :  { %v4630_v48 = vsel %vm9349_vm10, %v7086_v13, %v4629_v24  ;;  %v5994_v24 = vpop.f32.mrf.mxu0 }
 0x2f9   :  { %4665 = vst [vmem:[#allocation3 + $0x218] sm:$0xf] %v4630_v48 }
 0x2fb   :  { %6106 = vmatmul.bf16.gmra.mxu2 %v7231_v1 }
 0x2fd   :  { %v5911_v55 = vpop.f32.mrf.mxu2 }
 0x2fe   :  { %v10109_v44 = vadd.f32 %v5911_v55, %v5863_v39  ;;  %v5879_v1 = vpop.f32.mrf.mxu1  ;;  %v5870_v55 = vadd.f32 %v10091_v53, %v10001_v10  ;;  %v7338_v53 = vld [vmem:[#allocation3 + $0x1d0] sm:$0xf] }
 0x2ff   :  { %v7339_v13 = vor.u32 %v7886_v0, %v7338_v53  ;;  %v5880_v33 = vadd.f32 %v5879_v1, %v10062_v50  ;;  %v5801_v1 = vadd.f32 %v9856_v59, %v5752_v58 }
 0x300   :  { %v5996_v48 = vpop.f32.mrf.mxu0  ;;  %v7374_v56 = vld [vmem:[#allocation3 + $0x218] sm:$0xf] }
 0x305   :  { %v5913_v27 = vpop.f32.mrf.mxu2 }
 0x306   :  { %v10115_v9 = vadd.f32 %v5913_v27, %v5865_v7  ;;  %v5882_v60 = vpop.f32.mrf.mxu1  ;;  %v5873_v7 = vadd.f32 %v5872_v18, %v10025_v4 }
 0x308   :  { %v5999_v16 = vpop.f32.mrf.mxu0 }
 0x30b   :  { %6111 = vmatmul.bf16.gmra.mxu2 %v7267_v11 }
 0x30e   :  { %v5916_v31 = vpop.f32.mrf.mxu2  ;;  %v5884_v36 = vpop.f32.mrf.mxu1 }
 0x30f   :  { %v10123_v39 = vadd.f32 %v5916_v31, %v5868_v25  ;;  %v5950_v31 = vpop.f32.mrf.mxu3 }
 0x310   :  { %v6001_v0 = vpop.f32.mrf.mxu0 }
 0x316   :  { %v5918_v23 = vpop.f32.mrf.mxu2  ;;  %v6043_v35 = vpop.f32.mrf.mxu1 }
 0x317   :  { %v10127_v5 = vadd.f32 %v5918_v23, %v5870_v55  ;;  %v7375_v55 = vor.u32 %v7895_v6, %v7374_v56  ;;  %v5883_v23 = vadd.f32 %v5882_v60, %v10073_v49  ;;  %v5952_v50 = vpop.f32.mrf.mxu3  ;;  %v5850_v49 = vadd.f32 %v9960_v8, %v5801_v1  ;;  %v10166_v8 = vld [vmem:[%s10304_s6] ss:$0 sm:$0xff] }
 0x319   :  { %v5899_v53 = vadd.f32 %v10075_v14, %v5850_v49  ;;  %v2802_v14 = vmul.f32 %v10156_v29, %v9596_v40  ;;  %v5951_v40 = vadd.f32 %v5950_v31, %v10085_v45 }
 0x31b   :  { %6116 = vmatmul.bf16.gmra.mxu2 %v7303_v22  ;;  %v5948_v15 = vadd.f32 %v5947_v38, %v5899_v53 }
 0x31e   :  { %v5921_v27 = vpop.f32.mrf.mxu2  ;;  %v6045_v11 = vpop.f32.mrf.mxu1 }
 0x31f   :  { %v10130_v2 = vadd.f32 %v5921_v27, %v5873_v7  ;;  %v5946_v7 = vadd.f32 %v5945_v19, %v10070_v3  ;;  %v5885_v27 = vadd.f32 %v5884_v36, %v10077_v63  ;;  %v5955_v59 = vpop.f32.mrf.mxu3  ;;  %v10161_v63 = vld [vmem:[%s10303_s5] ss:$0 sm:$0xff] }
 0x321   :  { %v5995_v60 = vadd.f32 %v5994_v24, %v5946_v7  ;;  %v10173_v24 = vld [vmem:[%s10302_s9] ss:$0 sm:$0xff] }
 0x323   :  { %v6044_v3 = vadd.f32 %v6043_v35, %v5995_v60  ;;  %v5757_v35 = vadd.f32 %v9897_v34, %v9869_v41  ;;  %v2803_v41 = vmul.f32 %v10156_v29, %v9629_v37  ;;  %v2804_v37 = vmul.f32 %v10156_v29, %v9654_v61 }
 0x325   :  { %v5806_v56 = vadd.f32 %v9891_v62, %v5757_v35  ;;  %v2823_v31 = vadd.f32 %v10173_v24, %v2803_v41 }
 0x326   :  { %v5923_v42 = vpop.f32.mrf.mxu2  ;;  %v6048_v22 = vpop.f32.mrf.mxu1 }
 0x327   :  { %v10133_v10 = vadd.f32 %v5923_v42, %v5875_v20  ;;  %v5855_v34 = vadd.f32 %v9989_v26, %v5806_v56 }
 0x32b   :  { %6121 = vmatmul.bf16.gmra.mxu2 %v7339_v13 }
 0x32e   :  { %v5926_v4 = vpop.f32.mrf.mxu2  ;;  %v6050_v13 = vpop.f32.mrf.mxu1 }
 0x32f   :  { %v10136_v18 = vadd.f32 %v5926_v4, %v5878_v17  ;;  %v5997_v17 = vadd.f32 %v5996_v48, %v5948_v15  ;;  %v6004_v4 = vpop.f32.mrf.mxu0  ;;  %v6000_v48 = vadd.f32 %v5999_v16, %v5951_v40  ;;  %v2805_v40 = vmul.f32 %v10156_v29, %v9674_v52 }
 0x331   :  { %v6049_v60 = vadd.f32 %v6048_v22, %v6000_v48  ;;  %v5956_v22 = vadd.f32 %v5955_v59, %v10097_v43  ;;  %v2825_v59 = vadd.f32 %v10173_v24, %v2805_v40 }
 0x336   :  { %v5928_v54 = vpop.f32.mrf.mxu2  ;;  %v6053_v6 = vpop.f32.mrf.mxu1 }
 0x337   :  { %v10139_v25 = vadd.f32 %v5928_v54, %v5880_v33  ;;  %v2822_v54 = vadd.f32 %v10173_v24, %v2802_v14  ;;  %v6006_v45 = vpop.f32.mrf.mxu0 }
 0x33b   :  { %6126 = vmatmul.bf16.gmra.mxu2 %v7375_v55 }
 0x33e   :  { %v5931_v57 = vpop.f32.mrf.mxu2  ;;  %v6055_v15 = vpop.f32.mrf.mxu1 }
 0x33f   :  { %v10142_v46 = vadd.f32 %v5931_v57, %v5883_v23  ;;  %v6046_v23 = vadd.f32 %v6045_v11, %v5997_v17  ;;  %v5957_v57 = vpop.f32.mrf.mxu3  ;;  %v6009_v61 = vpop.f32.mrf.mxu0 }
 0x346   :  { %v5933_v20 = vpop.f32.mrf.mxu2 }
 0x347   :  { %v10149_v42 = vadd.f32 %v5933_v20, %v5885_v27  ;;  %v5904_v20 = vadd.f32 %v10089_v21, %v5855_v34  ;;  %v5960_v26 = vpop.f32.mrf.mxu3  ;;  %v6011_v52 = vpop.f32.mrf.mxu0 }
 0x349   :  { %v5953_v11 = vadd.f32 %v5952_v50, %v5904_v20  ;;  %v2824_v50 = vadd.f32 %v10173_v24, %v2804_v37  ;;  %v2806_v20 = vmul.f32 %v10156_v29, %v9690_v28 }
 0x34b   :  { %v6002_v16 = vadd.f32 %v6001_v0, %v5953_v11 }
 0x34e   :  { %v6092_v36 = vpop.f32.mrf.mxu2 }
 0x34f   :  { %v6093_v19 = vadd.f32 %v6092_v36, %v6044_v3 }
 0x351   :  { %v6136_v38 = vmul.f32 %v10161_v63, %v6093_v19 }
 0x353   :  { %v6156_v33 = vadd.f32 %v10166_v8, %v6136_v38 }
 0x355   :  { %v6172_v55 = vmul.f32 0.8, %v6156_v33  ;;  %v6051_v33 = vadd.f32 %v6050_v13, %v6002_v16  ;;  %v2807_v16 = vmul.f32 %v10156_v29, %v9713_v12  ;;  %v2808_v12 = vmul.f32 %v10156_v29, %v9727_v51 }
 0x356   :  { %v6094_v58 = vpop.f32.mrf.mxu2 }
 0x357   :  { %v6188_v1 = vadd.f32 %v6172_v55, %v2822_v54  ;;  %v6095_v7 = vadd.f32 %v6094_v58, %v6046_v23  ;;  %v6005_v55 = vadd.f32 %v6004_v4, %v5956_v22  ;;  %v6058_v23 = vpop.f32.mrf.mxu1 }
 0x359   :  { %v6137_v27 = vmul.f32 %v10161_v63, %v6095_v7  ;;  %v6204_v19 = vmax.f32 %v6188_v1, 0.0  ;;  %v5962_v1 = vpop.f32.mrf.mxu3  ;;  %v5958_v7 = vadd.f32 %v5957_v57, %v10103_v47  ;;  %v6054_v13 = vadd.f32 %v6053_v6, %v6005_v55 }
 0x35a   :  { %v2826_v47 = vadd.f32 %v10173_v24, %v2806_v20  ;;  %v5961_v6 = vadd.f32 %v5960_v26, %v10109_v44  ;;  %v2827_v44 = vadd.f32 %v10173_v24, %v2807_v16  ;;  %v5963_v26 = vadd.f32 %v5962_v1, %v10115_v9 }
 0x35b   :  { %v6157_v62 = vadd.f32 %v10166_v8, %v6137_v27  ;;  %v6007_v4 = vadd.f32 %v6006_v45, %v5958_v7  ;;  %v2828_v9 = vadd.f32 %v10173_v24, %v2808_v12 }
 0x35d   :  { %v6173_v49 = vmul.f32 0.8, %v6157_v62  ;;  %v6056_v57 = vadd.f32 %v6055_v15, %v6007_v4 }
 0x35e   :  { %v6097_v53 = vpop.f32.mrf.mxu2 }
 0x35f   :  { %v6189_v3 = vadd.f32 %v6173_v49, %v2823_v31  ;;  %v6098_v36 = vadd.f32 %v6097_v53, %v6049_v60  ;;  %v6060_v49 = vpop.f32.mrf.mxu1 }
 0x361   :  { %v6205_v14 = vmax.f32 %v6189_v3, 0.0  ;;  %v6138_v21 = vmul.f32 %v10161_v63, %v6098_v36  ;;  %v5965_v3 = vpop.f32.mrf.mxu3 }
 0x363   :  { %v7971_v35 = vpack.c.bf16 %v6205_v14, %v6204_v19  ;;  %v6158_v17 = vadd.f32 %v10166_v8, %v6138_v21  ;;  %v6010_v19 = vadd.f32 %v6009_v61, %v5961_v6  ;;  %v6014_v21 = vpop.f32.mrf.mxu0  ;;  %v6012_v61 = vadd.f32 %v6011_v52, %v5963_v26  ;;  %v10333_v26 = vld [vmem:[#allocation5_spill] sm:$0xff] }
 0x365   :  { %7972 = vst [vmem:[%s10305_s10] sm:$0xff] %v7971_v35   ;;  %v6174_v38 = vmul.f32 0.8, %v6158_v17  ;;  %v6059_v22 = vadd.f32 %v6058_v23, %v6010_v19  ;;  %v5966_v23 = vadd.f32 %v5965_v3, %v10123_v39  ;;  %v2810_v3 = vmul.f32 %v10156_v29, %v9784_v32 }
 0x366   :  { %v6099_v54 = vpop.f32.mrf.mxu2 }
 0x367   :  { %v6190_v0 = vadd.f32 %v6174_v38, %v2824_v50  ;;  %v6100_v56 = vadd.f32 %v6099_v54, %v6051_v33  ;;  %v6063_v17 = vpop.f32.mrf.mxu1 }
 0x369   :  { %v6139_v58 = vmul.f32 %v10161_v63, %v6100_v56  ;;  %v6206_v62 = vmax.f32 %v6190_v0, 0.0  ;;  %v5967_v15 = vpop.f32.mrf.mxu3 }
 0x36a   :  { %v5968_v4 = vadd.f32 %v5967_v15, %v10127_v5  ;;  %v2830_v5 = vadd.f32 %v10173_v24, %v2810_v3 }
 0x36b   :  { %v6159_v43 = vadd.f32 %v10166_v8, %v6139_v58 }
 0x36d   :  { %v6175_v41 = vmul.f32 0.8, %v6159_v43  ;;  %v6016_v43 = vpop.f32.mrf.mxu0 }
 0x36e   :  { %v6102_v34 = vpop.f32.mrf.mxu2 }
 0x36f   :  { %v6191_v48 = vadd.f32 %v6175_v41, %v2825_v59  ;;  %v6103_v27 = vadd.f32 %v6102_v34, %v6054_v13  ;;  %v6061_v59 = vadd.f32 %v6060_v49, %v6012_v61  ;;  %v6065_v7 = vpop.f32.mrf.mxu1 }
 0x371   :  { %v6207_v31 = vmax.f32 %v6191_v48, 0.0  ;;  %v6140_v11 = vmul.f32 %v10161_v63, %v6103_v27  ;;  %v5970_v34 = vpop.f32.mrf.mxu3  ;;  %v2809_v48 = vmul.f32 %v10156_v29, %v9752_v30  ;;  %v6015_v27 = vadd.f32 %v6014_v21, %v5966_v23 }
 0x372   :  { %v5971_v16 = vadd.f32 %v5970_v34, %v10130_v2 }
 0x373   :  { %v7976_v60 = vpack.c.bf16 %v6207_v31, %v6206_v62  ;;  %v6160_v53 = vadd.f32 %v10166_v8, %v6140_v11  ;;  %v2829_v39 = vadd.f32 %v10173_v24, %v2809_v48  ;;  %v6064_v31 = vadd.f32 %v6063_v17, %v6015_v27 }
 0x374   :  { %v2811_v17 = vmul.f32 %v10156_v29, %v10333_v26 }
 0x375   :  { %8008 = vst [vmem:[%s10305_s10 + $0x8] sm:$0xff] %v7976_v60   ;;  %v6176_v28 = vmul.f32 0.8, %v6160_v53  ;;  %v6019_v11 = vpop.f32.mrf.mxu0 }
 0x376   :  { %v6104_v45 = vpop.f32.mrf.mxu2 }
 0x377   :  { %v6192_v36 = vadd.f32 %v6176_v28, %v2826_v47  ;;  %v6105_v37 = vadd.f32 %v6104_v45, %v6056_v57  ;;  %v6017_v47 = vadd.f32 %v6016_v43, %v5968_v4  ;;  %v6068_v30 = vpop.f32.mrf.mxu1  ;;  %v10335_v4 = vld [vmem:[#allocation8_spill] sm:$0xff] }
 0x379   :  { %v6141_v14 = vmul.f32 %v10161_v63, %v6105_v37  ;;  %v6208_v0 = vmax.f32 %v6192_v36, 0.0  ;;  %v5972_v45 = vpop.f32.mrf.mxu3  ;;  %v6066_v32 = vadd.f32 %v6065_v7, %v6017_v47 }
 0x37b   :  { %v6161_v35 = vadd.f32 %v10166_v8, %v6141_v14 }
 0x37d   :  { %v6177_v50 = vmul.f32 0.8, %v6161_v35 }
 0x37e   :  { %v6107_v38 = vpop.f32.mrf.mxu2 }
 0x37f   :  { %v6193_v33 = vadd.f32 %v6177_v50, %v2827_v44  ;;  %v6108_v54 = vadd.f32 %v6107_v38, %v6059_v22  ;;  %v6021_v44 = vpop.f32.mrf.mxu0  ;;  %v6020_v50 = vadd.f32 %v6019_v11, %v5971_v16  ;;  %v6070_v15 = vpop.f32.mrf.mxu1 }
 0x381   :  { %v6209_v56 = vmax.f32 %v6193_v33, 0.0  ;;  %v6142_v40 = vmul.f32 %v10161_v63, %v6108_v54  ;;  %v5975_v2 = vpop.f32.mrf.mxu3  ;;  %v2831_v33 = vadd.f32 %v10173_v24, %v2811_v17  ;;  %v5973_v54 = vadd.f32 %v5972_v45, %v10133_v10 }
 0x382   :  { %v6069_v61 = vadd.f32 %v6068_v30, %v6020_v50 }
 0x383   :  { %v7981_v55 = vpack.c.bf16 %v6209_v56, %v6208_v0  ;;  %v6162_v58 = vadd.f32 %v10166_v8, %v6142_v40  ;;  %v6022_v43 = vadd.f32 %v6021_v44, %v5973_v54 }
 0x385   :  { %8009 = vst [vmem:[%s10305_s10 + $0x10] sm:$0xff] %v7981_v55   ;;  %v6178_v1 = vmul.f32 0.8, %v6162_v58  ;;  %v10334_v55 = vld [vmem:[#allocation7_spill] sm:$0xff]  ;;  %v6071_v48 = vadd.f32 %v6070_v15, %v6022_v43 }
 0x386   :  { %v6109_v51 = vpop.f32.mrf.mxu2  ;;  %v2812_v58 = vmul.f32 %v10156_v29, %v10334_v55 }
 0x387   :  { %v6194_v41 = vadd.f32 %v6178_v1, %v2828_v9  ;;  %v6110_v13 = vadd.f32 %v6109_v51, %v6061_v59  ;;  %v6024_v59 = vpop.f32.mrf.mxu0  ;;  %v6073_v10 = vpop.f32.mrf.mxu1 }
 0x389   :  { %v6143_v20 = vmul.f32 %v10161_v63, %v6110_v13  ;;  %v6210_v6 = vmax.f32 %v6194_v41, 0.0  ;;  %v2832_v41 = vadd.f32 %v10173_v24, %v2812_v58  ;;  %v5976_v13 = vadd.f32 %v5975_v2, %v10136_v18  ;;  %v5977_v27 = vpop.f32.mrf.mxu3 }
 0x38b   :  { %v6163_v52 = vadd.f32 %v10166_v8, %v6143_v20 }
 0x38d   :  { %v6179_v62 = vmul.f32 0.8, %v6163_v52 }
 0x38e   :  { %v6112_v49 = vpop.f32.mrf.mxu2 }
 0x38f   :  { %v6195_v60 = vadd.f32 %v6179_v62, %v2829_v39  ;;  %v6113_v53 = vadd.f32 %v6112_v49, %v6064_v31  ;;  %v2813_v62 = vmul.f32 %v10156_v29, %v10335_v4  ;;  %v6025_v31 = vadd.f32 %v6024_v59, %v5976_v13 }
 0x391   :  { %v6211_v28 = vmax.f32 %v6195_v60, 0.0  ;;  %v6144_v57 = vmul.f32 %v10161_v63, %v6113_v53  ;;  %v6026_v60 = vpop.f32.mrf.mxu0  ;;  %v2833_v18 = vadd.f32 %v10173_v24, %v2813_v62  ;;  %v5978_v53 = vadd.f32 %v5977_v27, %v10139_v25  ;;  %v10339_v62 = vld [vmem:[#allocation11_spill] sm:$0xff] }
 0x392   :  { %v6074_v47 = vadd.f32 %v6073_v10, %v6025_v31  ;;  %v2817_v31 = vmul.f32 %v10156_v29, %v10339_v62 }
 0x393   :  { %v7986_v36 = vpack.c.bf16 %v6211_v28, %v6210_v6  ;;  %v6164_v37 = vadd.f32 %v10166_v8, %v6144_v57  ;;  %v10336_v57 = vld [vmem:[#allocation6_spill] sm:$0xff] }
 0x394   :  { %v2814_v45 = vmul.f32 %v10156_v29, %v10336_v57 }
 0x395   :  { %8010 = vst [vmem:[%s10305_s10 + $0x18] sm:$0xff] %v7986_v36   ;;  %v6180_v19 = vmul.f32 0.8, %v6164_v37  ;;  %v6075_v36 = vpop.f32.mrf.mxu1  ;;  %v5980_v37 = vpop.f32.mrf.mxu3 }
 0x396   :  { %v6114_v14 = vpop.f32.mrf.mxu2  ;;  %v2834_v25 = vadd.f32 %v10173_v24, %v2814_v45 }
 0x397   :  { %v6196_v21 = vadd.f32 %v6180_v19, %v2830_v5  ;;  %v6115_v35 = vadd.f32 %v6114_v14, %v6066_v32  ;;  %v6027_v5 = vadd.f32 %v6026_v60, %v5978_v53  ;;  %v2837_v60 = vadd.f32 %v10173_v24, %v2817_v31 }
 0x399   :  { %v6145_v22 = vmul.f32 %v10161_v63, %v6115_v35  ;;  %v6212_v9 = vmax.f32 %v6196_v21, 0.0  ;;  %v5981_v35 = vadd.f32 %v5980_v37, %v10142_v46  ;;  %v6076_v26 = vadd.f32 %v6075_v36, %v6027_v5  ;;  %v6029_v17 = vpop.f32.mrf.mxu0 }
 0x39b   :  { %v6165_v38 = vadd.f32 %v10166_v8, %v6145_v22 }
 0x39d   :  { %v6181_v12 = vmul.f32 0.8, %v6165_v38  ;;  %v10337_v38 = vld [vmem:[#allocation9_spill] sm:$0xff] }
 0x39e   :  { %v6117_v0 = vpop.f32.mrf.mxu2  ;;  %v2815_v2 = vmul.f32 %v10156_v29, %v10337_v38 }
 0x39f   :  { %v6197_v56 = vadd.f32 %v6181_v12, %v2831_v33  ;;  %v6118_v40 = vadd.f32 %v6117_v0, %v6069_v61  ;;  %v6030_v33 = vadd.f32 %v6029_v17, %v5981_v35  ;;  %v6078_v12 = vpop.f32.mrf.mxu1  ;;  %v5982_v61 = vpop.f32.mrf.mxu3 }
 0x3a0   :  { %v2835_v0 = vadd.f32 %v10173_v24, %v2815_v2 }
 0x3a1   :  { %v6213_v23 = vmax.f32 %v6197_v56, 0.0  ;;  %v6146_v1 = vmul.f32 %v10161_v63, %v6118_v40  ;;  %v5983_v56 = vadd.f32 %v5982_v61, %v10149_v42  ;;  %v6079_v55 = vadd.f32 %v6078_v12, %v6030_v33  ;;  %v6031_v59 = vpop.f32.mrf.mxu0 }
 0x3a3   :  { %v7991_v51 = vpack.c.bf16 %v6213_v23, %v6212_v9  ;;  %v6166_v7 = vadd.f32 %v10166_v8, %v6146_v1  ;;  %v10338_v23 = vld [vmem:[#allocation10_spill] sm:$0xff] }
 0x3a4   :  { %v2816_v1 = vmul.f32 %v10156_v29, %v10338_v23 }
 0x3a5   :  { %8011 = vst [vmem:[%s10305_s10 + $0x20] sm:$0xff] %v7991_v51   ;;  %v6182_v34 = vmul.f32 0.8, %v6166_v7  ;;  %v6032_v51 = vadd.f32 %v6031_v59, %v5983_v56 }
 0x3a6   :  { %v6119_v20 = vpop.f32.mrf.mxu2  ;;  %v2836_v42 = vadd.f32 %v10173_v24, %v2816_v1 }
 0x3a7   :  { %v6198_v52 = vadd.f32 %v6182_v34, %v2832_v41  ;;  %v6120_v39 = vadd.f32 %v6119_v20, %v6071_v48  ;;  %v6080_v48 = vpop.f32.mrf.mxu1 }
 0x3a8   :  { %v6081_v20 = vadd.f32 %v6080_v48, %v6032_v51 }
 0x3a9   :  { %v6147_v11 = vmul.f32 %v10161_v63, %v6120_v39  ;;  %v6214_v16 = vmax.f32 %v6198_v52, 0.0 }
 0x3ab   :  { %v6167_v49 = vadd.f32 %v10166_v8, %v6147_v11 }
 0x3ad   :  { %v6183_v3 = vmul.f32 0.8, %v6167_v49 }
 0x3ae   :  { %v6122_v30 = vpop.f32.mrf.mxu2 }
 0x3af   :  { %v6199_v6 = vadd.f32 %v6183_v3, %v2833_v18  ;;  %v6123_v28 = vadd.f32 %v6122_v30, %v6074_v47 }
 0x3b1   :  { %v6215_v19 = vmax.f32 %v6199_v6, 0.0  ;;  %v6148_v32 = vmul.f32 %v10161_v63, %v6123_v28 }
 0x3b3   :  { %v7996_v14 = vpack.c.bf16 %v6215_v19, %v6214_v16  ;;  %v6168_v21 = vadd.f32 %v10166_v8, %v6148_v32 }
 0x3b5   :  { %8012 = vst [vmem:[%s10305_s10 + $0x28] sm:$0xff] %v7996_v14   ;;  %v6184_v44 = vmul.f32 0.8, %v6168_v21 }
 0x3b6   :  { %v6124_v50 = vpop.f32.mrf.mxu2 }
 0x3b7   :  { %v6200_v22 = vadd.f32 %v6184_v44, %v2834_v25  ;;  %v6125_v15 = vadd.f32 %v6124_v50, %v6076_v26 }
 0x3b9   :  { %v6149_v54 = vmul.f32 %v10161_v63, %v6125_v15  ;;  %v6216_v7 = vmax.f32 %v6200_v22, 0.0 }
 0x3bb   :  { %v6169_v46 = vadd.f32 %v10166_v8, %v6149_v54 }
 0x3bd   :  { %v6185_v40 = vmul.f32 0.8, %v6169_v46 }
 0x3be   :  { %v6127_v58 = vpop.f32.mrf.mxu2 }
 0x3bf   :  { %v6201_v43 = vadd.f32 %v6185_v40, %v2835_v0  ;;  %v6128_v9 = vadd.f32 %v6127_v58, %v6079_v55 }
 0x3c1   :  { %v6217_v41 = vmax.f32 %v6201_v43, 0.0  ;;  %v6150_v10 = vmul.f32 %v10161_v63, %v6128_v9 }
 0x3c3   :  { %v8001_v13 = vpack.c.bf16 %v6217_v41, %v6216_v7  ;;  %v6170_v34 = vadd.f32 %v10166_v8, %v6150_v10 }
 0x3c5   :  { %8013 = vst [vmem:[%s10305_s10 + $0x30] sm:$0xff] %v8001_v13   ;;  %v6186_v27 = vmul.f32 0.8, %v6170_v34 }
 0x3c6   :  { %v6129_v52 = vpop.f32.mrf.mxu2 }
 0x3c7   :  { %v6202_v39 = vadd.f32 %v6186_v27, %v2836_v42  ;;  %v6130_v4 = vadd.f32 %v6129_v52, %v6081_v20 }
 0x3c9   :  { %v6151_v11 = vmul.f32 %v10161_v63, %v6130_v4  ;;  %v6218_v3 = vmax.f32 %v6202_v39, 0.0 }
 0x3cb   :  { %v6171_v49 = vadd.f32 %v10166_v8, %v6151_v11 }
 0x3cd   :  { %v6187_v18 = vmul.f32 0.8, %v6171_v49 }
 0x3cf   :  { %v6203_v53 = vadd.f32 %v6187_v18, %v2837_v60 }
 0x3d1   :  { %v6219_v47 = vmax.f32 %v6203_v53, 0.0 }
 0x3d3   :  { %v8006_v30 = vpack.c.bf16 %v6219_v47, %v6218_v3 }
 0x3d5   :  { %8014 = vst [vmem:[%s10305_s10 + $0x38] sm:$0xff] %v8006_v30  }

</bundles_post_ra>
